<compile_context>
chip_gen: v7x
topology: tpu7x:2x2x1
jax: 0.10.0
libtpu: 0.0.40
codegen_flags: <defaults>
</compile_context>

<pallas_src>
import functools

import jax
import jax.numpy as jnp
from jax.experimental import pallas as pl
from jax.experimental.pallas import tpu as pltpu


def _resize_conv_kernel(x_ref, w_ref, b_ref, o_ref, *,
                        s, TH_in, TH_out, W, Wout, KH, KW, Cin, Cout_pad):
    # x_ref: (1, H+2, W+2, Cin)   original-resolution image with a 1-pixel zero border
    # w_ref: (KH*KW*Cin, Cout_pad) im2col-ordered weights (zero-padded along Cout)
    # b_ref: (1, Cout_pad)
    # o_ref: (1, TH_out, Wout, Cout_pad) one row tile of the output (lane-dense channels)
    rt = pl.program_id(1)

    # --- original-resolution row slab with 1-row halo on each side -------------------
    r0 = pl.multiple_of(rt * TH_in, TH_in)
    slab = x_ref[0, pl.ds(r0, TH_in + 2), :, :]                # (TH_in+2, W+2, Cin)

    # --- nearest upsample by s in both spatial dims (lane dim Cin preserved) ---------
    R, Wp = TH_in + 2, W + 2
    up = jnp.broadcast_to(slab[:, None, :, :], (R, s, Wp, Cin)).reshape(R * s, Wp, Cin)
    up = jnp.broadcast_to(up[:, :, None, :], (R * s, Wp, s, Cin)).reshape(R * s, Wp * s, Cin)

    # Window of the (conceptually) zero-padded upsampled image that this row tile needs.
    # The 1-pixel zero border at original resolution becomes s zero rows/cols after the
    # upsample; exactly one of them is kept, which reproduces Conv2d's padding=1.
    win = up[s - 1: s - 1 + TH_out + KH - 1,
             s - 1: s - 1 + Wout + KW - 1, :]                  # (TH_out+2, Wout+2, Cin)

    # --- im2col: 9 shifted views concatenated along channels -> one deep matmul ------
    cols = [win[kh:kh + TH_out, kw:kw + Wout, :]
            for kh in range(KH) for kw in range(KW)]
    patches = jnp.concatenate(cols, axis=-1)                   # (TH_out, Wout, KH*KW*Cin)
    lhs = patches.reshape(TH_out * Wout, KH * KW * Cin)        # lane dim preserved

    out2d = jnp.dot(lhs, w_ref[...], preferred_element_type=jnp.float32)
    out2d = out2d + b_ref[...]                                 # (TH_out*Wout, Cout_pad)

    o_ref[0, :, :, :] = out2d.reshape(TH_out, Wout, Cout_pad).astype(o_ref.dtype)


def _pick_row_tile(H, s, Wout, cout_pad):
    """Largest divisor of H whose f32 output tile stays ~<=1 MiB; prefer >=2 row tiles."""
    budget = 1 << 20
    cands = [d for d in range(1, H + 1)
             if H % d == 0 and d * s * Wout * cout_pad * 4 <= budget]
    if not cands:
        return 1
    multi = [d for d in cands if d <= max(1, H // 2)]
    return max(multi) if multi else max(cands)


def resize_conv2d(x_nchw, weight_oihw, bias, *, scale_factor, mode="nearest", row_tile=None):
    """Forward pass of ResizeConv2d.

    x_nchw:      (N, Cin, H, W)
    weight_oihw: (Cout, Cin, 3, 3)   (PyTorch Conv2d weight layout)
    bias:        (Cout,)
    Returns:     (N, Cout, H*scale, W*scale)   (stride=1, padding=1)
    """
    assert mode == "nearest"  # TODO(synk): other interpolation modes not implemented
    sf = float(scale_factor)
    assert sf.is_integer() and sf >= 1, "only integer scale factors are supported"
    s = int(sf)

    N, Cin, H, W = x_nchw.shape
    Cout, Cin_w, KH, KW = weight_oihw.shape
    assert Cin_w == Cin
    assert KH == 3 and KW == 3, "kernel written for the module's 3x3 / padding=1 conv"

    Hout, Wout = H * s, W * s
    Cout_pad = ((Cout + 127) // 128) * 128          # lane-dense channel dim

    # --- cheap original-resolution prep (no s^2-sized HBM arrays) ---------------------
    x_nhwc = jnp.transpose(x_nchw, (0, 2, 3, 1))                       # (N, H, W, Cin)
    x_pre = jnp.pad(x_nhwc, ((0, 0), (1, 1), (1, 1), (0, 0)))          # (N, H+2, W+2, Cin)

    # weights: OIHW -> HWIO -> (KH*KW*Cin, Cout) matching im2col tap ordering, pad Cout
    w2d = jnp.transpose(weight_oihw, (2, 3, 1, 0)).reshape(KH * KW * Cin, Cout)
    w2d = jnp.pad(w2d, ((0, 0), (0, Cout_pad - Cout)))
    b2d = jnp.pad(bias.reshape(1, Cout), ((0, 0), (0, Cout_pad - Cout)))

    TH_in = row_tile if row_tile is not None else _pick_row_tile(H, s, Wout, Cout_pad)
    assert H % TH_in == 0
    TH_out = TH_in * s
    n_rt = Hout // TH_out

    kernel = functools.partial(
        _resize_conv_kernel, s=s, TH_in=TH_in, TH_out=TH_out,
        W=W, Wout=Wout, KH=KH, KW=KW, Cin=Cin, Cout_pad=Cout_pad)

    out_pad = pl.pallas_call(
        kernel,
        out_shape=jax.ShapeDtypeStruct((N, Hout, Wout, Cout_pad), x_nchw.dtype),
        grid_spec=pltpu.PrefetchScalarGridSpec(
            num_scalar_prefetch=0,
            grid=(N, n_rt),
            in_specs=[
                # original image block: index-map invariant along rt -> stays resident
                pl.BlockSpec((1, H + 2, W + 2, Cin), lambda n, rt: (n, 0, 0, 0)),
                pl.BlockSpec((KH * KW * Cin, Cout_pad), lambda n, rt: (0, 0)),
                pl.BlockSpec((1, Cout_pad), lambda n, rt: (0, 0)),
            ],
            out_specs=pl.BlockSpec((1, TH_out, Wout, Cout_pad),
                                   lambda n, rt: (n, rt, 0, 0)),
        ),
        compiler_params=pltpu.CompilerParams(
            dimension_semantics=("parallel", "parallel"),
            vmem_limit_bytes=48 * 1024 * 1024,
        ),
    )(x_pre, w2d, b2d)

    out = out_pad[..., :Cout]                        # drop channel padding
    return jnp.transpose(out, (0, 3, 1, 2))          # back to NCHW


def _reference(x_nchw, weight_oihw, bias, scale_factor):
    # Pure-JAX reference for verification (nearest upsample + conv, padding=1).
    s = int(scale_factor)
    x_up = jnp.repeat(jnp.repeat(x_nchw, s, axis=2), s, axis=3)
    out = jax.lax.conv_general_dilated(
        x_up, weight_oihw,
        window_strides=(1, 1),
        padding=((1, 1), (1, 1)),
        dimension_numbers=("NCHW", "OIHW", "NCHW"),
    )
    return out + bias[None, :, None, None]


if __name__ == "__main__":
    key = jax.random.PRNGKey(0)
    k_x, k_w, k_b = jax.random.split(key, 3)

    # Small shapes consistent with the module.
    N, Cin, H, W = 2, 4, 16, 16
    Cout, K, scale = 8, 3, 2

    x = jax.random.normal(k_x, (N, Cin, H, W), dtype=jnp.float32)
    weight = jax.random.normal(k_w, (Cout, Cin, K, K), dtype=jnp.float32) * 0.1
    bias = jax.random.normal(k_b, (Cout,), dtype=jnp.float32) * 0.1

    fwd = jax.jit(functools.partial(resize_conv2d, scale_factor=scale, mode="nearest"))
    out = jax.block_until_ready(fwd(x, weight, bias))

    ref = jax.block_until_ready(_reference(x, weight, bias, scale))
    assert out.shape == (N, Cout, H * scale, W * scale), out.shape
    assert jnp.allclose(out, ref, atol=1e-4, rtol=1e-4), float(jnp.max(jnp.abs(out - ref)))

    print("KERNEL_OK")
</pallas_src>

<mosaic_0001>
module attributes {stable_mosaic.version = 11 : i64} {
  func.func @_resize_conv_kernel(%arg0: i32, %arg1: i32, %arg2: memref<1x18x18x4xf32, #tpu.memory_space<vmem>>, %arg3: memref<36x128xf32, #tpu.memory_space<vmem>>, %arg4: memref<1x128xf32, #tpu.memory_space<vmem>>, %arg5: memref<1x16x32x128xf32, #tpu.memory_space<vmem>>) attributes {dimension_semantics = [#tpu.dimension_semantics<parallel>, #tpu.dimension_semantics<parallel>], iteration_bounds = array<i64: 2, 2>, scalar_prefetch = 0 : i64, scratch_operands = 0 : i64, tpu.core_type = #tpu.core_type<tc>, window_params = [{transform_indices = @transform_0, window_bounds = array<i64: 1, 18, 18, 4>}, {pipeline_mode = #tpu.pipeline_mode<synchronous>, transform_indices = @transform_1, window_bounds = array<i64: 36, 128>}, {pipeline_mode = #tpu.pipeline_mode<synchronous>, transform_indices = @transform_2, window_bounds = array<i64: 1, 128>}, {transform_indices = @transform_3, window_bounds = array<i64: 1, 16, 32, 128>}]} {
    %c8_i32 = arith.constant 8 : i32
    %0 = arith.muli %arg1, %c8_i32 : i32
    %1 = tpu.assume_multiple %0, 8 : i32
    %c0 = arith.constant 0 : index
    %2 = arith.index_cast %1 : i32 to index
    %c0_0 = arith.constant 0 : index
    %c0_1 = arith.constant 0 : index
    %3 = vector.load %arg2[%c0, %2, %c0_0, %c0_1] : memref<1x18x18x4xf32, #tpu.memory_space<vmem>>, vector<1x10x18x4xf32>
    %4 = vector.shape_cast %3 : vector<1x10x18x4xf32> to vector<10x18x4xf32>
    %5 = vector.shape_cast %4 : vector<10x18x4xf32> to vector<10x1x18x4xf32>
    %6 = vector.shape_cast %5 : vector<10x1x18x4xf32> to vector<10x1x18x4xf32>
    %7 = vector.broadcast %6 : vector<10x1x18x4xf32> to vector<10x2x18x4xf32>
    %8 = vector.shape_cast %7 : vector<10x2x18x4xf32> to vector<20x18x4xf32>
    %9 = vector.shape_cast %8 : vector<20x18x4xf32> to vector<20x18x1x4xf32>
    %10 = vector.shape_cast %9 : vector<20x18x1x4xf32> to vector<20x18x1x4xf32>
    %11 = vector.broadcast %10 : vector<20x18x1x4xf32> to vector<20x18x2x4xf32>
    %12 = vector.shape_cast %11 : vector<20x18x2x4xf32> to vector<20x36x4xf32>
    %13 = vector.extract_strided_slice %12 {offsets = [1, 1, 0], sizes = [18, 34, 4], strides = [1, 1, 1]} : vector<20x36x4xf32> to vector<18x34x4xf32>
    %14 = vector.extract_strided_slice %13 {offsets = [0, 0, 0], sizes = [16, 32, 4], strides = [1, 1, 1]} : vector<18x34x4xf32> to vector<16x32x4xf32>
    %15 = vector.extract_strided_slice %13 {offsets = [0, 1, 0], sizes = [16, 32, 4], strides = [1, 1, 1]} : vector<18x34x4xf32> to vector<16x32x4xf32>
    %16 = vector.extract_strided_slice %13 {offsets = [0, 2, 0], sizes = [16, 32, 4], strides = [1, 1, 1]} : vector<18x34x4xf32> to vector<16x32x4xf32>
    %17 = vector.extract_strided_slice %13 {offsets = [1, 0, 0], sizes = [16, 32, 4], strides = [1, 1, 1]} : vector<18x34x4xf32> to vector<16x32x4xf32>
    %18 = vector.extract_strided_slice %13 {offsets = [1, 1, 0], sizes = [16, 32, 4], strides = [1, 1, 1]} : vector<18x34x4xf32> to vector<16x32x4xf32>
    %19 = vector.extract_strided_slice %13 {offsets = [1, 2, 0], sizes = [16, 32, 4], strides = [1, 1, 1]} : vector<18x34x4xf32> to vector<16x32x4xf32>
    %20 = vector.extract_strided_slice %13 {offsets = [2, 0, 0], sizes = [16, 32, 4], strides = [1, 1, 1]} : vector<18x34x4xf32> to vector<16x32x4xf32>
    %21 = vector.extract_strided_slice %13 {offsets = [2, 1, 0], sizes = [16, 32, 4], strides = [1, 1, 1]} : vector<18x34x4xf32> to vector<16x32x4xf32>
    %22 = vector.extract_strided_slice %13 {offsets = [2, 2, 0], sizes = [16, 32, 4], strides = [1, 1, 1]} : vector<18x34x4xf32> to vector<16x32x4xf32>
    %23 = tpu.concatenate %14, %15, %16, %17, %18, %19, %20, %21, %22 in 2 : vector<16x32x4xf32>, vector<16x32x4xf32>, vector<16x32x4xf32>, vector<16x32x4xf32>, vector<16x32x4xf32>, vector<16x32x4xf32>, vector<16x32x4xf32>, vector<16x32x4xf32>, vector<16x32x4xf32> -> vector<16x32x36xf32>
    %24 = vector.shape_cast %23 : vector<16x32x36xf32> to vector<512x36xf32>
    %c0_2 = arith.constant 0 : index
    %c0_3 = arith.constant 0 : index
    %25 = vector.load %arg3[%c0_2, %c0_3] : memref<36x128xf32, #tpu.memory_space<vmem>>, vector<36x128xf32>
    %cst = arith.constant dense<0.000000e+00> : vector<512x128xf32>
    %26 = tpu.matmul %24, %25, %cst {dimension_numbers = #tpu.dot_dimension_numbers<[1], [0], [0], [1], [0, 0, 1, 1], [], []>} : vector<512x36xf32>, vector<36x128xf32>, vector<512x128xf32> -> vector<512x128xf32>
    %c0_4 = arith.constant 0 : index
    %c0_5 = arith.constant 0 : index
    %27 = vector.load %arg4[%c0_4, %c0_5] : memref<1x128xf32, #tpu.memory_space<vmem>>, vector<1x128xf32>
    %28 = vector.broadcast %27 : vector<1x128xf32> to vector<512x128xf32>
    %29 = arith.addf %26, %28 : vector<512x128xf32>
    %30 = vector.shape_cast %29 : vector<512x128xf32> to vector<16x32x128xf32>
    %c0_6 = arith.constant 0 : index
    %c0_7 = arith.constant 0 : index
    %c0_8 = arith.constant 0 : index
    %c0_9 = arith.constant 0 : index
    %31 = vector.load %arg5[%c0_6, %c0_7, %c0_8, %c0_9] : memref<1x16x32x128xf32, #tpu.memory_space<vmem>>, vector<1x16x32x128xf32>
    %32 = vector.shape_cast %31 : vector<1x16x32x128xf32> to vector<16x32x128xf32>
    %33 = vector.shape_cast %30 : vector<16x32x128xf32> to vector<1x16x32x128xf32>
    tpu.vector_store %arg5[%c0_6, %c0_7, %c0_8, %c0_9], %33 {strides = array<i32>} : memref<1x16x32x128xf32, #tpu.memory_space<vmem>>, vector<1x16x32x128xf32>,
    return
  }
  func.func @transform_0(%arg0: i32, %arg1: i32) -> (i32, i32, i32, i32) {
    %c0_i32 = arith.constant 0 : i32
    %c0_i32_0 = arith.constant 0 : i32
    %c0_i32_1 = arith.constant 0 : i32
    %c0_i32_2 = arith.constant 0 : i32
    return %arg0, %c0_i32, %c0_i32_0, %c0_i32_1 : i32, i32, i32, i32
  }
  func.func @transform_1(%arg0: i32, %arg1: i32) -> (i32, i32) {
    %c0_i32 = arith.constant 0 : i32
    %c0_i32_0 = arith.constant 0 : i32
    %c0_i32_1 = arith.constant 0 : i32
    return %c0_i32, %c0_i32_0 : i32, i32
  }
  func.func @transform_2(%arg0: i32, %arg1: i32) -> (i32, i32) {
    %c0_i32 = arith.constant 0 : i32
    %c0_i32_0 = arith.constant 0 : i32
    %c0_i32_1 = arith.constant 0 : i32
    return %c0_i32, %c0_i32_0 : i32, i32
  }
  func.func @transform_3(%arg0: i32, %arg1: i32) -> (i32, i32, i32, i32) {
    %c0_i32 = arith.constant 0 : i32
    %c0_i32_0 = arith.constant 0 : i32
    %c0_i32_1 = arith.constant 0 : i32
    return %arg0, %arg1, %c0_i32, %c0_i32_0 : i32, i32, i32, i32
  }
}

</mosaic_0001>

<bundles_post_ra>
// kernel: resize_conv2d.1
= control target key start
LH: loop header
LB: loop body
LE: loop exit
PB: predicated region body
PF: predicated region fallthrough
CT: control target
= control target key end

     0   :  { %s6742_s12 = smov 0   ;;  %s6744_s13 = smov 0   ;;  %s11467_s0 = inlined_call_operand.vmem [shape: f32[2,18,18,4], index: 0, kind: input, shape index: {}]   ;;  %s11468_s1 = inlined_call_operand.vmem [shape: f32[36,128], index: 1, kind: input, shape index: {}]   ;;  %s11469_s2 = inlined_call_operand.vmem [shape: f32[1,128], index: 2, kind: input, shape index: {}]   ;;  %s11470_s3 = inlined_call_operand.vmem [shape: f32[2,32,32,128], index: 3, kind: output, shape index: {}]  }
   0x1   :  { %s6746_s14 = smov 0   ;;  %s6748_s15 = smov 0  }
   0x2   :  { %s6750_s16 = smov 0  }
   0x3 LB: > { %s22_s17 = sadd.s32 1, %s6702_s14  ;;  %s25_s18 = sadd.s32 1, %s6706_s15  ;;  %s6710_s16 = sphi %s6750_s16, %s13_s16   ;;  %s6706_s15 = sphi %s6748_s15, %s12867_s15   ;;  %s6702_s14 = sphi %s6746_s14, %s12866_s14   ;;  %s6698_s13 = sphi %s6744_s13, %s12865_s13   ;;  %s6694_s12 = sphi %s6742_s12, %s12864_s12  }
   0x4   : > { %p23_p0 = scmp.ge.s32.totalorder %s22_s17, 2  ;;  %p6323_p1 = scmp.ge.s32.totalorder %s6710_s16, 1 }
   0x5   : > { %p151_p2 = scmp.lt.s32.totalorder %s6710_s16, 5 }
   0x6   : > { %s12869_s17 = smov (%p23_p0, %s22_s17), 0  ;;  %s12871_s18 = smov (!%p23_p0, %s25_s18), %s6706_s15 }
   0x7   : > { %p152_p3 = pnand %p6323_p1, %p151_p2  ;;  %p27_p4 = scmp.ge.s32.totalorder %s12871_s18, 2 }
   0x9   : > { %s12873_s18 = smov (%p27_p4, %s12871_s18), 0  ;;  %155 = sbr.rel (%p152_p3) target bundleno = 1144 (0x478), region = 32 }
  0x10   : > { %p180_p5 = scmp.lt.s32.totalorder %s6698_s13, 1  ;;  %v262_v0 = vlaneseq  ;;  %v6712_v1 = vmov 1966171168   ;;  %v6713_v3 = vmov 1983009808   ;;  %s6330_s19 = smul.u32 192, %s6694_s12 }
  0x11   : > { %v260_v2 = vunpack.c.l.s4 %v6712_v1  ;;  %v2182_v4 = vunpack.c.l.s4 %v6713_v3  ;;  %s6714_s25 = smov 4   ;;  %vm3511_vm0 = vcmask 1040384   ;;  %s6715_s26 = smov 8   ;;  %vm5774_vm1 = vcmask 1043456  }
  0x12   : > { %s12875_s13 = smov (!%p180_p5, %s6698_s13), 1  ;;  %v263_v5 = vshrl.u32 %v262_v0, 7  ;;  %s6716_s27 = smov 12   ;;  %vm4830_vm2 = vcmask 31744   ;;  %vm4876_vm3 = vcmask 64512   ;;  %vm4922_vm4 = vcmask 97280  }
  0x13   : > { %v261_v6 = vunpack.c.0.s8 %v260_v2  ;;  %s6598_s20 = smul.u32 432, %s12875_s13  ;;  %v2183_v7 = vunpack.c.0.s8 %v2182_v4  ;;  %s6717_s28 = smov 16   ;;  %vm5003_vm5 = vcmask 130048   ;;  %vm5084_vm6 = vcmask 162816  }
  0x14   : > { %v6786_v10 = vsub.s32 0, %v263_v5  ;;  %s6718_s29 = smov 20   ;;  %s6719_s30 = smov 24   ;;  %vm5165_vm7 = vcmask 195584   ;;  %vm5246_vm8 = vcmask 228352   ;;  %vm5327_vm9 = vcmask 261120  }
  0x15   : > { %v6778_v8 = vsub.s32 %v261_v6, %v263_v5  ;;  %s184_s23 = scalar_lea.vmem %s11467_s0, %s6598_s20  ;;  %v6788_v11 = vsub.s32 %v2183_v7, %v263_v5  ;;  %s6720_s8 = smov 28   ;;  %vm5488_vm10 = vcmask 1046528   ;;  %vm5645_vm11 = vcmask 293888  }
  0x16   : > { %s6783_s24 = scalar_lea.vmem %s184_s23, %s6330_s19  ;;  %11915 = vst [vmem:[#allocation3_spill] sm:$0xff] %v6786_v10  ;;  %s6721_s22 = smov 32  }
  0x17   : > { %11914 = vst [vmem:[#allocation2_spill] sm:$0xff] %v6778_v8  ;;  %v202_v9 = vld [vmem:[%s6783_s24 + $0x18] sm:$0xff]  ;;  %11916 = vst [vmem:[#allocation4_spill] sm:$0xff] %v6788_v11  ;;  %v199_v12 = vld [vmem:[%s6783_s24] sm:$0xff]  ;;  %s6325_s23 = sshll.u32 %s6694_s12, 4 }
  0x18   : > { %v208_v13 = vld [vmem:[%s6783_s24 + $0x48] sm:$0xff]  ;;  %v379_v14 = vcombine.high %v202_v9, %v202_v9  ;;  %v386_v15 = vrot.slane %v202_v9, %v6778_v8  ;;  %v265_v16 = vrot.slane %v199_v12, %v6778_v8  ;;  %v301_v17 = vcombine.high %v199_v12, %v199_v12  ;;  %v205_v18 = vld [vmem:[%s6783_s24 + $0x30] sm:$0xff]  ;;  %v6881_v59 = vld [vmem:[%s6783_s24 + $0x20] sm:$0xff]  ;;  %p188_p6 = scmp.lt.s32.totalorder %s6325_s23, 31 }
  0x19   : > { %v619_v19 = vcombine.high %v208_v13, %v208_v13  ;;  %v626_v20 = vrot.slane %v208_v13, %v6778_v8  ;;  %v499_v21 = vcombine.high %v205_v18, %v205_v18  ;;  %v506_v22 = vrot.slane %v205_v18, %v6778_v8 }
  0x1a   : > { %v6798_v23 = vrot.slane %v379_v14, %v6778_v8  ;;  %v394_v24 = vcombine.high %v386_v15, %v386_v15  ;;  %v6801_v25 = vrot.slane %v386_v15, %v6778_v8  ;;  %v6804_v26 = vrot.slane %v265_v16, %v6778_v8  ;;  %v6332_v15 = vld.sshfl [vmem:[%s6783_s24 + $0x28] sm:$0x11 pattern:$0x75316420]  ;;  %s12877_s23 = smov (!%p188_p6, %s6325_s23), 31 }
  0x1b   : > { %v6807_v27 = vrot.slane %v301_v17, %v6778_v8  ;;  %v309_v28 = vcombine.high %v265_v16, %v265_v16  ;;  %v6810_v29 = vrot.slane %v619_v19, %v6778_v8  ;;  %v634_v30 = vcombine.high %v626_v20, %v626_v20 }
  0x1c   : > { %11917 = vst [vmem:[#allocation5_spill] sm:$0xff] %v6804_v26  ;;  %v6814_v31 = vrot.slane %v6798_v23, %v6778_v8  ;;  %v416_v32 = vrot.slane %v394_v24, %v6778_v8  ;;  %v424_v33 = vcombine.high %v6801_v25, %v6801_v25  ;;  %v332_v34 = vcombine.high %v6804_v26, %v6804_v26 }
  0x1d   : > { %v310_v35 = vcombine.high %v6807_v27, %v6807_v27  ;;  %v6825_v36 = vrot.slane %v6807_v27, %v6778_v8  ;;  %v324_v37 = vrot.slane %v309_v28, %v6778_v8  ;;  %v6829_v38 = vrot.slane %v626_v20, %v6778_v8  ;;  %v6331_v20 = vld.sshfl [vmem:[%s6783_s24 + $0x10] sm:$0x11 pattern:$0x75316420] }
  0x1e   : > { %v426_v39 = vcombine.high %v416_v32, %v416_v32  ;;  %v6832_v40 = vrot.slane %v416_v32, %v6786_v10  ;;  %v6835_v41 = vrot.slane %v424_v33, %v6786_v10  ;;  %v6839_v42 = vrot.slane %v6814_v31, %v6786_v10 }
  0x1f   : > { %11918 = vst [vmem:[#allocation6_spill] sm:$0xff] %v6829_v38  ;;  %v333_v43 = vcombine.high %v6825_v36, %v6825_v36  ;;  %v334_v44 = vcombine.high %v324_v37, %v324_v37  ;;  %v6844_v45 = vrot.slane %v324_v37, %v6786_v10  ;;  %v6847_v46 = vrot.slane %v332_v34, %v6786_v10 }
  0x20   : > { %11919 = vst [vmem:[#allocation7_spill] sm:$0xff] %v6835_v41  ;;  %11920 = vst [vmem:[#allocation8_spill] sm:$0xff] %v6839_v42  ;;  %v6850_v47 = vrot.slane %v426_v39, %v6786_v10  ;;  %v2967_v48 = vcombine.low %v6832_v40, %v6835_v41  ;;  %v6856_v49 = vrot.slane %v6825_v36, %v6786_v10 }
  0x21   : > { %11921 = vst [vmem:[#allocation9_spill] sm:$0xff] %v6844_v45  ;;  %11922 = vst [vmem:[#allocation10_spill] sm:$0xff] %v6847_v46  ;;  %v6860_v50 = vrot.slane %v6810_v29, %v6778_v8  ;;  %v6863_v51 = vrot.slane %v334_v44, %v6786_v10  ;;  %v2899_v52 = vcombine.low %v6844_v45, %v6847_v46 }
  0x22   : > { %11923 = vst [vmem:[#allocation11_spill] sm:$0xff] %v6850_v47  ;;  %11924 = vst [vmem:[#allocation12_spill] sm:$0xff] %v6856_v49  ;;  %v656_v53 = vrot.slane %v634_v30, %v6778_v8  ;;  %v664_v54 = vcombine.high %v6829_v38, %v6829_v38  ;;  %v2968_v55 = vcombine.low %v6850_v47, %v6839_v42  ;;  %v200_v30 = vld [vmem:[%s6783_s24 + $0x8] sm:$0xff] }
  0x23   : > { %11925 = vst [vmem:[#allocation13_spill] sm:$0xff] %v6863_v51  ;;  %v2975_v56 = vrot.slane %v2967_v48, %v6788_v11  ;;  %v6875_v57 = vrot.slane %v6860_v50, %v6786_v10  ;;  %v6878_v58 = vrot.slane %v499_v21, %v6778_v8  ;;  %v2900_v60 = vcombine.low %v6863_v51, %v6856_v49 }
  0x24   : > { %v2907_v61 = vrot.slane %v2899_v52, %v6788_v11  ;;  %v666_v62 = vcombine.high %v656_v53, %v656_v53  ;;  %v6887_v63 = vrot.slane %v656_v53, %v6786_v10  ;;  %v2982_v0 = vrot.slane %v2968_v55, %v6788_v11 }
  0x25   : > { %11926 = vst [vmem:[#allocation14_spill] sm:$0xff] %v6875_v57  ;;  %v6891_v1 = vrot.slane %v664_v54, %v6786_v10  ;;  %v514_v2 = vcombine.high %v506_v22, %v506_v22  ;;  %v6894_v3 = vrot.slane %v506_v22, %v6778_v8  ;;  %v2914_v4 = vrot.slane %v2900_v60, %v6788_v11 }
  0x26   : > { %11927 = vst [vmem:[#allocation15_spill] sm:$0xff] %v6887_v63  ;;  %v6898_v5 = vrot.slane %v666_v62, %v6786_v10  ;;  %v6902_v6 = vrot.slane %v6878_v58, %v6778_v8  ;;  %v428_v7 = vcombine.high %v6881_v59, %v6881_v59  ;;  %v6906_v9 = vcombine.low %v2975_v56, %v2982_v0 }
  0x27   : > { %11928 = vst [vmem:[#allocation16_spill] sm:$0xff] %v6891_v1  ;;  %11929 = vst [vmem:[#allocation17_spill] sm:$0xff] %v6894_v3  ;;  %v3103_v12 = vcombine.low %v6887_v63, %v6891_v1  ;;  %v536_v13 = vrot.slane %v514_v2, %v6778_v8  ;;  %v544_v14 = vcombine.high %v6894_v3, %v6894_v3  ;;  %v6966_v2 = vld [vmem:[%s6783_s24 + $0x38] sm:$0xff] }
  0x28   : > { %11930 = vst [vmem:[#allocation18_spill] sm:$0xff] %v6898_v5  ;;  %v6914_v16 = vcombine.low %v2907_v61, %v2914_v4  ;;  %v3104_v17 = vcombine.low %v6898_v5, %v6875_v57  ;;  %v6920_v18 = vrot.slane %v6902_v6, %v6786_v10  ;;  %v442_v19 = vrot.slane %v428_v7, %v6778_v8 }
  0x29   : > { %v6925_v21 = vrot.slane %v6906_v9, 7  ;;  %v3111_v22 = vrot.slane %v3103_v12, %v6788_v11  ;;  %v546_v24 = vcombine.high %v536_v13, %v536_v13  ;;  %v6929_v28 = vrot.slane %v536_v13, %v6786_v10 }
  0x2a   : > { %11931 = vst [vmem:[#allocation19_spill] sm:$0xff] %v6920_v18  ;;  %v11471_v32 = vrot.slane %v6914_v16, 7  ;;  %v3118_v33 = vrot.slane %v3104_v17, %v6788_v11  ;;  %v6935_v34 = vrot.slane %v544_v14, %v6786_v10  ;;  %v444_v37 = vcombine.high %v442_v19, %v442_v19 }
  0x2b   : > { %11932 = vst [vmem:[#allocation20_spill] sm:$0xff] %v6925_v21  ;;  %11933 = vst [vmem:[#allocation21_spill] sm:$0xff] %v6929_v28  ;;  %3585 = vrot.lane.b32.xlu1 %v6925_v21, %s6714_s25  ;;  %v6940_v39 = vrot.slane %v546_v24, %v6786_v10  ;;  %v6943_v44 = vrot.slane %v442_v19, %v6778_v8  ;;  %v491_v48 = vrot.slane %v6332_v15, %v6778_v8 }
  0x2c   : > { %11934 = vst [vmem:[#allocation22_spill] sm:$0xff] %v6935_v34  ;;  %v300_v52 = vrot.slane %v6331_v20, %v6778_v8  ;;  %3575 = vrot.lane.b32.xlu0 %v11471_v32, %s6714_s25  ;;  %v6950_v53 = vcombine.low %v3111_v22, %v3118_v33  ;;  %v3035_v54 = vcombine.low %v6929_v28, %v6935_v34 }
  0x2d   : > { %11935 = vst [vmem:[#allocation23_spill] sm:$0xff] %v6940_v39  ;;  %v472_v55 = vrot.slane %v444_v37, %v6778_v8  ;;  %v336_v56 = vcombine.high %v200_v30, %v200_v30  ;;  %v3036_v60 = vcombine.low %v6940_v39, %v6920_v18  ;;  %v474_v61 = vcombine.high %v6943_v44, %v6943_v44 }
  0x2e   : > { %11936 = vst [vmem:[#allocation24_spill] sm:$0xff] %v6950_v53  ;;  %v6960_v62 = vrot.slane %v491_v48, %v6786_v10  ;;  %v6963_v0 = vrot.slane %v300_v52, %v6786_v10  ;;  %v6969_v4 = vrot.slane %v6950_v53, 7  ;;  %v3043_v7 = vrot.slane %v3035_v54, %v6788_v11 }
  0x2f   : > { %v476_v12 = vcombine.high %v472_v55, %v472_v55  ;;  %v6973_v13 = vrot.slane %v472_v55, %v6786_v10  ;;  %v3050_v14 = vrot.slane %v3036_v60, %v6788_v11  ;;  %v6977_v15 = vrot.slane %v474_v61, %v6786_v10 }
  0x30   : > { %11937 = vst [vmem:[#allocation25_spill] sm:$0xff] %v6960_v62  ;;  %11938 = vst [vmem:[#allocation26_spill] sm:$0xff] %v6963_v0  ;;  %v343_v17 = vrot.slane %v336_v56, %v6778_v8  ;;  %v279_v19 = vrot.slane %v200_v30, %v6778_v8  ;;  %3605 = vrot.lane.b32.xlu1 %v6969_v4, %s6714_s25  ;;  %v331_v22 = vrot.slane %v310_v35, %v6778_v8 }
  0x31   : > { %11939 = vst [vmem:[#allocation27_spill] sm:$0xff] %v6969_v4  ;;  %11940 = vst [vmem:[#allocation28_spill] sm:$0xff] %v6973_v13  ;;  %v6984_v20 = vrot.slane %v476_v12, %v6786_v10  ;;  %v6994_v24 = vrot.slane %v333_v43, %v6786_v10  ;;  %v548_v30 = vcombine.high %v6966_v2, %v6966_v2 }
  0x32   : > { %11941 = vst [vmem:[#allocation29_spill] sm:$0xff] %v6977_v15  ;;  %v6998_v33 = vcombine.low %v3043_v7, %v3050_v14  ;;  %v3018_v37 = vcombine.low %v6973_v13, %v6977_v15  ;;  %v345_v48 = vcombine.high %v343_v17, %v343_v17  ;;  %v352_v52 = vrot.slane %v343_v17, %v6778_v8 }
  0x33   : > { %11942 = vst [vmem:[#allocation30_spill] sm:$0xff] %v6984_v20  ;;  %11943 = vst [vmem:[#allocation31_spill] sm:$0xff] %v6994_v24  ;;  %v3019_v27 = vcombine.low %v6984_v20, %v6960_v62  ;;  %v286_v35 = vrot.slane %v279_v19, %v6778_v8  ;;  %v335_v54 = vcombine.high %v331_v22, %v331_v22 }
  0x34   : > { %v344_v36 = vcombine.high %v279_v19, %v279_v19  ;;  %v7007_v43 = vrot.slane %v6998_v33, 7  ;;  %v3026_v55 = vrot.slane %v3018_v37, %v6788_v11  ;;  %v366_v56 = vrot.slane %v345_v48, %v6778_v8 }
  0x35   : > { %v368_v60 = vcombine.high %v352_v52, %v352_v52  ;;  %v3033_v61 = vrot.slane %v3019_v27, %v6788_v11  ;;  %v367_v12 = vcombine.high %v286_v35, %v286_v35  ;;  %v7014_v14 = vrot.slane %v331_v22, %v6786_v10 }
  0x36   : > { %11944 = vst [vmem:[#allocation32_spill] sm:$0xff] %v7007_v43  ;;  %v359_v7 = vrot.slane %v344_v36, %v6778_v8  ;;  %3595 = vrot.lane.b32.xlu0 %v7007_v43, %s6714_s25  ;;  %v370_v17 = vcombine.high %v366_v56, %v366_v56  ;;  %v7019_v19 = vrot.slane %v366_v56, %v6786_v10 }
  0x37   : > { %11945 = vst [vmem:[#allocation33_spill] sm:$0xff] %v7014_v14  ;;  %v7022_v37 = vrot.slane %v368_v60, %v6786_v10  ;;  %v7025_v48 = vrot.slane %v335_v54, %v6786_v10  ;;  %v7027_v27 = vcombine.low %v3026_v55, %v3033_v61  ;;  %v7030_v32 = vrot.slane %v286_v35, %v6786_v10  ;;  %v6333_v55 = vld.sshfl [vmem:[%s6783_s24 + $0x40] sm:$0x11 pattern:$0x75316420] }
  0x38   : > { %11946 = vst [vmem:[#allocation34_spill] sm:$0xff] %v7019_v19  ;;  %v369_v36 = vcombine.high %v359_v7, %v359_v7  ;;  %v7033_v22 = vrot.slane %v359_v7, %v6786_v10  ;;  %v7036_v49 = vrot.slane %v370_v17, %v6786_v10  ;;  %v7041_v60 = vrot.slane %v367_v12, %v6786_v10 }
  0x39   : > { %11947 = vst [vmem:[#allocation35_spill] sm:$0xff] %v7022_v37  ;;  %11948 = vst [vmem:[#allocation36_spill] sm:$0xff] %v7025_v48  ;;  %v2950_v56 = vcombine.low %v7019_v19, %v7022_v37  ;;  %v7044_v54 = vrot.slane %v352_v52, %v6786_v10  ;;  %v7048_v35 = vrot.slane %v7027_v27, 7  ;;  %v2916_v7 = vcombine.low %v7014_v14, %v6994_v24 }
  0x3a   : > { %11949 = vst [vmem:[#allocation37_spill] sm:$0xff] %v7030_v32  ;;  %11950 = vst [vmem:[#allocation38_spill] sm:$0xff] %v7033_v22  ;;  %v7051_v61 = vrot.slane %v369_v36, %v6786_v10  ;;  %v2917_v17 = vcombine.low %v7025_v48, %v7030_v32  ;;  %v2951_v12 = vcombine.low %v7036_v49, %v6963_v0 }
  0x3b   : > { %11951 = vst [vmem:[#allocation39_spill] sm:$0xff] %v7036_v49  ;;  %11952 = vst [vmem:[#allocation40_spill] sm:$0xff] %v7041_v60  ;;  %v2958_v52 = vrot.slane %v2950_v56, %v6788_v11  ;;  %v2933_v37 = vcombine.low %v7033_v22, %v7041_v60  ;;  %v562_v19 = vrot.slane %v548_v30, %v6778_v8  ;;  %3593 = vrot.lane.b32.xlu1 %v7048_v35, %s6714_s25 }
  0x3c   : > { %11953 = vst [vmem:[#allocation41_spill] sm:$0xff] %v7044_v54  ;;  %11954 = vst [vmem:[#allocation42_spill] sm:$0xff] %v7048_v35  ;;  %v2924_v36 = vrot.slane %v2916_v7, %v6788_v11  ;;  %v2931_v24 = vrot.slane %v2917_v17, %v6788_v11  ;;  %v2934_v32 = vcombine.low %v7051_v61, %v7044_v54 }
  0x3d   : > { %11955 = vst [vmem:[#allocation43_spill] sm:$0xff] %v7051_v61  ;;  %v611_v48 = vrot.slane %v6333_v55, %v6778_v8  ;;  %v2965_v0 = vrot.slane %v2951_v12, %v6788_v11  ;;  %v2941_v56 = vrot.slane %v2933_v37, %v6788_v11  ;;  %v564_v49 = vcombine.high %v562_v19, %v562_v19 }
  0x3e   : > { %v7073_v60 = vrot.slane %v562_v19, %v6778_v8  ;;  %v7075_v30 = vcombine.low %v2924_v36, %v2931_v24  ;;  %v2948_v22 = vrot.slane %v2934_v32, %v6788_v11  ;;  %v395_v17 = vcombine.high %v6798_v23, %v6798_v23 }
  0x3f   : > { %v7079_v7 = vrot.slane %v611_v48, %v6786_v10  ;;  %v7083_v54 = vcombine.low %v2958_v52, %v2965_v0  ;;  %v592_v55 = vrot.slane %v564_v49, %v6778_v8  ;;  %v425_v19 = vcombine.high %v6814_v31, %v6814_v31 }
  0x40   : > { %v594_v37 = vcombine.high %v7073_v60, %v7073_v60  ;;  %v7090_v24 = vcombine.low %v2941_v56, %v2948_v22  ;;  %v3513_v32 = vrot.slane %v7075_v30, 7  ;;  %v423_v48 = vrot.slane %v395_v17, %v6778_v8 }
  0x41   : > { %11956 = vst [vmem:[#allocation44_spill] sm:$0xff] %v7079_v7  ;;  %v435_v12 = vrot.slane %v6881_v59, %v6778_v8  ;;  %v3517_v23 = vrot.slane %v7083_v54, 7  ;;  %v596_v0 = vcombine.high %v592_v55, %v592_v55  ;;  %v7098_v49 = vrot.slane %v592_v55, %v6786_v10 }
  0x42   : > { %v7101_v52 = vrot.slane %v594_v37, %v6786_v10  ;;  %v3515_v31 = vrot.slane %v7090_v24, 7  ;;  %v11959_v22 = vrot.slane %v6914_v16, 7  ;;  %v427_v56 = vcombine.high %v423_v48, %v423_v48 }
  0x43   : > { %11957 = vst [vmem:[#allocation45_spill] sm:$0xff] %v7098_v49  ;;  %v443_v17 = vcombine.high %v435_v12, %v435_v12  ;;  %3583 = vrot.lane.b32.xlu0 %v3517_v23, %s6714_s25  ;;  %v7111_v59 = vrot.slane %v596_v0, %v6786_v10  ;;  %v451_v37 = vrot.slane %v435_v12, %v6778_v8 }
  0x44   : > { %11958 = vst [vmem:[#allocation46_spill] sm:$0xff] %v7101_v52  ;;  %v7107_v36 = vsel %vm3511_vm0, %v11959_v22, %v3513_v32  ;;  %v3086_v55 = vcombine.low %v7098_v49, %v7101_v52  ;;  %v7117_v61 = vrot.slane %v423_v48, %v6786_v10  ;;  %v3516_v14 = vsel %vm3511_vm0, %v3513_v32, %v3515_v31 }
  0x45   : > { %11960 = vst [vmem:[#allocation47_spill] sm:$0xff] %v7111_v59  ;;  %v3518_v22 = vsel %vm3511_vm0, %v3515_v31, %v3517_v23  ;;  %v465_v46 = vrot.slane %v443_v17, %v6778_v8  ;;  %v7123_v51 = vrot.slane %v425_v19, %v6786_v10  ;;  %3579 = vrot.lane.b32.xlu1 %v3516_v14, %s6714_s25 }
  0x46   : > { %11961 = vst [vmem:[#allocation48_spill] sm:$0xff] %v7117_v61  ;;  %v3087_v0 = vcombine.low %v7111_v59, %v7079_v7  ;;  %v3094_v45 = vrot.slane %v3086_v55, %v6788_v11  ;;  %v473_v12 = vcombine.high %v451_v37, %v451_v37  ;;  %v7130_v48 = vrot.slane %v427_v56, %v6786_v10 }
  0x47   : > { %11962 = vst [vmem:[#allocation49_spill] sm:$0xff] %v7123_v51  ;;  %v475_v26 = vcombine.high %v465_v46, %v465_v46  ;;  %v7133_v32 = vrot.slane %v451_v37, %v6786_v10  ;;  %v7136_v23 = vrot.slane %v465_v46, %v6786_v10  ;;  %v7140_v19 = vrot.slane %v6943_v44, %v6786_v10 }
  0x48   : > { %11963 = vst [vmem:[#allocation50_spill] sm:$0xff] %v7130_v48  ;;  %v3101_v14 = vrot.slane %v3087_v0, %v6788_v11  ;;  %v7144_v31 = vrot.slane %v473_v12, %v6786_v10  ;;  %v2984_v56 = vcombine.low %v7117_v61, %v7123_v51  ;;  %v515_v17 = vcombine.high %v6878_v58, %v6878_v58 }
  0x49   : > { %11964 = vst [vmem:[#allocation51_spill] sm:$0xff] %v7133_v32  ;;  %11965 = vst [vmem:[#allocation52_spill] sm:$0xff] %v7136_v23  ;;  %v7151_v55 = vrot.slane %v475_v26, %v6786_v10  ;;  %v2985_v46 = vcombine.low %v7130_v48, %v7133_v32  ;;  %v545_v44 = vcombine.high %v6902_v6, %v6902_v6  ;;  %3581 = vrot.lane.b32.xlu1 %v3518_v22, %s6714_s25 }
  0x4a   : > { %11966 = vst [vmem:[#allocation53_spill] sm:$0xff] %v7140_v19  ;;  %11967 = vst [vmem:[#allocation54_spill] sm:$0xff] %v7144_v31  ;;  %v555_v37 = vrot.slane %v6966_v2, %v6778_v8  ;;  %v7159_v0 = vcombine.low %v3094_v45, %v3101_v14  ;;  %v2992_v12 = vrot.slane %v2984_v56, %v6788_v11 }
  0x4b   : > { %11968 = vst [vmem:[#allocation55_spill] sm:$0xff] %v7151_v55  ;;  %v3001_v58 = vcombine.low %v7136_v23, %v7144_v31  ;;  %v543_v26 = vrot.slane %v515_v17, %v6778_v8  ;;  %v2999_v7 = vrot.slane %v2985_v46, %v6788_v11  ;;  %v3002_v57 = vcombine.low %v7151_v55, %v7140_v19 }
  0x4c   : > { %11969 = vst [vmem:[#allocation56_spill] sm:$0xff] %v7159_v0  ;;  %v571_v6 = vrot.slane %v555_v37, %v6778_v8  ;;  %v7171_v2 = vrot.slane %v545_v44, %v6786_v10  ;;  %v7174_v45 = vrot.slane %v7159_v0, 7  ;;  %v563_v5 = vcombine.high %v555_v37, %v555_v37 }
  0x4d   : > { %v3009_v22 = vrot.slane %v3001_v58, %v6788_v11  ;;  %v547_v14 = vcombine.high %v543_v26, %v543_v26  ;;  %v7178_v56 = vrot.slane %v543_v26, %v6786_v10  ;;  %v7180_v17 = vcombine.low %v2992_v12, %v2999_v7  ;;  %v209_v26 = vld [vmem:[%s6783_s24 + $0x50] sm:$0xff] }
  0x4e   : > { %11970 = vst [vmem:[#allocation57_spill] sm:$0xff] %v7171_v2  ;;  %11971 = vst [vmem:[#allocation58_spill] sm:$0xff] %v7174_v45  ;;  %v3016_v46 = vrot.slane %v3002_v57, %v6788_v11  ;;  %v7184_v1 = vrot.slane %v571_v6, %v6786_v10  ;;  %3603 = vrot.lane.b32.xlu0 %v7174_v45, %s6714_s25  ;;  %v593_v63 = vcombine.high %v571_v6, %v571_v6 }
  0x4f   : > { %11972 = vst [vmem:[#allocation59_spill] sm:$0xff] %v7178_v56  ;;  %v7189_v44 = vrot.slane %v547_v14, %v6786_v10  ;;  %v3052_v58 = vcombine.low %v7178_v56, %v7171_v2  ;;  %v7195_v7 = vrot.slane %v7073_v60, %v6786_v10  ;;  %v3520_v57 = vrot.slane %v7180_v17, 7 }
  0x50   : > { %11973 = vst [vmem:[#allocation60_spill] sm:$0xff] %v7184_v1  ;;  %v7197_v12 = vcombine.low %v3009_v22, %v3016_v46  ;;  %v585_v37 = vrot.slane %v563_v5, %v6778_v8  ;;  %v635_v52 = vcombine.high %v6810_v29, %v6810_v29  ;;  %v7208_v6 = vrot.slane %v593_v63, %v6786_v10 }
  0x51   : > { %11974 = vst [vmem:[#allocation61_spill] sm:$0xff] %v7189_v44  ;;  %11975 = vst [vmem:[#allocation62_spill] sm:$0xff] %v7195_v7  ;;  %v3053_v14 = vcombine.low %v7189_v44, %v7184_v1  ;;  %v3060_v59 = vrot.slane %v3052_v58, %v6788_v11  ;;  %v665_v60 = vcombine.high %v6860_v50, %v6860_v50 }
  0x52   : > { %11976 = vst [vmem:[#allocation63_spill] sm:$0xff] %v7208_v6  ;;  %v3522_v22 = vrot.slane %v7197_v12, 7  ;;  %v7215_v5 = vsel %vm3511_vm0, %v6925_v21, %v3520_v57  ;;  %v595_v46 = vcombine.high %v585_v37, %v585_v37  ;;  %v7218_v29 = vrot.slane %v585_v37, %v6786_v10  ;;  %3577 = vrot.lane.b32.xlu0 %v7107_v36, %s6714_s25 }
  0x53   : > { %11977 = vst [vmem:[#allocation64_spill] sm:$0xff] %v7215_v5  ;;  %v3067_v58 = vrot.slane %v3053_v14, %v6788_v11  ;;  %v663_v63 = vrot.slane %v635_v52, %v6778_v8  ;;  %v668_v49 = vcombine.high %v209_v26, %v209_v26  ;;  %v675_v50 = vrot.slane %v209_v26, %v6778_v8 }
  0x54   : > { %11978 = vst [vmem:[#allocation65_spill] sm:$0xff] %v7218_v29  ;;  %v7226_v62 = vsel %vm3511_vm0, %v3520_v57, %v3522_v22  ;;  %v7230_v21 = vsel %vm3511_vm0, %v3522_v22, %v7048_v35  ;;  %v7233_v37 = vrot.slane %v595_v46, %v6786_v10  ;;  %v3069_v36 = vcombine.low %v7218_v29, %v7208_v6  ;;  %v7265_v6 = vld.sshfl [vmem:[%s6783_s24 + $0x58] sm:$0x11 pattern:$0x75316420] }
  0x55   : > { %11979 = vst [vmem:[#allocation66_spill] sm:$0xff] %v7226_v62  ;;  %11980 = vst [vmem:[#allocation67_spill] sm:$0xff] %v7230_v21  ;;  %3589 = vrot.lane.b32.xlu1 %v7226_v62, %s6714_s25  ;;  %v7239_v52 = vcombine.low %v3060_v59, %v3067_v58  ;;  %v667_v14 = vcombine.high %v663_v63, %v663_v63  ;;  %v682_v57 = vrot.slane %v668_v49, %v6778_v8 }
  0x56   : > { %11981 = vst [vmem:[#allocation68_spill] sm:$0xff] %v7233_v37  ;;  %v683_v26 = vcombine.high %v675_v50, %v675_v50  ;;  %v3070_v22 = vcombine.low %v7233_v37, %v7195_v7  ;;  %v3077_v35 = vrot.slane %v3069_v36, %v6788_v11  ;;  %v691_v46 = vrot.slane %v675_v50, %v6778_v8 }
  0x57   : > { %v7247_v38 = vrot.slane %v663_v63, %v6786_v10  ;;  %3587 = vrot.lane.b32.xlu0 %v7215_v5, %s6714_s25  ;;  %v3527_v59 = vrot.slane %v7239_v52, 7  ;;  %v698_v58 = vrot.slane %v682_v57, %v6778_v8  ;;  %v7255_v62 = vrot.slane %v665_v60, %v6786_v10 }
  0x58   : > { %v705_v49 = vrot.slane %v683_v26, %v6778_v8  ;;  %v3084_v7 = vrot.slane %v3070_v22, %v6788_v11  ;;  %v713_v36 = vcombine.high %v691_v46, %v691_v46  ;;  %v7259_v50 = vrot.slane %v667_v14, %v6786_v10 }
  0x59   : > { %11982 = vst [vmem:[#allocation69_spill] sm:$0xff] %v7247_v38  ;;  %11983 = vst [vmem:[#allocation70_spill] sm:$0xff] %v7255_v62  ;;  %v7262_v63 = vrot.slane %v691_v46, %v6786_v10  ;;  %v7269_v5 = vsel %vm3511_vm0, %v7007_v43, %v3527_v59  ;;  %v7275_v60 = vrot.slane %v698_v58, %v6786_v10 }
  0x5a   : > { %11984 = vst [vmem:[#allocation71_spill] sm:$0xff] %v7259_v50  ;;  %11986 = vst [vmem:[#allocation73_spill] sm:$0xff] %v7269_v5  ;;  %v715_v37 = vcombine.high %v705_v49, %v705_v49  ;;  %v7272_v26 = vrot.slane %v705_v49, %v6786_v10  ;;  %3597 = vrot.lane.b32.xlu1 %v7269_v5, %s6714_s25  ;;  %v7279_v14 = vcombine.low %v3077_v35, %v3084_v7 }
  0x5b   : > { %11985 = vst [vmem:[#allocation72_spill] sm:$0xff] %v7262_v63  ;;  %11988 = vst [vmem:[#allocation75_spill] sm:$0xff] %v7275_v60  ;;  %v7282_v22 = vrot.slane %v713_v36, %v6786_v10  ;;  %v3120_v46 = vcombine.low %v7247_v38, %v7255_v62  ;;  %v3121_v43 = vcombine.low %v7259_v50, %v7262_v63  ;;  %3591 = vrot.lane.b32.xlu0 %v7230_v21, %s6714_s25  ;;  %v211_v50 = vld [vmem:[%s6783_s24 + $0x60] sm:$0xff] }
  0x5c   : > { %11987 = vst [vmem:[#allocation74_spill] sm:$0xff] %v7272_v26  ;;  %v7291_v49 = vrot.slane %v715_v37, %v6786_v10  ;;  %v684_v1 = vcombine.high %v682_v57, %v682_v57  ;;  %v714_v35 = vcombine.high %v698_v58, %v698_v58  ;;  %v731_v7 = vrot.slane %v7265_v6, %v6778_v8 }
  0x5d   : > { %11989 = vst [vmem:[#allocation76_spill] sm:$0xff] %v7282_v22  ;;  %v3529_v36 = vrot.slane %v7279_v14, 7  ;;  %v3128_v5 = vrot.slane %v3120_v46, %v6788_v11  ;;  %v3135_v62 = vrot.slane %v3121_v43, %v6788_v11  ;;  %v3137_v63 = vcombine.low %v7272_v26, %v7282_v22 }
  0x5e   : > { %11990 = vst [vmem:[#allocation77_spill] sm:$0xff] %v7291_v49  ;;  %v3138_v21 = vcombine.low %v7291_v49, %v7275_v60  ;;  %v712_v37 = vrot.slane %v684_v1, %v6778_v8  ;;  %v7304_v57 = vrot.slane %v714_v35, %v6786_v10  ;;  %v7307_v58 = vrot.slane %v731_v7, %v6786_v10  ;;  %v212_v49 = vld [vmem:[%s6783_s24 + $0x68] sm:$0xff] }
  0x5f   : > { %v7312_v46 = vsel %vm3511_vm0, %v3529_v36, %v7174_v45  ;;  %v7315_v43 = vsel %vm3511_vm0, %v3527_v59, %v3529_v36  ;;  %v7317_v22 = vcombine.low %v3128_v5, %v3135_v62  ;;  %v3145_v60 = vrot.slane %v3137_v63, %v6788_v11 }
  0x60   : > { %11991 = vst [vmem:[#allocation78_spill] sm:$0xff] %v7304_v57  ;;  %11992 = vst [vmem:[#allocation79_spill] sm:$0xff] %v7307_v58  ;;  %3601 = vrot.lane.b32.xlu1 %v7312_v46, %s6714_s25  ;;  %3599 = vrot.lane.b32.xlu0 %v7315_v43, %s6714_s25  ;;  %v3152_v1 = vrot.slane %v3138_v21, %v6788_v11  ;;  %v716_v35 = vcombine.high %v712_v37, %v712_v37 }
  0x61   : > { %11993 = vst [vmem:[#allocation80_spill] sm:$0xff] %v7312_v46  ;;  %11994 = vst [vmem:[#allocation81_spill] sm:$0xff] %v7315_v43  ;;  %v7327_v7 = vrot.slane %v712_v37, %v6786_v10  ;;  %v3534_v59 = vrot.slane %v7317_v22, 7  ;;  %v739_v36 = vcombine.high %v211_v50, %v211_v50  ;;  %v746_v62 = vrot.slane %v211_v50, %v6778_v8 }
  0x62   : > { %11995 = vst [vmem:[#allocation82_spill] sm:$0xff] %v7317_v22  ;;  %v795_v5 = vrot.slane %v212_v49, %v6778_v8  ;;  %v7332_v63 = vcombine.low %v3145_v60, %v3152_v1  ;;  %v7335_v45 = vrot.slane %v716_v35, %v6786_v10  ;;  %v788_v21 = vcombine.high %v212_v49, %v212_v49 }
  0x63   : > { %11996 = vst [vmem:[#allocation83_spill] sm:$0xff] %v7327_v7  ;;  %v3154_v46 = vcombine.low %v7327_v7, %v7304_v57  ;;  %v7341_v37 = vsel %vm3511_vm0, %v6969_v4, %v3534_v59  ;;  %v753_v43 = vrot.slane %v739_v36, %v6778_v8  ;;  %v754_v26 = vcombine.high %v746_v62, %v746_v62 }
  0x64   : > { %11997 = vst [vmem:[#allocation84_spill] sm:$0xff] %v7332_v63  ;;  %11998 = vst [vmem:[#allocation85_spill] sm:$0xff] %v7335_v45  ;;  %v7345_v50 = vrot.slane %v746_v62, %v6778_v8  ;;  %v3536_v60 = vrot.slane %v7332_v63, 7  ;;  %3607 = vrot.lane.b32.xlu0 %v7341_v37, %s6714_s25  ;;  %v3155_v1 = vcombine.low %v7335_v45, %v7307_v58 }
  0x65   : > { %11999 = vst [vmem:[#allocation86_spill] sm:$0xff] %v7341_v37  ;;  %v3162_v49 = vrot.slane %v3154_v46, %v6788_v11  ;;  %v811_v35 = vrot.slane %v795_v5, %v6778_v8  ;;  %v755_v4 = vcombine.high %v753_v43, %v753_v43  ;;  %v769_v57 = vrot.slane %v753_v43, %v6778_v8 }
  0x66   : > { %12000 = vst [vmem:[#allocation87_spill] sm:$0xff] %v7345_v50  ;;  %v776_v36 = vrot.slane %v754_v26, %v6778_v8  ;;  %v784_v62 = vcombine.high %v7345_v50, %v7345_v50  ;;  %v7359_v7 = vsel %vm3511_vm0, %v3534_v59, %v3536_v60  ;;  %v3169_v37 = vrot.slane %v3155_v1, %v6788_v11 }
  0x67   : > { %12001 = vst [vmem:[#allocation88_spill] sm:$0xff] %v7359_v7  ;;  %v7363_v38 = vrot.slane %v811_v35, %v6786_v10  ;;  %v802_v46 = vrot.slane %v788_v21, %v6778_v8  ;;  %3609 = vrot.lane.b32.xlu1 %v7359_v7, %s6714_s25  ;;  %v783_v43 = vrot.slane %v755_v4, %v6778_v8 }
  0x68   : > { %v785_v58 = vcombine.high %v769_v57, %v769_v57  ;;  %v786_v26 = vcombine.high %v776_v36, %v776_v36  ;;  %v7370_v45 = vrot.slane %v776_v36, %v6786_v10  ;;  %v7372_v59 = vcombine.low %v3162_v49, %v3169_v37 }
  0x69   : > { %12002 = vst [vmem:[#allocation89_spill] sm:$0xff] %v7363_v38  ;;  %v7375_v1 = vrot.slane %v784_v62, %v6786_v10  ;;  %v7378_v50 = vrot.slane %v769_v57, %v6786_v10  ;;  %v803_v21 = vcombine.high %v795_v5, %v795_v5  ;;  %v787_v29 = vcombine.high %v783_v43, %v783_v43 }
  0x6a   : > { %12003 = vst [vmem:[#allocation90_spill] sm:$0xff] %v7370_v45  ;;  %12004 = vst [vmem:[#allocation91_spill] sm:$0xff] %v7372_v59  ;;  %v7381_v7 = vrot.slane %v786_v26, %v6786_v10  ;;  %v7384_v4 = vrot.slane %v783_v43, %v6786_v10  ;;  %v7387_v36 = vrot.slane %v785_v58, %v6786_v10  ;;  %v7390_v37 = vrot.slane %v7372_v59, 7 }
  0x6b   : > { %12005 = vst [vmem:[#allocation92_spill] sm:$0xff] %v7375_v1  ;;  %12006 = vst [vmem:[#allocation93_spill] sm:$0xff] %v7378_v50  ;;  %v3171_v49 = vcombine.low %v7370_v45, %v7375_v1  ;;  %v804_v62 = vcombine.high %v802_v46, %v802_v46  ;;  %v818_v57 = vrot.slane %v802_v46, %v6778_v8  ;;  %v7403_v58 = vld.sshfl [vmem:[%s6783_s24 + $0x70] sm:$0x11 pattern:$0x75316420] }
  0x6c   : > { %12007 = vst [vmem:[#allocation94_spill] sm:$0xff] %v7381_v7  ;;  %12008 = vst [vmem:[#allocation95_spill] sm:$0xff] %v7384_v4  ;;  %v7396_v5 = vrot.slane %v787_v29, %v6786_v10  ;;  %v3172_v26 = vcombine.low %v7381_v7, %v7378_v50  ;;  %v3188_v43 = vcombine.low %v7384_v4, %v7387_v36  ;;  %3613 = vrot.lane.b32.xlu1 %v7390_v37, %s6714_s25 }
  0x6d   : > { %12009 = vst [vmem:[#allocation96_spill] sm:$0xff] %v7387_v36  ;;  %12010 = vst [vmem:[#allocation97_spill] sm:$0xff] %v7390_v37  ;;  %v825_v2 = vrot.slane %v803_v21, %v6778_v8  ;;  %v7410_v1 = vsel %vm3511_vm0, %v3536_v60, %v7390_v37  ;;  %v3179_v29 = vrot.slane %v3171_v49, %v6788_v11 }
  0x6e   : > { %12011 = vst [vmem:[#allocation98_spill] sm:$0xff] %v7396_v5  ;;  %12012 = vst [vmem:[#allocation99_spill] sm:$0xff] %v7410_v1  ;;  %v832_v46 = vrot.slane %v804_v62, %v6778_v8  ;;  %v833_v50 = vcombine.high %v811_v35, %v811_v35  ;;  %3611 = vrot.lane.b32.xlu0 %v7410_v1, %s6714_s25  ;;  %v3186_v36 = vrot.slane %v3172_v26, %v6788_v11 }
  0x6f   : > { %v3189_v21 = vcombine.low %v7396_v5, %v7363_v38  ;;  %v3196_v4 = vrot.slane %v3188_v43, %v6788_v11  ;;  %v834_v7 = vcombine.high %v818_v57, %v818_v57  ;;  %v835_v45 = vcombine.high %v825_v2, %v825_v2  ;;  %v214_v43 = vld [vmem:[%s6783_s24 + $0x78] sm:$0xff] }
  0x70   : > { %v836_v60 = vcombine.high %v832_v46, %v832_v46  ;;  %v851_v49 = vrot.slane %v7403_v58, %v6778_v8  ;;  %v7423_v37 = vrot.slane %v825_v2, %v6786_v10  ;;  %v7425_v35 = vcombine.low %v3179_v29, %v3186_v36 }
  0x71   : > { %v3203_v62 = vrot.slane %v3189_v21, %v6788_v11  ;;  %v7429_v26 = vrot.slane %v833_v50, %v6786_v10  ;;  %v7432_v1 = vrot.slane %v818_v57, %v6786_v10  ;;  %v7436_v38 = vrot.slane %v835_v45, %v6786_v10 }
  0x72   : > { %12013 = vst [vmem:[#allocation100_spill] sm:$0xff] %v7423_v37  ;;  %12014 = vst [vmem:[#allocation101_spill] sm:$0xff] %v7425_v35  ;;  %v7439_v5 = vrot.slane %v832_v46, %v6786_v10  ;;  %v7442_v2 = vrot.slane %v834_v7, %v6786_v10  ;;  %v7445_v36 = vrot.slane %v836_v60, %v6786_v10  ;;  %v7450_v50 = vrot.slane %v7425_v35, 7 }
  0x73   : > { %12015 = vst [vmem:[#allocation102_spill] sm:$0xff] %v7429_v26  ;;  %12016 = vst [vmem:[#allocation103_spill] sm:$0xff] %v7432_v1  ;;  %v7447_v29 = vcombine.low %v3196_v4, %v3203_v62  ;;  %v7453_v57 = vrot.slane %v851_v49, %v6786_v10  ;;  %v3205_v45 = vcombine.low %v7423_v37, %v7429_v26  ;;  %v215_v4 = vld [vmem:[%s6783_s24 + $0x80] sm:$0xff] }
  0x74   : > { %12017 = vst [vmem:[#allocation104_spill] sm:$0xff] %v7436_v38  ;;  %12018 = vst [vmem:[#allocation105_spill] sm:$0xff] %v7439_v5  ;;  %v3206_v46 = vcombine.low %v7436_v38, %v7432_v1  ;;  %v3222_v7 = vcombine.low %v7439_v5, %v7442_v2  ;;  %v859_v21 = vcombine.high %v214_v43, %v214_v43  ;;  %3615 = vrot.lane.b32.xlu0 %v7450_v50, %s6714_s25 }
  0x75   : > { %12019 = vst [vmem:[#allocation106_spill] sm:$0xff] %v7442_v2  ;;  %12020 = vst [vmem:[#allocation107_spill] sm:$0xff] %v7445_v36  ;;  %v866_v60 = vrot.slane %v214_v43, %v6778_v8  ;;  %v3541_v62 = vrot.slane %v7447_v29, 7  ;;  %v3213_v49 = vrot.slane %v3205_v45, %v6788_v11  ;;  %v3223_v26 = vcombine.low %v7445_v36, %v7453_v57 }
  0x76   : > { %12021 = vst [vmem:[#allocation108_spill] sm:$0xff] %v7447_v29  ;;  %12022 = vst [vmem:[#allocation109_spill] sm:$0xff] %v7450_v50  ;;  %v908_v37 = vcombine.high %v215_v4, %v215_v4  ;;  %v3220_v1 = vrot.slane %v3206_v46, %v6788_v11  ;;  %v3230_v38 = vrot.slane %v3222_v7, %v6788_v11 }
  0x77   : > { %12023 = vst [vmem:[#allocation110_spill] sm:$0xff] %v7453_v57  ;;  %v873_v2 = vrot.slane %v859_v21, %v6778_v8  ;;  %v874_v5 = vcombine.high %v866_v60, %v866_v60  ;;  %v7474_v43 = vsel %vm3511_vm0, %v7450_v50, %v3541_v62  ;;  %v3237_v44 = vrot.slane %v3223_v26, %v6788_v11 }
  0x78   : > { %12024 = vst [vmem:[#allocation111_spill] sm:$0xff] %v7474_v43  ;;  %v7478_v18 = vrot.slane %v866_v60, %v6778_v8  ;;  %v915_v45 = vrot.slane %v215_v4, %v6778_v8  ;;  %3617 = vrot.lane.b32.xlu1 %v7474_v43, %s6714_s25  ;;  %v7483_v46 = vcombine.low %v3213_v49, %v3220_v1 }
  0x79   : > { %v889_v7 = vrot.slane %v873_v2, %v6778_v8  ;;  %v896_v21 = vrot.slane %v874_v5, %v6778_v8  ;;  %v875_v57 = vcombine.high %v873_v2, %v873_v2  ;;  %v7487_v36 = vcombine.low %v3230_v38, %v3237_v44 }
  0x7a   : > { %12025 = vst [vmem:[#allocation112_spill] sm:$0xff] %v7478_v18  ;;  %12026 = vst [vmem:[#allocation113_spill] sm:$0xff] %v7483_v46  ;;  %v904_v26 = vcombine.high %v7478_v18, %v7478_v18  ;;  %v922_v60 = vrot.slane %v908_v37, %v6778_v8  ;;  %v923_v50 = vcombine.high %v915_v45, %v915_v45  ;;  %v3543_v4 = vrot.slane %v7483_v46, 7 }
  0x7b   : > { %12027 = vst [vmem:[#allocation114_spill] sm:$0xff] %v7487_v36  ;;  %v906_v56 = vcombine.high %v896_v21, %v896_v21  ;;  %v7494_v43 = vrot.slane %v896_v21, %v6786_v10  ;;  %v7497_v1 = vrot.slane %v889_v7, %v6786_v10  ;;  %v7500_v5 = vrot.slane %v7487_v36, 7 }
  0x7c   : > { %v7503_v38 = vrot.slane %v904_v26, %v6786_v10  ;;  %v903_v44 = vrot.slane %v875_v57, %v6778_v8  ;;  %v905_v2 = vcombine.high %v889_v7, %v889_v7  ;;  %v7507_v37 = vsel %vm3511_vm0, %v3541_v62, %v3543_v4 }
  0x7d   : > { %12028 = vst [vmem:[#allocation115_spill] sm:$0xff] %v7494_v43  ;;  %12029 = vst [vmem:[#allocation116_spill] sm:$0xff] %v7497_v1  ;;  %v7510_v49 = vrot.slane %v906_v56, %v6786_v10  ;;  %v931_v21 = vrot.slane %v915_v45, %v6778_v8  ;;  %v938_v18 = vrot.slane %v922_v60, %v6778_v8  ;;  %3619 = vrot.lane.b32.xlu0 %v7507_v37, %s6714_s25 }
  0x7e   : > { %12030 = vst [vmem:[#allocation117_spill] sm:$0xff] %v7500_v5  ;;  %12031 = vst [vmem:[#allocation118_spill] sm:$0xff] %v7503_v38  ;;  %v7516_v28 = vsel %vm3511_vm0, %v3543_v4, %v7500_v5  ;;  %v3239_v57 = vcombine.low %v7494_v43, %v7503_v38  ;;  %v907_v62 = vcombine.high %v903_v44, %v903_v44 }
  0x7f   : > { %12032 = vst [vmem:[#allocation119_spill] sm:$0xff] %v7507_v37  ;;  %12033 = vst [vmem:[#allocation120_spill] sm:$0xff] %v7510_v49  ;;  %v945_v7 = vrot.slane %v923_v50, %v6778_v8  ;;  %3621 = vrot.lane.b32.xlu1 %v7516_v28, %s6714_s25  ;;  %v3240_v56 = vcombine.low %v7510_v49, %v7497_v1  ;;  %v953_v45 = vcombine.high %v931_v21, %v931_v21 }
  0x80   : > { %12034 = vst [vmem:[#allocation121_spill] sm:$0xff] %v7516_v28  ;;  %v7528_v26 = vrot.slane %v903_v44, %v6786_v10  ;;  %v7531_v4 = vrot.slane %v905_v2, %v6786_v10  ;;  %v3247_v37 = vrot.slane %v3239_v57, %v6788_v11  ;;  %v7535_v38 = vrot.slane %v907_v62, %v6786_v10  ;;  %v7541_v28 = vld.sshfl [vmem:[%s6783_s24 + $0x88] sm:$0x11 pattern:$0x75316420] }
  0x81   : > { %v955_v34 = vcombine.high %v945_v7, %v945_v7  ;;  %v7538_v50 = vrot.slane %v931_v21, %v6786_v10  ;;  %v3254_v1 = vrot.slane %v3240_v56, %v6788_v11  ;;  %v7545_v49 = vrot.slane %v945_v7, %v6786_v10  ;;  %3623 = vrot.lane.b32.xlu0 %v7500_v5, %s6714_s25 }
  0x82   : > { %12035 = vst [vmem:[#allocation122_spill] sm:$0xff] %v7528_v26  ;;  %12036 = vst [vmem:[#allocation123_spill] sm:$0xff] %v7531_v4  ;;  %v7548_v44 = vrot.slane %v953_v45, %v6786_v10  ;;  %v7551_v2 = vrot.slane %v938_v18, %v6786_v10  ;;  %v3256_v57 = vcombine.low %v7528_v26, %v7531_v4 }
  0x83   : > { %12037 = vst [vmem:[#allocation124_spill] sm:$0xff] %v7535_v38  ;;  %12038 = vst [vmem:[#allocation125_spill] sm:$0xff] %v7538_v50  ;;  %v7556_v21 = vrot.slane %v955_v34, %v6786_v10  ;;  %v3257_v62 = vcombine.low %v7535_v38, %v7538_v50  ;;  %v924_v7 = vcombine.high %v922_v60, %v922_v60  ;;  %v217_v50 = vld [vmem:[%s6783_s24 + $0x90] sm:$0xff]  ;;  %v218_v60 = vld [vmem:[%s6783_s24 + $0x98] sm:$0xff] }
  0x84   : > { %12039 = vst [vmem:[#allocation126_spill] sm:$0xff] %v7545_v49  ;;  %12040 = vst [vmem:[#allocation127_spill] sm:$0xff] %v7548_v44  ;;  %v7562_v56 = vcombine.low %v3247_v37, %v3254_v1  ;;  %v3273_v45 = vcombine.low %v7545_v49, %v7548_v44  ;;  %v954_v43 = vcombine.high %v938_v18, %v938_v18 }
  0x85   : > { %12041 = vst [vmem:[#allocation128_spill] sm:$0xff] %v7551_v2  ;;  %12042 = vst [vmem:[#allocation129_spill] sm:$0xff] %v7556_v21  ;;  %v971_v39 = vrot.slane %v7541_v28, %v6778_v8  ;;  %v3264_v5 = vrot.slane %v3256_v57, %v6788_v11  ;;  %v3271_v34 = vrot.slane %v3257_v62, %v6788_v11 }
  0x86   : > { %v3274_v4 = vcombine.low %v7556_v21, %v7551_v2  ;;  %v952_v26 = vrot.slane %v924_v7, %v6778_v8  ;;  %v7576_v1 = vrot.slane %v7562_v56, 7  ;;  %v3281_v37 = vrot.slane %v3273_v45, %v6788_v11 }
  0x87   : > { %v7580_v18 = vrot.slane %v954_v43, %v6786_v10  ;;  %v7583_v44 = vrot.slane %v971_v39, %v6786_v10  ;;  %v7585_v57 = vcombine.low %v3264_v5, %v3271_v34  ;;  %v979_v21 = vcombine.high %v217_v50, %v217_v50 }
  0x88   : > { %12043 = vst [vmem:[#allocation130_spill] sm:$0xff] %v7576_v1  ;;  %v3288_v62 = vrot.slane %v3274_v4, %v6788_v11  ;;  %v956_v2 = vcombine.high %v952_v26, %v952_v26  ;;  %v7589_v7 = vrot.slane %v952_v26, %v6786_v10  ;;  %3625 = vrot.lane.b32.xlu1 %v7576_v1, %s6714_s25 }
  0x89   : > { %12044 = vst [vmem:[#allocation131_spill] sm:$0xff] %v7580_v18  ;;  %12045 = vst [vmem:[#allocation132_spill] sm:$0xff] %v7583_v44  ;;  %v986_v45 = vrot.slane %v217_v50, %v6778_v8  ;;  %v1035_v43 = vrot.slane %v218_v60, %v6778_v8  ;;  %v1028_v49 = vcombine.high %v218_v60, %v218_v60  ;;  %v3548_v39 = vrot.slane %v7585_v57, 7 }
  0x8a   : > { %12046 = vst [vmem:[#allocation133_spill] sm:$0xff] %v7589_v7  ;;  %v7595_v38 = vcombine.low %v3281_v37, %v3288_v62  ;;  %v7599_v5 = vrot.slane %v956_v2, %v6786_v10  ;;  %v3290_v26 = vcombine.low %v7589_v7, %v7580_v18  ;;  %v993_v4 = vrot.slane %v979_v21, %v6778_v8 }
  0x8b   : > { %v994_v34 = vcombine.high %v986_v45, %v986_v45  ;;  %v7605_v15 = vrot.slane %v986_v45, %v6778_v8  ;;  %v1051_v50 = vrot.slane %v1035_v43, %v6778_v8  ;;  %v7611_v37 = vsel %vm3511_vm0, %v7576_v1, %v3548_v39 }
  0x8c   : > { %12047 = vst [vmem:[#allocation134_spill] sm:$0xff] %v7599_v5  ;;  %v3550_v60 = vrot.slane %v7595_v38, 7  ;;  %12049 = vst [vmem:[#allocation136_spill] sm:$0xff] %v7611_v37  ;;  %v3291_v2 = vcombine.low %v7599_v5, %v7583_v44  ;;  %v3298_v62 = vrot.slane %v3290_v26, %v6788_v11  ;;  %3627 = vrot.lane.b32.xlu0 %v7611_v37, %s6714_s25 }
  0x8d   : > { %12048 = vst [vmem:[#allocation135_spill] sm:$0xff] %v7605_v15  ;;  %v995_v21 = vcombine.high %v993_v4, %v993_v4  ;;  %v1009_v45 = vrot.slane %v993_v4, %v6778_v8  ;;  %v1016_v18 = vrot.slane %v994_v34, %v6778_v8  ;;  %v1024_v7 = vcombine.high %v7605_v15, %v7605_v15 }
  0x8e   : > { %v7623_v20 = vsel %vm3511_vm0, %v3548_v39, %v3550_v60  ;;  %v3305_v1 = vrot.slane %v3291_v2, %v6788_v11  ;;  %v7627_v44 = vrot.slane %v1051_v50, %v6786_v10  ;;  %v1042_v26 = vrot.slane %v1028_v49, %v6778_v8 }
  0x8f   : > { %12050 = vst [vmem:[#allocation137_spill] sm:$0xff] %v7623_v20  ;;  %3629 = vrot.lane.b32.xlu1 %v7623_v20, %s6714_s25  ;;  %v1023_v4 = vrot.slane %v995_v21, %v6778_v8  ;;  %v1025_v37 = vcombine.high %v1009_v45, %v1009_v45  ;;  %v1026_v34 = vcombine.high %v1016_v18, %v1016_v18 }
  0x90   : > { %12051 = vst [vmem:[#allocation138_spill] sm:$0xff] %v7627_v44  ;;  %v7634_v5 = vrot.slane %v1016_v18, %v6786_v10  ;;  %v7636_v39 = vcombine.low %v3298_v62, %v3305_v1  ;;  %v7639_v2 = vrot.slane %v1024_v7, %v6786_v10  ;;  %v7642_v15 = vrot.slane %v1009_v45, %v6786_v10 }
  0x91   : > { %v1043_v49 = vcombine.high %v1035_v43, %v1035_v43  ;;  %v1027_v19 = vcombine.high %v1023_v4, %v1023_v4  ;;  %v7645_v20 = vrot.slane %v1026_v34, %v6786_v10  ;;  %v7648_v21 = vrot.slane %v1023_v4, %v6786_v10 }
  0x92   : > { %12052 = vst [vmem:[#allocation139_spill] sm:$0xff] %v7634_v5  ;;  %12053 = vst [vmem:[#allocation140_spill] sm:$0xff] %v7639_v2  ;;  %v7651_v18 = vrot.slane %v1025_v37, %v6786_v10  ;;  %v7654_v1 = vrot.slane %v7636_v39, 7  ;;  %v3307_v7 = vcombine.low %v7634_v5, %v7639_v2  ;;  %v1044_v62 = vcombine.high %v1042_v26, %v1042_v26 }
  0x93   : > { %12054 = vst [vmem:[#allocation141_spill] sm:$0xff] %v7642_v15  ;;  %12055 = vst [vmem:[#allocation142_spill] sm:$0xff] %v7645_v20  ;;  %v1058_v45 = vrot.slane %v1042_v26, %v6778_v8  ;;  %v7660_v43 = vrot.slane %v1027_v19, %v6786_v10  ;;  %v3308_v34 = vcombine.low %v7645_v20, %v7642_v15  ;;  %v7667_v37 = vld.sshfl [vmem:[%s6783_s24 + $0xa0] sm:$0x11 pattern:$0x75316420] }
  0x94   : > { %12056 = vst [vmem:[#allocation143_spill] sm:$0xff] %v7648_v21  ;;  %12057 = vst [vmem:[#allocation144_spill] sm:$0xff] %v7651_v18  ;;  %v3324_v4 = vcombine.low %v7648_v21, %v7651_v18  ;;  %v1065_v13 = vrot.slane %v1043_v49, %v6778_v8  ;;  %3633 = vrot.lane.b32.xlu1 %v7654_v1, %s6714_s25  ;;  %v7674_v2 = vsel %vm3511_vm0, %v3550_v60, %v7654_v1 }
  0x95   : > { %12058 = vst [vmem:[#allocation145_spill] sm:$0xff] %v7654_v1  ;;  %12059 = vst [vmem:[#allocation146_spill] sm:$0xff] %v7660_v43  ;;  %v3315_v19 = vrot.slane %v3307_v7, %v6788_v11  ;;  %v1072_v26 = vrot.slane %v1044_v62, %v6778_v8  ;;  %v1073_v15 = vcombine.high %v1051_v50, %v1051_v50  ;;  %3631 = vrot.lane.b32.xlu0 %v7674_v2, %s6714_s25 }
  0x96   : > { %12060 = vst [vmem:[#allocation147_spill] sm:$0xff] %v7674_v2  ;;  %v3322_v18 = vrot.slane %v3308_v34, %v6788_v11  ;;  %v3325_v49 = vcombine.low %v7660_v43, %v7627_v44  ;;  %v3332_v21 = vrot.slane %v3324_v4, %v6788_v11  ;;  %v1074_v20 = vcombine.high %v1058_v45, %v1058_v45  ;;  %v220_v4 = vld [vmem:[%s6783_s24 + $0xa8] sm:$0xff] }
  0x97   : > { %v1075_v5 = vcombine.high %v1065_v13, %v1065_v13  ;;  %v1076_v60 = vcombine.high %v1072_v26, %v1072_v26  ;;  %v1091_v7 = vrot.slane %v7667_v37, %v6778_v8  ;;  %v7687_v1 = vrot.slane %v1065_v13, %v6786_v10 }
  0x98   : > { %v7689_v50 = vcombine.low %v3315_v19, %v3322_v18  ;;  %v3339_v62 = vrot.slane %v3325_v49, %v6788_v11  ;;  %v7693_v34 = vrot.slane %v1073_v15, %v6786_v10  ;;  %v7696_v2 = vrot.slane %v1058_v45, %v6786_v10 }
  0x99   : > { %12061 = vst [vmem:[#allocation148_spill] sm:$0xff] %v7687_v1  ;;  %v7700_v44 = vrot.slane %v1075_v5, %v6786_v10  ;;  %v7703_v43 = vrot.slane %v1072_v26, %v6786_v10  ;;  %v7706_v13 = vrot.slane %v1074_v20, %v6786_v10  ;;  %v7709_v18 = vrot.slane %v1076_v60, %v6786_v10 }
  0x9a   : > { %12062 = vst [vmem:[#allocation149_spill] sm:$0xff] %v7693_v34  ;;  %12063 = vst [vmem:[#allocation150_spill] sm:$0xff] %v7696_v2  ;;  %v7711_v19 = vcombine.low %v3332_v21, %v3339_v62  ;;  %v7714_v15 = vrot.slane %v7689_v50, 7  ;;  %v7717_v45 = vrot.slane %v1091_v7, %v6786_v10  ;;  %v3341_v5 = vcombine.low %v7687_v1, %v7693_v34  ;;  %v221_v21 = vld [vmem:[%s6783_s24 + $0xb0] sm:$0xff] }
  0x9b   : > { %12064 = vst [vmem:[#allocation151_spill] sm:$0xff] %v7700_v44  ;;  %12065 = vst [vmem:[#allocation152_spill] sm:$0xff] %v7703_v43  ;;  %v3342_v26 = vcombine.low %v7700_v44, %v7696_v2  ;;  %v3358_v20 = vcombine.low %v7703_v43, %v7706_v13  ;;  %v1099_v49 = vcombine.high %v220_v4, %v220_v4 }
  0x9c   : > { %12066 = vst [vmem:[#allocation153_spill] sm:$0xff] %v7706_v13  ;;  %12067 = vst [vmem:[#allocation154_spill] sm:$0xff] %v7709_v18  ;;  %v1106_v60 = vrot.slane %v220_v4, %v6778_v8  ;;  %v3555_v62 = vrot.slane %v7711_v19, 7  ;;  %3635 = vrot.lane.b32.xlu0 %v7714_v15, %s6714_s25  ;;  %v3349_v7 = vrot.slane %v3341_v5, %v6788_v11 }
  0x9d   : > { %12068 = vst [vmem:[#allocation155_spill] sm:$0xff] %v7714_v15  ;;  %12069 = vst [vmem:[#allocation156_spill] sm:$0xff] %v7717_v45  ;;  %v3359_v34 = vcombine.low %v7709_v18, %v7717_v45  ;;  %v1148_v1 = vcombine.high %v221_v21, %v221_v21  ;;  %v3356_v2 = vrot.slane %v3342_v26, %v6788_v11 }
  0x9e   : > { %v3366_v44 = vrot.slane %v3358_v20, %v6788_v11  ;;  %v1113_v13 = vrot.slane %v1099_v49, %v6778_v8  ;;  %v1114_v43 = vcombine.high %v1106_v60, %v1106_v60  ;;  %v7738_v4 = vsel %vm3511_vm0, %v7714_v15, %v3555_v62 }
  0x9f   : > { %12070 = vst [vmem:[#allocation157_spill] sm:$0xff] %v7738_v4  ;;  %v3373_v31 = vrot.slane %v3359_v34, %v6788_v11  ;;  %v7742_v55 = vrot.slane %v1106_v60, %v6778_v8  ;;  %v1155_v5 = vrot.slane %v221_v21, %v6778_v8  ;;  %3637 = vrot.lane.b32.xlu1 %v7738_v4, %s6714_s25 }
  0xa0   : > { %v7747_v26 = vcombine.low %v3349_v7, %v3356_v2  ;;  %v1129_v20 = vrot.slane %v1113_v13, %v6778_v8  ;;  %v1136_v49 = vrot.slane %v1114_v43, %v6778_v8  ;;  %v1115_v45 = vcombine.high %v1113_v13, %v1113_v13 }
  0xa1   : > { %12071 = vst [vmem:[#allocation158_spill] sm:$0xff] %v7742_v55  ;;  %v7751_v18 = vcombine.low %v3366_v44, %v3373_v31  ;;  %v1144_v34 = vcombine.high %v7742_v55, %v7742_v55  ;;  %v1162_v60 = vrot.slane %v1148_v1, %v6778_v8  ;;  %v1163_v15 = vcombine.high %v1155_v5, %v1155_v5 }
  0xa2   : > { %v3557_v21 = vrot.slane %v7747_v26, 7  ;;  %v1146_v32 = vcombine.high %v1136_v49, %v1136_v49  ;;  %v7758_v4 = vrot.slane %v1136_v49, %v6786_v10  ;;  %v7761_v2 = vrot.slane %v1129_v20, %v6786_v10 }
  0xa3   : > { %12072 = vst [vmem:[#allocation159_spill] sm:$0xff] %v7751_v18  ;;  %v7764_v43 = vrot.slane %v7751_v18, 7  ;;  %v7767_v31 = vrot.slane %v1144_v34, %v6786_v10  ;;  %v1143_v44 = vrot.slane %v1115_v45, %v6778_v8  ;;  %v1145_v13 = vcombine.high %v1129_v20, %v1129_v20 }
  0xa4   : > { %12073 = vst [vmem:[#allocation160_spill] sm:$0xff] %v7758_v4  ;;  %12074 = vst [vmem:[#allocation161_spill] sm:$0xff] %v7761_v2  ;;  %v7771_v1 = vsel %vm3511_vm0, %v3555_v62, %v3557_v21  ;;  %v7774_v7 = vrot.slane %v1146_v32, %v6786_v10  ;;  %v1171_v49 = vrot.slane %v1155_v5, %v6778_v8 }
  0xa5   : > { %12075 = vst [vmem:[#allocation162_spill] sm:$0xff] %v7764_v43  ;;  %12076 = vst [vmem:[#allocation163_spill] sm:$0xff] %v7767_v31  ;;  %v1178_v55 = vrot.slane %v1162_v60, %v6778_v8  ;;  %v7780_v23 = vsel %vm3511_vm0, %v3557_v21, %v7764_v43  ;;  %3639 = vrot.lane.b32.xlu0 %v7771_v1, %s6714_s25  ;;  %v3375_v45 = vcombine.low %v7758_v4, %v7767_v31 }
  0xa6   : > { %12077 = vst [vmem:[#allocation164_spill] sm:$0xff] %v7771_v1  ;;  %12078 = vst [vmem:[#allocation165_spill] sm:$0xff] %v7774_v7  ;;  %v1147_v62 = vcombine.high %v1143_v44, %v1143_v44  ;;  %v1185_v20 = vrot.slane %v1163_v15, %v6778_v8  ;;  %3641 = vrot.lane.b32.xlu1 %v7780_v23, %s6714_s25  ;;  %v3376_v32 = vcombine.low %v7774_v7, %v7761_v2 }
  0xa7   : > { %12079 = vst [vmem:[#allocation166_spill] sm:$0xff] %v7780_v23  ;;  %v1193_v5 = vcombine.high %v1171_v49, %v1171_v49  ;;  %v7792_v34 = vrot.slane %v1143_v44, %v6786_v10  ;;  %v7795_v21 = vrot.slane %v1145_v13, %v6786_v10  ;;  %v3383_v1 = vrot.slane %v3375_v45, %v6788_v11  ;;  %v7805_v23 = vld.sshfl [vmem:[%s6783_s24 + $0xb8] sm:$0x11 pattern:$0x75316420] }
  0xa8   : > { %v1195_v3 = vcombine.high %v1185_v20, %v1185_v20  ;;  %v7799_v4 = vrot.slane %v1147_v62, %v6786_v10  ;;  %v7802_v15 = vrot.slane %v1171_v49, %v6786_v10  ;;  %v3390_v2 = vrot.slane %v3376_v32, %v6788_v11 }
  0xa9   : > { %12080 = vst [vmem:[#allocation167_spill] sm:$0xff] %v7792_v34  ;;  %12081 = vst [vmem:[#allocation168_spill] sm:$0xff] %v7795_v21  ;;  %v7809_v31 = vrot.slane %v1185_v20, %v6786_v10  ;;  %v7812_v44 = vrot.slane %v1193_v5, %v6786_v10  ;;  %v7815_v13 = vrot.slane %v1178_v55, %v6786_v10  ;;  %3643 = vrot.lane.b32.xlu0 %v7764_v43, %s6714_s25 }
  0xaa   : > { %12082 = vst [vmem:[#allocation169_spill] sm:$0xff] %v7799_v4  ;;  %12083 = vst [vmem:[#allocation170_spill] sm:$0xff] %v7802_v15  ;;  %v7820_v49 = vrot.slane %v1195_v3, %v6786_v10  ;;  %v3392_v45 = vcombine.low %v7792_v34, %v7795_v21  ;;  %v3393_v62 = vcombine.low %v7799_v4, %v7802_v15  ;;  %v223_v15 = vld [vmem:[%s6783_s24 + $0xc0] sm:$0xff] }
  0xab   : > { %12084 = vst [vmem:[#allocation171_spill] sm:$0xff] %v7809_v31  ;;  %12085 = vst [vmem:[#allocation172_spill] sm:$0xff] %v7812_v44  ;;  %v1164_v20 = vcombine.high %v1162_v60, %v1162_v60  ;;  %v7826_v32 = vcombine.low %v3383_v1, %v3390_v2  ;;  %v3409_v5 = vcombine.low %v7809_v31, %v7812_v44  ;;  %v224_v60 = vld [vmem:[%s6783_s24 + $0xc8] sm:$0xff] }
  0xac   : > { %12086 = vst [vmem:[#allocation173_spill] sm:$0xff] %v7815_v13  ;;  %12087 = vst [vmem:[#allocation174_spill] sm:$0xff] %v7820_v49  ;;  %v1194_v7 = vcombine.high %v1178_v55, %v1178_v55  ;;  %v1211_v51 = vrot.slane %v7805_v23, %v6778_v8  ;;  %v3400_v43 = vrot.slane %v3392_v45, %v6788_v11 }
  0xad   : > { %12088 = vst [vmem:[#allocation175_spill] sm:$0xff] %v7826_v32  ;;  %v3407_v3 = vrot.slane %v3393_v62, %v6788_v11  ;;  %v3410_v21 = vcombine.low %v7820_v49, %v7815_v13  ;;  %v1192_v34 = vrot.slane %v1164_v20, %v6778_v8  ;;  %v7840_v2 = vrot.slane %v7826_v32, 7 }
  0xae   : > { %v3417_v1 = vrot.slane %v3409_v5, %v6788_v11  ;;  %v7844_v55 = vrot.slane %v1194_v7, %v6786_v10  ;;  %v7847_v44 = vrot.slane %v1211_v51, %v6786_v10  ;;  %v1219_v49 = vcombine.high %v223_v15, %v223_v15 }
  0xaf   : > { %12089 = vst [vmem:[#allocation176_spill] sm:$0xff] %v7840_v2  ;;  %v7849_v45 = vcombine.low %v3400_v43, %v3407_v3  ;;  %v3424_v62 = vrot.slane %v3410_v21, %v6788_v11  ;;  %v1196_v13 = vcombine.high %v1192_v34, %v1192_v34  ;;  %v7853_v20 = vrot.slane %v1192_v34, %v6786_v10 }
  0xb0   : > { %12090 = vst [vmem:[#allocation177_spill] sm:$0xff] %v7844_v55  ;;  %12091 = vst [vmem:[#allocation178_spill] sm:$0xff] %v7847_v44  ;;  %3645 = vrot.lane.b32.xlu1 %v7840_v2, %s6714_s25  ;;  %v1226_v5 = vrot.slane %v223_v15, %v6778_v8  ;;  %v1275_v7 = vrot.slane %v224_v60, %v6778_v8  ;;  %v1268_v31 = vcombine.high %v224_v60, %v224_v60 }
  0xb1   : > { %12092 = vst [vmem:[#allocation179_spill] sm:$0xff] %v7849_v45  ;;  %12093 = vst [vmem:[#allocation180_spill] sm:$0xff] %v7853_v20  ;;  %v7859_v4 = vcombine.low %v3417_v1, %v3424_v62  ;;  %v3562_v51 = vrot.slane %v7849_v45, 7  ;;  %v7863_v43 = vrot.slane %v1196_v13, %v6786_v10  ;;  %v3426_v34 = vcombine.low %v7853_v20, %v7844_v55 }
  0xb2   : > { %v1233_v21 = vrot.slane %v1219_v49, %v6778_v8  ;;  %v1234_v3 = vcombine.high %v1226_v5, %v1226_v5  ;;  %v7869_v48 = vrot.slane %v1226_v5, %v6778_v8  ;;  %v1291_v15 = vrot.slane %v1275_v7, %v6778_v8 }
  0xb3   : > { %12094 = vst [vmem:[#allocation181_spill] sm:$0xff] %v7859_v4  ;;  %12095 = vst [vmem:[#allocation182_spill] sm:$0xff] %v7863_v43  ;;  %v3564_v60 = vrot.slane %v7859_v4, 7  ;;  %v7875_v1 = vsel %vm3511_vm0, %v7840_v2, %v3562_v51  ;;  %v3427_v13 = vcombine.low %v7863_v43, %v7847_v44  ;;  %v3434_v62 = vrot.slane %v3426_v34, %v6788_v11 }
  0xb4   : > { %12096 = vst [vmem:[#allocation183_spill] sm:$0xff] %v7869_v48  ;;  %12097 = vst [vmem:[#allocation184_spill] sm:$0xff] %v7875_v1  ;;  %3647 = vrot.lane.b32.xlu0 %v7875_v1, %s6714_s25  ;;  %v1235_v49 = vcombine.high %v1233_v21, %v1233_v21  ;;  %v1249_v5 = vrot.slane %v1233_v21, %v6778_v8  ;;  %v1256_v55 = vrot.slane %v1234_v3, %v6778_v8 }
  0xb5   : > { %v1264_v20 = vcombine.high %v7869_v48, %v7869_v48  ;;  %v7887_v42 = vsel %vm3511_vm0, %v3562_v51, %v3564_v60  ;;  %v3441_v2 = vrot.slane %v3427_v13, %v6788_v11  ;;  %v7891_v44 = vrot.slane %v1291_v15, %v6786_v10 }
  0xb6   : > { %12098 = vst [vmem:[#allocation185_spill] sm:$0xff] %v7887_v42  ;;  %v1282_v34 = vrot.slane %v1268_v31, %v6778_v8  ;;  %3649 = vrot.lane.b32.xlu1 %v7887_v42, %s6714_s25  ;;  %v1263_v21 = vrot.slane %v1235_v49, %v6778_v8  ;;  %v1265_v1 = vcombine.high %v1249_v5, %v1249_v5 }
  0xb7   : > { %12099 = vst [vmem:[#allocation186_spill] sm:$0xff] %v7891_v44  ;;  %v1266_v3 = vcombine.high %v1256_v55, %v1256_v55  ;;  %v7898_v43 = vrot.slane %v1256_v55, %v6786_v10  ;;  %v7900_v51 = vcombine.low %v3434_v62, %v3441_v2  ;;  %v7903_v13 = vrot.slane %v1264_v20, %v6786_v10 }
  0xb8   : > { %v7906_v48 = vrot.slane %v1249_v5, %v6786_v10  ;;  %v1283_v31 = vcombine.high %v1275_v7, %v1275_v7  ;;  %v1267_v61 = vcombine.high %v1263_v21, %v1263_v21  ;;  %v7912_v49 = vrot.slane %v1263_v21, %v6786_v10 }
  0xb9   : > { %12100 = vst [vmem:[#allocation187_spill] sm:$0xff] %v7898_v43  ;;  %12101 = vst [vmem:[#allocation188_spill] sm:$0xff] %v7900_v51  ;;  %v7909_v42 = vrot.slane %v1266_v3, %v6786_v10  ;;  %v7915_v55 = vrot.slane %v1265_v1, %v6786_v10  ;;  %v7918_v2 = vrot.slane %v7900_v51, 7  ;;  %v3443_v20 = vcombine.low %v7898_v43, %v7903_v13 }
  0xba   : > { %12102 = vst [vmem:[#allocation189_spill] sm:$0xff] %v7903_v13  ;;  %12103 = vst [vmem:[#allocation190_spill] sm:$0xff] %v7906_v48  ;;  %v1284_v62 = vcombine.high %v1282_v34, %v1282_v34  ;;  %v1298_v5 = vrot.slane %v1282_v34, %v6778_v8  ;;  %v7924_v7 = vrot.slane %v1267_v61, %v6786_v10  ;;  %v7931_v1 = vld.sshfl [vmem:[%s6783_s24 + $0xd0] sm:$0x11 pattern:$0x75316420] }
  0xbb   : > { %12104 = vst [vmem:[#allocation191_spill] sm:$0xff] %v7909_v42  ;;  %12105 = vst [vmem:[#allocation192_spill] sm:$0xff] %v7912_v49  ;;  %v3444_v3 = vcombine.low %v7909_v42, %v7906_v48  ;;  %v3460_v21 = vcombine.low %v7912_v49, %v7915_v55  ;;  %v1305_v41 = vrot.slane %v1283_v31, %v6778_v8  ;;  %3653 = vrot.lane.b32.xlu1 %v7918_v2, %s6714_s25 }
  0xbc   : > { %12106 = vst [vmem:[#allocation193_spill] sm:$0xff] %v7915_v55  ;;  %12107 = vst [vmem:[#allocation194_spill] sm:$0xff] %v7918_v2  ;;  %v7938_v13 = vsel %vm3511_vm0, %v3564_v60, %v7918_v2  ;;  %v3451_v61 = vrot.slane %v3443_v20, %v6788_v11  ;;  %v1312_v34 = vrot.slane %v1284_v62, %v6778_v8 }
  0xbd   : > { %12108 = vst [vmem:[#allocation195_spill] sm:$0xff] %v7924_v7  ;;  %12109 = vst [vmem:[#allocation196_spill] sm:$0xff] %v7938_v13  ;;  %v1313_v43 = vcombine.high %v1291_v15, %v1291_v15  ;;  %3651 = vrot.lane.b32.xlu0 %v7938_v13, %s6714_s25  ;;  %v3458_v55 = vrot.slane %v3444_v3, %v6788_v11  ;;  %v3461_v31 = vcombine.low %v7924_v7, %v7891_v44 }
  0xbe   : > { %v3468_v48 = vrot.slane %v3460_v21, %v6788_v11  ;;  %v1314_v49 = vcombine.high %v1298_v5, %v1298_v5  ;;  %v1315_v42 = vcombine.high %v1305_v41, %v1305_v41  ;;  %v1316_v47 = vcombine.high %v1312_v34, %v1312_v34  ;;  %v7962_v21 = vpop.permute.xlu0 %3575 }
  0xbf   : > { %v1331_v60 = vrot.slane %v7931_v1, %v6778_v8  ;;  %v7951_v20 = vrot.slane %v1305_v41, %v6786_v10  ;;  %v7953_v15 = vcombine.low %v3451_v61, %v3458_v55  ;;  %v3475_v62 = vrot.slane %v3461_v31, %v6788_v11  ;;  %12113 = vst [vmem:[#allocation200_spill] sm:$0xff] %v7962_v21  ;;  %v7976_v61 = vpop.permute.xlu1 %3585 }
  0xc0   : > { %v7957_v3 = vrot.slane %v1313_v43, %v6786_v10  ;;  %v7960_v2 = vrot.slane %v1298_v5, %v6786_v10  ;;  %v7965_v13 = vrot.slane %v1315_v42, %v6786_v10  ;;  %v7968_v44 = vrot.slane %v1312_v34, %v6786_v10  ;;  %12115 = vst [vmem:[#allocation202_spill] sm:$0xff] %v7976_v61 }
  0xc1   : > { %12110 = vst [vmem:[#allocation197_spill] sm:$0xff] %v7951_v20  ;;  %12111 = vst [vmem:[#allocation198_spill] sm:$0xff] %v7953_v15  ;;  %v7971_v41 = vrot.slane %v1314_v49, %v6786_v10  ;;  %v7974_v55 = vrot.slane %v1316_v47, %v6786_v10  ;;  %v7978_v43 = vcombine.low %v3468_v48, %v3475_v62  ;;  %v7981_v5 = vrot.slane %v7953_v15, 7 }
  0xc2   : > { %12112 = vst [vmem:[#allocation199_spill] sm:$0xff] %v7957_v3  ;;  %12114 = vst [vmem:[#allocation201_spill] sm:$0xff] %v7965_v13  ;;  %v7984_v31 = vrot.slane %v1331_v60, %v6786_v10  ;;  %v3477_v42 = vcombine.low %v7951_v20, %v7957_v3  ;;  %v3478_v49 = vcombine.low %v7965_v13, %v7960_v2  ;;  %v8005_v13 = vpop.permute.xlu0 %3595 }
  0xc3   : > { %12116 = vst [vmem:[#allocation203_spill] sm:$0xff] %v7978_v43  ;;  %12117 = vst [vmem:[#allocation204_spill] sm:$0xff] %v7981_v5  ;;  %v3494_v47 = vcombine.low %v7968_v44, %v7971_v41  ;;  %v3569_v34 = vrot.slane %v7978_v43, 7  ;;  %3655 = vrot.lane.b32.xlu0 %v7981_v5, %s6714_s25 }
  0xc4   : > { %12118 = vst [vmem:[#allocation205_spill] sm:$0xff] %v7984_v31  ;;  %v3485_v48 = vrot.slane %v3477_v42, %v6788_v11  ;;  %v3495_v60 = vcombine.low %v7974_v55, %v7984_v31  ;;  %v3492_v62 = vrot.slane %v3478_v49, %v6788_v11  ;;  %12120 = vst [vmem:[#allocation207_spill] sm:$0xff] %v8005_v13  ;;  %v8011_v42 = vpop.permute.xlu1 %3605 }
  0xc5   : > { %v3502_v61 = vrot.slane %v3494_v47, %v6788_v11  ;;  %v8002_v21 = vsel %vm3511_vm0, %v7981_v5, %v3569_v34  ;;  %12122 = vst [vmem:[#allocation209_spill] sm:$0xff] %v8011_v42  ;;  %v6669_v47 = vld.sshfl [vmem:[%s6783_s24 + $0x10] sm:$0x11 pattern:$0x75316420] }
  0xc6   : > { %12119 = vst [vmem:[#allocation206_spill] sm:$0xff] %v8002_v21  ;;  %v3509_v3 = vrot.slane %v3495_v60, %v6788_v11  ;;  %3657 = vrot.lane.b32.xlu1 %v8002_v21, %s6714_s25  ;;  %v8009_v20 = vcombine.low %v3485_v48, %v3492_v62  ;;  %v371_v7 = vcombine.high %v6669_v47, %v6669_v47 }
  0xc8   : > { %12121 = vst [vmem:[#allocation208_spill] sm:$0xff] %v8009_v20  ;;  %v8013_v31 = vcombine.low %v3502_v61, %v3509_v3  ;;  %v3571_v49 = vrot.slane %v8009_v20, 7  ;;  %v8029_v3 = vpop.permute.xlu0 %3583  ;;  %v378_v61 = vrot.slane %v371_v7, %v6778_v8  ;;  %v8034_v48 = vpop.permute.xlu1 %3593  ;;  %v6670_v7 = vld.sshfl [vmem:[%s6783_s24 + $0x28] sm:$0x11 pattern:$0x75316420] }
  0xc9   : > { %12127 = vst [vmem:[#allocation214_spill] sm:$0xff] %v8029_v3  ;;  %12128 = vst [vmem:[#allocation215_spill] sm:$0xff] %v8034_v48  ;;  %v484_v47 = vcombine.high %v6670_v7, %v6670_v7 }
  0xca   : > { %12123 = vst [vmem:[#allocation210_spill] sm:$0xff] %v8013_v31  ;;  %v8018_v5 = vrot.slane %v8013_v31, 7  ;;  %v8021_v60 = vsel %vm3511_vm0, %v3569_v34, %v3571_v49  ;;  %v1530_v34 = vrot.slane %v378_v61, %v6786_v10 }
  0xcb   : > { %12125 = vst [vmem:[#allocation212_spill] sm:$0xff] %v8021_v60  ;;  %3659 = vrot.lane.b32.xlu0 %v8021_v60, %s6714_s25 }
  0xcc   : > { %12124 = vst [vmem:[#allocation211_spill] sm:$0xff] %v8018_v5  ;;  %v8025_v13 = vsel %vm3511_vm0, %v3571_v49, %v8018_v5  ;;  %v8041_v62 = vpop.permute.xlu0 %3603  ;;  %v8043_v49 = vpop.permute.xlu1 %3579  ;;  %v3716_v42 = vrot.slane %v1530_v34, %v6788_v11 }
  0xcd   : > { %12126 = vst [vmem:[#allocation213_spill] sm:$0xff] %v8025_v13  ;;  %3661 = vrot.lane.b32.xlu1 %v8025_v13, %s6714_s25  ;;  %12129 = vst [vmem:[#allocation216_spill] sm:$0xff] %v8041_v62 }
  0xce   : > { %12130 = vst [vmem:[#allocation217_spill] sm:$0xff] %v8043_v49  ;;  %v12316_v49 = vld [vmem:[#allocation161_spill] sm:$0xff] }
  0xcf   : > { %3663 = vrot.lane.b32.xlu0 %v8018_v5, %s6714_s25  ;;  %s6327_s25 = sshll.u32 %s12875_s13, 7 }
  0xd0   : > { %v8054_v61 = vpop.permute.xlu0 %3577  ;;  %v8057_v62 = vpop.permute.xlu1 %3581 }
  0xd1   : > { %3773 = vrot.lane.b32.xlu1 %v6914_v16, %s6715_s26  ;;  %v498_v16 = vrot.slane %v484_v47, %v6778_v8  ;;  %12131 = vst [vmem:[#allocation218_spill] sm:$0xff] %v8054_v61  ;;  %12132 = vst [vmem:[#allocation219_spill] sm:$0xff] %v8057_v62  ;;  %v12318_v61 = vld [vmem:[#allocation168_spill] sm:$0xff] }
  0xd3   : > { %3775 = vrot.lane.b32.xlu0 %v7075_v30, %s6715_s26  ;;  %v1602_v30 = vrot.slane %v498_v16, %v6786_v10 }
  0xd4   : > { %v8065_v7 = vpop.permute.xlu0 %3587 }
  0xd5   : > { %3777 = vrot.lane.b32.xlu1 %v7090_v24, %s6715_s26  ;;  %v6671_v24 = vld.sshfl [vmem:[%s6783_s24 + $0x40] sm:$0x11 pattern:$0x75316420]  ;;  %12133 = vst [vmem:[#allocation220_spill] sm:$0xff] %v8065_v7 }
  0xd6   : > { %v604_v34 = vcombine.high %v6671_v24, %v6671_v24 }
  0xd7   : > { %3779 = vrot.lane.b32.xlu0 %v7083_v54, %s6715_s26  ;;  %v8067_v54 = vpop.permute.xlu1 %3589 }
  0xd8   : > { %12134 = vst [vmem:[#allocation221_spill] sm:$0xff] %v8067_v54  ;;  %v618_v47 = vrot.slane %v604_v34, %v6778_v8  ;;  %v8079_v16 = vpop.permute.xlu0 %3591 }
  0xd9   : > { %3781 = vrot.lane.b32.xlu1 %v3716_v42, %s6715_s26  ;;  %v8072_v42 = vrot.slane %v1602_v30, %v6788_v11  ;;  %12135 = vst [vmem:[#allocation222_spill] sm:$0xff] %v8079_v16  ;;  %v724_v30 = vcombine.high %v7265_v6, %v7265_v6 }
  0xda   : > { %v1674_v24 = vrot.slane %v618_v47, %v6786_v10 }
  0xdb   : > { %3783 = vrot.lane.b32.xlu0 %v6906_v9, %s6715_s26  ;;  %v8084_v48 = vpop.permute.xlu1 %3597  ;;  %v738_v47 = vrot.slane %v724_v30, %v6778_v8 }
  0xdc   : > { %12136 = vst [vmem:[#allocation223_spill] sm:$0xff] %v8084_v48  ;;  %v8093_v34 = vrot.slane %v1674_v24, %v6788_v11  ;;  %v8095_v16 = vpop.permute.xlu0 %3599  ;;  %v844_v24 = vcombine.high %v7403_v58, %v7403_v58 }
  0xdd   : > { %3785 = vrot.lane.b32.xlu1 %v7180_v17, %s6715_s26  ;;  %12138 = vst [vmem:[#allocation225_spill] sm:$0xff] %v8095_v16  ;;  %v1746_v6 = vrot.slane %v738_v47, %v6786_v10 }
  0xde   : > { %12137 = vst [vmem:[#allocation224_spill] sm:$0xff] %v8093_v34  ;;  %v858_v47 = vrot.slane %v844_v24, %v6778_v8 }
  0xdf   : > { %3787 = vrot.lane.b32.xlu0 %v7197_v12, %s6715_s26  ;;  %v8097_v54 = vpop.permute.xlu1 %3601  ;;  %v8118_v30 = vrot.slane %v1746_v6, %v6788_v11  ;;  %v964_v6 = vcombine.high %v7541_v28, %v7541_v28 }
  0xe0   : > { %12139 = vst [vmem:[#allocation226_spill] sm:$0xff] %v8097_v54  ;;  %v8107_v48 = vpop.permute.xlu0 %3607  ;;  %v1818_v58 = vrot.slane %v858_v47, %v6786_v10 }
  0xe1   : > { %3789 = vrot.lane.b32.xlu1 %v7027_v27, %s6715_s26  ;;  %12140 = vst [vmem:[#allocation227_spill] sm:$0xff] %v8107_v48  ;;  %12142 = vst [vmem:[#allocation229_spill] sm:$0xff] %v8118_v30  ;;  %v978_v47 = vrot.slane %v964_v6, %v6778_v8  ;;  %v1084_v6 = vcombine.high %v7667_v37, %v7667_v37 }
  0xe2   : > { %v8141_v24 = vrot.slane %v1818_v58, %v6788_v11 }
  0xe3   : > { %3791 = vrot.lane.b32.xlu0 %v8072_v42, %s6715_s26  ;;  %v8113_v54 = vpop.permute.xlu1 %3609  ;;  %v1890_v58 = vrot.slane %v978_v47, %v6786_v10 }
  0xe4   : > { %12141 = vst [vmem:[#allocation228_spill] sm:$0xff] %v8113_v54  ;;  %v8123_v48 = vpop.permute.xlu0 %3611  ;;  %12146 = vst [vmem:[#allocation233_spill] sm:$0xff] %v8141_v24 }
  0xe5   : > { %3793 = vrot.lane.b32.xlu1 %v6998_v33, %s6715_s26  ;;  %12143 = vst [vmem:[#allocation230_spill] sm:$0xff] %v8123_v48 }
  0xe7   : > { %3795 = vrot.lane.b32.xlu0 %v7239_v52, %s6715_s26  ;;  %v8125_v16 = vpop.permute.xlu1 %3613 }
  0xe8   : > { %12144 = vst [vmem:[#allocation231_spill] sm:$0xff] %v8125_v16  ;;  %v8136_v54 = vpop.permute.xlu0 %3615 }
  0xe9   : > { %3797 = vrot.lane.b32.xlu1 %v7279_v14, %s6715_s26  ;;  %12145 = vst [vmem:[#allocation232_spill] sm:$0xff] %v8136_v54 }
  0xeb   : > { %3799 = vrot.lane.b32.xlu0 %v7159_v0, %s6715_s26  ;;  %v8143_v16 = vpop.permute.xlu1 %3617 }
  0xec   : > { %12147 = vst [vmem:[#allocation234_spill] sm:$0xff] %v8143_v16  ;;  %v12265_v16 = vld [vmem:[#allocation123_spill] sm:$0xff] }
  0xed   : > { %3801 = vrot.lane.b32.xlu1 %v8093_v34, %s6715_s26 }
  0xef   : > { %3803 = vrot.lane.b32.xlu0 %v6950_v53, %s6715_s26  ;;  %v8150_v48 = vpop.permute.xlu0 %3619 }
  0xf0   : > { %12148 = vst [vmem:[#allocation235_spill] sm:$0xff] %v8150_v48  ;;  %v12262_v48 = vld [vmem:[#allocation122_spill] sm:$0xff] }
  0xf1   : > { %3805 = vrot.lane.b32.xlu1 %v7317_v22, %s6715_s26  ;;  %v8152_v28 = vpop.permute.xlu1 %3621  ;;  %v12212_v22 = vld [vmem:[#allocation70_spill] sm:$0xff] }
  0xf2   : > { %12149 = vst [vmem:[#allocation236_spill] sm:$0xff] %v8152_v28  ;;  %v12242_v28 = vld [vmem:[#allocation89_spill] sm:$0xff] }
  0xf3   : > { %3807 = vrot.lane.b32.xlu0 %v7332_v63, %s6715_s26 }
  0xf5   : > { %3809 = vrot.lane.b32.xlu1 %v7372_v59, %s6715_s26  ;;  %v12178_v59 = vld [vmem:[#allocation30_spill] sm:$0xff] }
  0xf7   : > { %3811 = vrot.lane.b32.xlu0 %v8118_v30, %s6715_s26  ;;  %v12164_v30 = vld [vmem:[#allocation7_spill] sm:$0xff] }
  0xf9   : > { %3813 = vrot.lane.b32.xlu1 %v7425_v35, %s6715_s26 }
  0xfa   : > { %v8179_v37 = vpop.permute.xlu1 %3625 }
  0xfb   : > { %3815 = vrot.lane.b32.xlu0 %v7447_v29, %s6715_s26  ;;  %12152 = vst [vmem:[#allocation239_spill] sm:$0xff] %v8179_v37  ;;  %v12166_v37 = vld [vmem:[#allocation8_spill] sm:$0xff] }
  0xfd   : > { %3817 = vrot.lane.b32.xlu1 %v7483_v46, %s6715_s26  ;;  %v2830_v46 = vcombine.low %v7960_v2, %v7968_v44  ;;  %v8170_v44 = vrot.slane %v1890_v58, %v6788_v11  ;;  %v8172_v2 = vpop.permute.xlu0 %3623 }
  0xfe   : > { %12150 = vst [vmem:[#allocation237_spill] sm:$0xff] %v8172_v2  ;;  %v12222_v2 = vld [vmem:[#allocation85_spill] sm:$0xff] }
  0xff   : > { %3819 = vrot.lane.b32.xlu0 %v7487_v36, %s6715_s26  ;;  %v2831_v36 = vcombine.low %v7971_v41, %v7974_v55  ;;  %v1098_v41 = vrot.slane %v1084_v6, %v6778_v8 }
 0x101   : > { %3821 = vrot.lane.b32.xlu1 %v8141_v24, %s6715_s26  ;;  %v2838_v24 = vrot.slane %v2830_v46, %v6788_v11  ;;  %v2845_v29 = vrot.slane %v2831_v36, %v6788_v11  ;;  %v1962_v36 = vrot.slane %v1098_v41, %v6786_v10  ;;  %v8186_v46 = vpop.permute.xlu0 %3627  ;;  %v8188_v55 = vpop.permute.xlu1 %3629 }
 0x102   : > { %12153 = vst [vmem:[#allocation240_spill] sm:$0xff] %v8186_v46  ;;  %12154 = vst [vmem:[#allocation241_spill] sm:$0xff] %v8188_v55  ;;  %v12165_v55 = vld [vmem:[#allocation48_spill] sm:$0xff] }
 0x103   : > { %3823 = vrot.lane.b32.xlu0 %v7562_v56, %s6715_s26  ;;  %v8174_v47 = vcombine.low %v2838_v24, %v2845_v29  ;;  %v1204_v29 = vcombine.high %v7805_v23, %v7805_v23  ;;  %v8197_v24 = vrot.slane %v1962_v36, %v6788_v11  ;;  %v1324_v36 = vcombine.high %v7931_v1, %v7931_v1 }
 0x105   : > { %3825 = vrot.lane.b32.xlu1 %v7585_v57, %s6715_s26  ;;  %12151 = vst [vmem:[#allocation238_spill] sm:$0xff] %v8174_v47  ;;  %12155 = vst [vmem:[#allocation242_spill] sm:$0xff] %v8197_v24  ;;  %v1218_v58 = vrot.slane %v1204_v29, %v6778_v8 }
 0x106   : > { %v8206_v41 = vpop.permute.xlu1 %3633 }
 0x107   : > { %3827 = vrot.lane.b32.xlu0 %v7595_v38, %s6715_s26  ;;  %v8202_v6 = vpop.permute.xlu0 %3631  ;;  %12157 = vst [vmem:[#allocation244_spill] sm:$0xff] %v8206_v41  ;;  %v2034_v23 = vrot.slane %v1218_v58, %v6786_v10  ;;  %v1338_v58 = vrot.slane %v1324_v36, %v6778_v8  ;;  %v2271_v36 = vcombine.low %v12166_v37, %v12165_v55  ;;  %v12167_v8 = vld [vmem:[#allocation50_spill] sm:$0xff]  ;;  %v12171_v37 = vld [vmem:[#allocation52_spill] sm:$0xff]  ;;  %v12172_v55 = vld [vmem:[#allocation51_spill] sm:$0xff] }
 0x108   : > { %12156 = vst [vmem:[#allocation243_spill] sm:$0xff] %v8202_v6  ;;  %v1534_v6 = vrot.slane %v6801_v25, %v6786_v10  ;;  %v12163_v25 = vld [vmem:[#allocation11_spill] sm:$0xff] }
 0x109   : > { %3829 = vrot.lane.b32.xlu1 %v7636_v39, %s6715_s26  ;;  %v8222_v41 = vrot.slane %v2034_v23, %v6788_v11  ;;  %v2106_v23 = vrot.slane %v1338_v58, %v6786_v10  ;;  %v2255_v46 = vcombine.low %v12164_v30, %v12163_v25  ;;  %v12170_v30 = vld [vmem:[#allocation17_spill] sm:$0xff] }
 0x10a   : > { %v1606_v25 = vrot.slane %v12170_v30, %v6786_v10 }
 0x10b   : > { %3831 = vrot.lane.b32.xlu0 %v8170_v44, %s6715_s26  ;;  %12160 = vst [vmem:[#allocation247_spill] sm:$0xff] %v8222_v41  ;;  %v2269_v58 = vrot.slane %v2255_v46, %v6788_v11  ;;  %v12179_v46 = vld [vmem:[#allocation29_spill] sm:$0xff] }
 0x10d   : > { %3833 = vrot.lane.b32.xlu1 %v7689_v50, %s6715_s26 }
 0x10e   : > { %v8215_v35 = vpop.permute.xlu0 %3635 }
 0x10f   : > { %3835 = vrot.lane.b32.xlu0 %v7711_v19, %s6715_s26  ;;  %12158 = vst [vmem:[#allocation245_spill] sm:$0xff] %v8215_v35 }
 0x111   : > { %3837 = vrot.lane.b32.xlu1 %v7747_v26, %s6715_s26  ;;  %v8217_v29 = vpop.permute.xlu1 %3637 }
 0x112   : > { %12159 = vst [vmem:[#allocation246_spill] sm:$0xff] %v8217_v29  ;;  %v2254_v29 = vcombine.low %v1534_v6, %v6832_v40  ;;  %v8251_v6 = vrot.slane %v2106_v23, %v6788_v11  ;;  %v12177_v23 = vld [vmem:[#allocation53_spill] sm:$0xff] }
 0x113   : > { %3839 = vrot.lane.b32.xlu0 %v7751_v18, %s6715_s26 }
 0x114   : > { %v2262_v40 = vrot.slane %v2254_v29, %v6788_v11  ;;  %12169 = vst [vmem:[#allocation11_spill] sm:$0xff] %v8251_v6  ;;  %v2279_v29 = vrot.slane %v2271_v36, %v6788_v11  ;;  %v12182_v36 = vld [vmem:[#allocation22_spill] sm:$0xff] }
 0x115   : > { %3841 = vrot.lane.b32.xlu1 %v8197_v24, %s6715_s26 }
 0x116   : > { %v8274_v30 = vcombine.low %v2262_v40, %v2269_v58 }
 0x117   : > { %3843 = vrot.lane.b32.xlu0 %v7826_v32, %s6715_s26  ;;  %v8231_v1 = vpop.permute.xlu0 %3639  ;;  %v12205_v32 = vld [vmem:[#allocation18_spill] sm:$0xff] }
 0x118   : > { %12161 = vst [vmem:[#allocation248_spill] sm:$0xff] %v8231_v1  ;;  %v8237_v35 = vpop.permute.xlu1 %3641 }
 0x119   : > { %3845 = vrot.lane.b32.xlu1 %v7849_v45, %s6715_s26  ;;  %12162 = vst [vmem:[#allocation249_spill] sm:$0xff] %v8237_v35  ;;  %v2288_v35 = vcombine.low %v12172_v55, %v12171_v37  ;;  %v12181_v37 = vld [vmem:[#allocation23_spill] sm:$0xff] }
 0x11a   : > { %v2330_v55 = vcombine.low %v12182_v36, %v12181_v37 }
 0x11b   : > { %3847 = vrot.lane.b32.xlu0 %v7859_v4, %s6715_s26  ;;  %v2306_v4 = vcombine.low %v12179_v46, %v12178_v59 }
 0x11d   : > { %3849 = vrot.lane.b32.xlu1 %v7900_v51, %s6715_s26  ;;  %v12168_v51 = vld [vmem:[#allocation49_spill] sm:$0xff]  ;;  %v2320_v46 = vrot.slane %v2306_v4, %v6788_v11 }
 0x11e   : > { %v12189_v4 = vld [vmem:[#allocation57_spill] sm:$0xff] }
 0x11f   : > { %3851 = vrot.lane.b32.xlu0 %v8222_v41, %s6715_s26  ;;  %v2272_v41 = vcombine.low %v12168_v51, %v12167_v8  ;;  %v12173_v8 = vld [vmem:[#allocation55_spill] sm:$0xff]  ;;  %v12174_v51 = vld [vmem:[#allocation54_spill] sm:$0xff] }
 0x120   : > { %v2289_v1 = vcombine.low %v12174_v51, %v12173_v8  ;;  %v12183_v8 = vld [vmem:[#allocation21_spill] sm:$0xff] }
 0x121   : > { %3853 = vrot.lane.b32.xlu1 %v7953_v15, %s6715_s26  ;;  %v12176_v15 = vld [vmem:[#allocation28_spill] sm:$0xff]  ;;  %v2329_v51 = vcombine.low %v1606_v25, %v12183_v8  ;;  %v12187_v25 = vld [vmem:[#allocation19_spill] sm:$0xff] }
 0x122   : > { %v2305_v7 = vcombine.low %v12177_v23, %v12176_v15  ;;  %v8268_v63 = vpop.permute.xlu1 %3645  ;;  %v2303_v15 = vrot.slane %v2289_v1, %v6788_v11  ;;  %v2344_v1 = vrot.slane %v2330_v55, %v6788_v11  ;;  %v12194_v55 = vld [vmem:[#allocation6_spill] sm:$0xff] }
 0x123   : > { %3855 = vrot.lane.b32.xlu0 %v7978_v43, %s6715_s26  ;;  %v8260_v43 = vpop.permute.xlu0 %3643  ;;  %12180 = vst [vmem:[#allocation48_spill] sm:$0xff] %v8268_v63  ;;  %v2337_v36 = vrot.slane %v2329_v51, %v6788_v11  ;;  %v12191_v63 = vld [vmem:[#allocation60_spill] sm:$0xff] }
 0x124   : > { %12175 = vst [vmem:[#allocation7_spill] sm:$0xff] %v8260_v43  ;;  %v2313_v23 = vrot.slane %v2305_v7, %v6788_v11 }
 0x125   : > { %3857 = vrot.lane.b32.xlu1 %v8009_v20, %s6715_s26  ;;  %v2286_v20 = vrot.slane %v2272_v41, %v6788_v11  ;;  %v2296_v41 = vrot.slane %v2288_v35, %v6788_v11 }
 0x126   : > { %v8301_v8 = vcombine.low %v2313_v23, %v2320_v46  ;;  %v12197_v23 = vld [vmem:[#allocation45_spill] sm:$0xff]  ;;  %v12198_v46 = vld [vmem:[#allocation62_spill] sm:$0xff] }
 0x127   : > { %3859 = vrot.lane.b32.xlu0 %v8013_v31, %s6715_s26  ;;  %v8281_v59 = vcombine.low %v2279_v29, %v2286_v20  ;;  %v8287_v40 = vpop.permute.xlu0 %3647  ;;  %v8294_v58 = vcombine.low %v2296_v41, %v2303_v15  ;;  %v12186_v20 = vld [vmem:[#allocation59_spill] sm:$0xff]  ;;  %v12188_v29 = vld [vmem:[#allocation61_spill] sm:$0xff]  ;;  %v1678_v41 = vrot.slane %v12194_v55, %v6786_v10 }
 0x128   : > { %12184 = vst [vmem:[#allocation8_spill] sm:$0xff] %v8287_v40  ;;  %v8291_v35 = vpop.permute.xlu1 %3649  ;;  %v2346_v7 = vcombine.low %v12187_v25, %v12186_v20  ;;  %v2347_v37 = vcombine.low %v12189_v4, %v12188_v29  ;;  %v12190_v40 = vld [vmem:[#allocation65_spill] sm:$0xff]  ;;  %v12193_v31 = vld [vmem:[#allocation63_spill] sm:$0xff]  ;;  %v8325_v4 = vcombine.low %v2337_v36, %v2344_v1 }
 0x129   : > { %3861 = vrot.lane.b32.xlu1 %v8251_v6, %s6715_s26  ;;  %12185 = vst [vmem:[#allocation50_spill] sm:$0xff] %v8291_v35  ;;  %v2363_v43 = vcombine.low %v12191_v63, %v12190_v40  ;;  %v12192_v6 = vld [vmem:[#allocation68_spill] sm:$0xff]  ;;  %v12195_v15 = vld [vmem:[#allocation25_spill] sm:$0xff]  ;;  %v12200_v40 = vld [vmem:[#allocation46_spill] sm:$0xff] }
 0x12a   : > { %v2364_v35 = vcombine.low %v12193_v31, %v12192_v6  ;;  %v8313_v20 = vrot.slane %v12195_v15, %v6788_v11  ;;  %v2354_v51 = vrot.slane %v2346_v7, %v6788_v11  ;;  %v2361_v63 = vrot.slane %v2347_v37, %v6788_v11  ;;  %v12199_v6 = vld [vmem:[#allocation47_spill] sm:$0xff]  ;;  %12202 = vst [vmem:[#allocation52_spill] sm:$0xff] %v8325_v4  ;;  %v12209_v36 = vld [vmem:[#allocation69_spill] sm:$0xff] }
 0x12b   : > { %3908 = vrot.lane.b32.xlu0 %v8274_v30, %s6716_s27  ;;  %v2380_v31 = vcombine.low %v12198_v46, %v12197_v23  ;;  %v2381_v25 = vcombine.low %v12200_v40, %v12199_v6  ;;  %v2371_v55 = vrot.slane %v2363_v43, %v6788_v11  ;;  %v12204_v7 = vld [vmem:[#allocation15_spill] sm:$0xff]  ;;  %v12206_v23 = vld [vmem:[#allocation16_spill] sm:$0xff]  ;;  %v12210_v40 = vld [vmem:[#allocation14_spill] sm:$0xff] }
 0x12c   : > { %12196 = vst [vmem:[#allocation49_spill] sm:$0xff] %v8313_v20  ;;  %v2378_v15 = vrot.slane %v2364_v35, %v6788_v11  ;;  %v2404_v37 = vcombine.low %v1678_v41, %v12204_v7  ;;  %v2405_v46 = vcombine.low %v12206_v23, %v12205_v32  ;;  %v8338_v6 = vcombine.low %v2354_v51, %v2361_v63  ;;  %v12215_v7 = vld [vmem:[#allocation72_spill] sm:$0xff] }
 0x12d   : > { %3910 = vrot.lane.b32.xlu1 %v8281_v59, %s6716_s27  ;;  %v8329_v45 = vpop.permute.xlu1 %3653  ;;  %v2388_v1 = vrot.slane %v2380_v31, %v6788_v11  ;;  %v2395_v43 = vrot.slane %v2381_v25, %v6788_v11  ;;  %v12214_v31 = vld [vmem:[#allocation74_spill] sm:$0xff] }
 0x12e   : > { %12203 = vst [vmem:[#allocation51_spill] sm:$0xff] %v8329_v45  ;;  %12207 = vst [vmem:[#allocation55_spill] sm:$0xff] %v8338_v6  ;;  %v8342_v35 = vcombine.low %v2371_v55, %v2378_v15  ;;  %v12211_v45 = vld [vmem:[#allocation71_spill] sm:$0xff]  ;;  %v2412_v51 = vrot.slane %v2404_v37, %v6788_v11  ;;  %v2419_v63 = vrot.slane %v2405_v46, %v6788_v11  ;;  %v12223_v37 = vld [vmem:[#allocation78_spill] sm:$0xff] }
 0x12f   : > { %3912 = vrot.lane.b32.xlu0 %v8294_v58, %s6716_s27  ;;  %v8323_v29 = vpop.permute.xlu0 %3651  ;;  %v2422_v41 = vcombine.low %v12212_v22, %v12211_v45  ;;  %v2438_v25 = vcombine.low %v12215_v7, %v12214_v31  ;;  %v8360_v15 = vcombine.low %v2388_v1, %v2395_v43  ;;  %v12218_v22 = vld [vmem:[#allocation77_spill] sm:$0xff]  ;;  %v12219_v45 = vld [vmem:[#allocation76_spill] sm:$0xff]  ;;  %v2456_v53 = vcombine.low %v12223_v37, %v12222_v2  ;;  %v12226_v1 = vld [vmem:[#allocation87_spill] sm:$0xff] }
 0x130   : > { %12201 = vst [vmem:[#allocation17_spill] sm:$0xff] %v8323_v29  ;;  %12208 = vst [vmem:[#allocation54_spill] sm:$0xff] %v8342_v35  ;;  %v2421_v29 = vcombine.low %v12210_v40, %v12209_v36  ;;  %v2439_v23 = vcombine.low %v12219_v45, %v12218_v22  ;;  %v12220_v36 = vld [vmem:[#allocation83_spill] sm:$0xff]  ;;  %v12224_v46 = vld [vmem:[#allocation44_spill] sm:$0xff]  ;;  %v1750_v43 = vrot.slane %v12226_v1, %v6786_v10 }
 0x131   : > { %3914 = vrot.lane.b32.xlu1 %v8301_v8, %s6716_s27  ;;  %12217 = vst [vmem:[#allocation30_spill] sm:$0xff] %v8360_v15  ;;  %v12221_v40 = vld [vmem:[#allocation75_spill] sm:$0xff]  ;;  %v8370_v3 = vrot.slane %v12224_v46, %v6788_v11  ;;  %v2436_v7 = vrot.slane %v2422_v41, %v6788_v11  ;;  %v8378_v22 = vcombine.low %v2412_v51, %v2419_v63  ;;  %v12230_v37 = vld [vmem:[#allocation90_spill] sm:$0xff]  ;;  %v12232_v51 = vld [vmem:[#allocation92_spill] sm:$0xff] }
 0x132   : > { %v2429_v31 = vrot.slane %v2421_v29, %v6788_v11  ;;  %v2446_v2 = vrot.slane %v2438_v25, %v6788_v11  ;;  %v2453_v45 = vrot.slane %v2439_v23, %v6788_v11  ;;  %v2470_v29 = vrot.slane %v2456_v53, %v6788_v11  ;;  %v12231_v1 = vld [vmem:[#allocation94_spill] sm:$0xff]  ;;  %v12236_v25 = vld [vmem:[#allocation95_spill] sm:$0xff]  ;;  %v12237_v23 = vld [vmem:[#allocation93_spill] sm:$0xff] }
 0x133   : > { %3916 = vrot.lane.b32.xlu0 %v8313_v20, %s6716_s27  ;;  %12225 = vst [vmem:[#allocation29_spill] sm:$0xff] %v8370_v3  ;;  %12227 = vst [vmem:[#allocation23_spill] sm:$0xff] %v8378_v22  ;;  %v2479_v46 = vcombine.low %v1750_v43, %v12230_v37  ;;  %v2480_v63 = vcombine.low %v12232_v51, %v12231_v1  ;;  %v12239_v43 = vld [vmem:[#allocation96_spill] sm:$0xff] }
 0x135   : > { %3918 = vrot.lane.b32.xlu1 %v8325_v4, %s6716_s27  ;;  %v8350_v32 = vpop.permute.xlu0 %3655  ;;  %v2487_v1 = vrot.slane %v2479_v46, %v6788_v11  ;;  %v2494_v51 = vrot.slane %v2480_v63, %v6788_v11  ;;  %v12250_v46 = vld [vmem:[#allocation79_spill] sm:$0xff]  ;;  %v12252_v63 = vld [vmem:[#allocation112_spill] sm:$0xff] }
 0x136   : > { %12213 = vst [vmem:[#allocation28_spill] sm:$0xff] %v8350_v32  ;;  %v2455_v32 = vcombine.low %v12221_v40, %v12220_v36  ;;  %v8388_v40 = vcombine.low %v2429_v31, %v2436_v7  ;;  %v2496_v31 = vcombine.low %v12237_v23, %v12236_v25  ;;  %v12238_v7 = vld [vmem:[#allocation98_spill] sm:$0xff]  ;;  %v12247_v25 = vld [vmem:[#allocation103_spill] sm:$0xff] }
 0x137   : > { %3920 = vrot.lane.b32.xlu0 %v8338_v6, %s6716_s27  ;;  %v2497_v37 = vcombine.low %v12239_v43, %v12238_v7  ;;  %v12248_v7 = vld [vmem:[#allocation107_spill] sm:$0xff]  ;;  %v12249_v43 = vld [vmem:[#allocation106_spill] sm:$0xff] }
 0x138   : > { %v8358_v55 = vpop.permute.xlu1 %3657  ;;  %v2463_v36 = vrot.slane %v2455_v32, %v6788_v11  ;;  %12229 = vst [vmem:[#allocation21_spill] sm:$0xff] %v8388_v40  ;;  %v8399_v32 = vcombine.low %v2446_v2, %v2453_v45  ;;  %v12244_v2 = vld [vmem:[#allocation102_spill] sm:$0xff] }
 0x139   : > { %3922 = vrot.lane.b32.xlu1 %v8342_v35, %s6716_s27  ;;  %12216 = vst [vmem:[#allocation53_spill] sm:$0xff] %v8358_v55 }
 0x13a   : > { %12234 = vst [vmem:[#allocation19_spill] sm:$0xff] %v8399_v32  ;;  %v8401_v53 = vcombine.low %v2463_v36, %v2470_v29  ;;  %v12246_v29 = vld [vmem:[#allocation105_spill] sm:$0xff] }
 0x13b   : > { %3924 = vrot.lane.b32.xlu0 %v8360_v15, %s6716_s27  ;;  %v2530_v23 = vcombine.low %v12247_v25, %v12246_v29  ;;  %v8435_v29 = vcombine.low %v2487_v1, %v2494_v51  ;;  %v12257_v1 = vld [vmem:[#allocation115_spill] sm:$0xff] }
 0x13c   : > { %12235 = vst [vmem:[#allocation61_spill] sm:$0xff] %v8401_v53 }
 0x13d   : > { %3926 = vrot.lane.b32.xlu1 %v8370_v3, %s6716_s27  ;;  %v8386_v41 = vpop.permute.xlu0 %3659  ;;  %12254 = vst [vmem:[#allocation63_spill] sm:$0xff] %v8435_v29 }
 0x13e   : > { %12228 = vst [vmem:[#allocation22_spill] sm:$0xff] %v8386_v41 }
 0x13f   : > { %v8393_v55 = vpop.permute.xlu1 %3661  ;;  %3928 = vrot.lane.b32.xlu0 %v8378_v22, %s6716_s27 }
 0x140   : > { %12233 = vst [vmem:[#allocation59_spill] sm:$0xff] %v8393_v55  ;;  %v12241_v55 = vld [vmem:[#allocation100_spill] sm:$0xff] }
 0x141   : > { %3930 = vrot.lane.b32.xlu1 %v8388_v40, %s6716_s27  ;;  %v8407_v41 = vpop.permute.xlu0 %3663  ;;  %v2513_v62 = vcombine.low %v12242_v28, %v12241_v55  ;;  %v12243_v40 = vld [vmem:[#allocation104_spill] sm:$0xff]  ;;  %v8427_v28 = vrot.slane %v12250_v46, %v6788_v11  ;;  %v2504_v55 = vrot.slane %v2496_v31, %v6788_v11  ;;  %v2538_v31 = vrot.slane %v2530_v23, %v6788_v11 }
 0x142   : > { %12240 = vst [vmem:[#allocation57_spill] sm:$0xff] %v8407_v41  ;;  %v2514_v45 = vcombine.low %v12244_v2, %v12243_v40  ;;  %v2531_v41 = vcombine.low %v12249_v43, %v12248_v7  ;;  %v2511_v40 = vrot.slane %v2497_v37, %v6788_v11  ;;  %v1822_v2 = vrot.slane %v12252_v63, %v6786_v10  ;;  %v12258_v63 = vld [vmem:[#allocation120_spill] sm:$0xff] }
 0x143   : > { %v8415_v36 = vpop.permute.xlu1 %3773  ;;  %3932 = vrot.lane.b32.xlu0 %v8399_v32, %s6716_s27  ;;  %12251 = vst [vmem:[#allocation60_spill] sm:$0xff] %v8427_v28  ;;  %v2521_v25 = vrot.slane %v2513_v62, %v6788_v11  ;;  %v12259_v62 = vld [vmem:[#allocation118_spill] sm:$0xff]  ;;  %v12264_v23 = vld [vmem:[#allocation124_spill] sm:$0xff] }
 0x144   : > { %12245 = vst [vmem:[#allocation65_spill] sm:$0xff] %v8415_v36  ;;  %v2528_v7 = vrot.slane %v2514_v45, %v6788_v11  ;;  %v2545_v37 = vrot.slane %v2531_v41, %v6788_v11  ;;  %v8447_v46 = vcombine.low %v2504_v55, %v2511_v40  ;;  %v2554_v51 = vcombine.low %v1822_v2, %v12257_v1  ;;  %v12268_v40 = vld [vmem:[#allocation126_spill] sm:$0xff]  ;;  %v12269_v2 = vld [vmem:[#allocation125_spill] sm:$0xff] }
 0x145   : > { %3934 = vrot.lane.b32.xlu1 %v8401_v53, %s6716_s27  ;;  %v8433_v32 = vpop.permute.xlu0 %3775  ;;  %v2555_v53 = vcombine.low %v12259_v62, %v12258_v63  ;;  %v2572_v41 = vcombine.low %v12265_v16, %v12264_v23  ;;  %v2588_v1 = vcombine.low %v12269_v2, %v12268_v40  ;;  %v12270_v63 = vld [vmem:[#allocation129_spill] sm:$0xff]  ;;  %v12271_v62 = vld [vmem:[#allocation127_spill] sm:$0xff]  ;;  %v12277_v40 = vld [vmem:[#allocation110_spill] sm:$0xff] }
 0x146   : > { %12253 = vst [vmem:[#allocation68_spill] sm:$0xff] %v8433_v32  ;;  %12256 = vst [vmem:[#allocation25_spill] sm:$0xff] %v8447_v46  ;;  %v8454_v22 = vcombine.low %v2521_v25, %v2528_v7  ;;  %v8464_v55 = vcombine.low %v2538_v31, %v2545_v37  ;;  %v2589_v25 = vcombine.low %v12271_v62, %v12270_v63  ;;  %v12273_v7 = vld [vmem:[#allocation128_spill] sm:$0xff]  ;;  %v12310_v32 = vld [vmem:[#allocation163_spill] sm:$0xff] }
 0x147   : > { %v8439_v43 = vpop.permute.xlu1 %3777  ;;  %3936 = vrot.lane.b32.xlu0 %v8427_v28, %s6716_s27  ;;  %v12263_v28 = vld [vmem:[#allocation116_spill] sm:$0xff]  ;;  %v2569_v16 = vrot.slane %v2555_v53, %v6788_v11  ;;  %v8482_v2 = vrot.slane %v12277_v40, %v6788_v11  ;;  %v2586_v62 = vrot.slane %v2572_v41, %v6788_v11 }
 0x148   : > { %12255 = vst [vmem:[#allocation6_spill] sm:$0xff] %v8439_v43  ;;  %12261 = vst [vmem:[#allocation62_spill] sm:$0xff] %v8454_v22  ;;  %v2571_v43 = vcombine.low %v12263_v28, %v12262_v48  ;;  %v2562_v48 = vrot.slane %v2554_v51, %v6788_v11  ;;  %v12272_v28 = vld [vmem:[#allocation133_spill] sm:$0xff]  ;;  %v12279_v51 = vld [vmem:[#allocation135_spill] sm:$0xff] }
 0x149   : > { %3938 = vrot.lane.b32.xlu1 %v8435_v29, %s6716_s27  ;;  %v8452_v45 = vpop.permute.xlu0 %3779  ;;  %12267 = vst [vmem:[#allocation46_spill] sm:$0xff] %v8464_v55  ;;  %v2605_v23 = vcombine.low %v12273_v7, %v12272_v28  ;;  %12278 = vst [vmem:[#allocation18_spill] sm:$0xff] %v8482_v2  ;;  %v2603_v28 = vrot.slane %v2589_v25, %v6788_v11  ;;  %v12296_v29 = vld [vmem:[#allocation151_spill] sm:$0xff] }
 0x14a   : > { %12260 = vst [vmem:[#allocation45_spill] sm:$0xff] %v8452_v45  ;;  %v12275_v45 = vld [vmem:[#allocation131_spill] sm:$0xff]  ;;  %v2579_v63 = vrot.slane %v2571_v43, %v6788_v11 }
 0x14b   : > { %v8460_v54 = vpop.permute.xlu1 %3781  ;;  %3940 = vrot.lane.b32.xlu0 %v8447_v46, %s6716_s27  ;;  %v2613_v43 = vrot.slane %v2605_v23, %v6788_v11  ;;  %v12290_v23 = vld [vmem:[#allocation141_spill] sm:$0xff] }
 0x14c   : > { %12266 = vst [vmem:[#allocation47_spill] sm:$0xff] %v8460_v54  ;;  %v12274_v54 = vld [vmem:[#allocation134_spill] sm:$0xff]  ;;  %v8502_v40 = vcombine.low %v2579_v63, %v2586_v62 }
 0x14d   : > { %3942 = vrot.lane.b32.xlu1 %v8454_v22, %s6716_s27  ;;  %v2606_v31 = vcombine.low %v12275_v45, %v12274_v54  ;;  %v8478_v37 = vpop.permute.xlu0 %3783  ;;  %v1894_v22 = vrot.slane %v12279_v51, %v6786_v10  ;;  %v2596_v54 = vrot.slane %v2588_v1, %v6788_v11  ;;  %v8495_v45 = vcombine.low %v2562_v48, %v2569_v16  ;;  %v12283_v51 = vld [vmem:[#allocation139_spill] sm:$0xff]  ;;  %v12291_v63 = vld [vmem:[#allocation146_spill] sm:$0xff] }
 0x14e   : > { %12276 = vst [vmem:[#allocation15_spill] sm:$0xff] %v8478_v37  ;;  %12282 = vst [vmem:[#allocation14_spill] sm:$0xff] %v8502_v40  ;;  %v12284_v37 = vld [vmem:[#allocation142_spill] sm:$0xff]  ;;  %v12289_v16 = vld [vmem:[#allocation143_spill] sm:$0xff] }
 0x14f   : > { %v8488_v53 = vpop.permute.xlu1 %3785  ;;  %3944 = vrot.lane.b32.xlu0 %v8464_v55, %s6716_s27  ;;  %v2620_v41 = vrot.slane %v2606_v31, %v6788_v11  ;;  %v12285_v55 = vld [vmem:[#allocation140_spill] sm:$0xff]  ;;  %v8513_v25 = vcombine.low %v2596_v54, %v2603_v28  ;;  %v2646_v31 = vcombine.low %v12290_v23, %v12289_v16  ;;  %v12297_v54 = vld [vmem:[#allocation149_spill] sm:$0xff]  ;;  %v12300_v16 = vld [vmem:[#allocation150_spill] sm:$0xff] }
 0x150   : > { %12280 = vst [vmem:[#allocation16_spill] sm:$0xff] %v8488_v53  ;;  %v2629_v53 = vcombine.low %v1894_v22, %v12283_v51  ;;  %v2630_v1 = vcombine.low %v12285_v55, %v12284_v37  ;;  %v12292_v22 = vld [vmem:[#allocation144_spill] sm:$0xff]  ;;  %v2664_v28 = vcombine.low %v12297_v54, %v12296_v29 }
 0x151   : > { %3946 = vrot.lane.b32.xlu1 %v8482_v2, %s6716_s27  ;;  %v8500_v7 = vpop.permute.xlu0 %3787  ;;  %12287 = vst [vmem:[#allocation70_spill] sm:$0xff] %v8513_v25  ;;  %v8515_v48 = vcombine.low %v2613_v43, %v2620_v41  ;;  %v2647_v62 = vcombine.low %v12292_v22, %v12291_v63  ;;  %v12299_v41 = vld [vmem:[#allocation152_spill] sm:$0xff]  ;;  %v12301_v63 = vld [vmem:[#allocation154_spill] sm:$0xff]  ;;  %v12302_v22 = vld [vmem:[#allocation153_spill] sm:$0xff]  ;;  %v2654_v29 = vrot.slane %v2646_v31, %v6788_v11 }
 0x152   : > { %12281 = vst [vmem:[#allocation69_spill] sm:$0xff] %v8500_v7  ;;  %v2637_v55 = vrot.slane %v2629_v53, %v6788_v11  ;;  %v2644_v37 = vrot.slane %v2630_v1, %v6788_v11  ;;  %v12295_v7 = vld [vmem:[#allocation138_spill] sm:$0xff]  ;;  %v2680_v23 = vcombine.low %v12300_v16, %v12299_v41  ;;  %v12303_v53 = vld [vmem:[#allocation132_spill] sm:$0xff] }
 0x153   : > { %v8507_v46 = vpop.permute.xlu1 %3789  ;;  %3948 = vrot.lane.b32.xlu0 %v8495_v45, %s6716_s27  ;;  %12288 = vst [vmem:[#allocation74_spill] sm:$0xff] %v8515_v48  ;;  %v12305_v1 = vld [vmem:[#allocation158_spill] sm:$0xff] }
 0x154   : > { %12286 = vst [vmem:[#allocation71_spill] sm:$0xff] %v8507_v46  ;;  %v12294_v46 = vld [vmem:[#allocation148_spill] sm:$0xff]  ;;  %v1966_v54 = vrot.slane %v12305_v1, %v6786_v10  ;;  %v8549_v41 = vcombine.low %v2637_v55, %v2644_v37  ;;  %v2688_v31 = vrot.slane %v2680_v23, %v6788_v11  ;;  %v12317_v23 = vld [vmem:[#allocation169_spill] sm:$0xff] }
 0x155   : > { %3950 = vrot.lane.b32.xlu1 %v8502_v40, %s6716_s27  ;;  %v8521_v51 = vpop.permute.xlu0 %3791  ;;  %v2663_v2 = vcombine.low %v12295_v7, %v12294_v46  ;;  %v8541_v46 = vrot.slane %v12303_v53, %v6788_v11  ;;  %v2661_v7 = vrot.slane %v2647_v62, %v6788_v11  ;;  %v12309_v53 = vld [vmem:[#allocation165_spill] sm:$0xff] }
 0x156   : > { %12293 = vst [vmem:[#allocation72_spill] sm:$0xff] %v8521_v51  ;;  %v2681_v51 = vcombine.low %v12302_v22, %v12301_v63  ;;  %12307 = vst [vmem:[#allocation75_spill] sm:$0xff] %v8549_v41  ;;  %v2678_v63 = vrot.slane %v2664_v28, %v6788_v11  ;;  %v2705_v1 = vcombine.low %v12310_v32, %v12309_v53 }
 0x157   : > { %v8529_v43 = vpop.permute.xlu1 %3793  ;;  %3952 = vrot.lane.b32.xlu0 %v8513_v25, %s6716_s27  ;;  %12304 = vst [vmem:[#allocation76_spill] sm:$0xff] %v8541_v46  ;;  %v2671_v16 = vrot.slane %v2663_v2, %v6788_v11  ;;  %v8563_v55 = vcombine.low %v2654_v29, %v2661_v7  ;;  %v12312_v2 = vld [vmem:[#allocation160_spill] sm:$0xff]  ;;  %v12321_v7 = vld [vmem:[#allocation171_spill] sm:$0xff] }
 0x158   : > { %12298 = vst [vmem:[#allocation77_spill] sm:$0xff] %v8529_v43  ;;  %v2695_v62 = vrot.slane %v2681_v51, %v6788_v11  ;;  %v2704_v37 = vcombine.low %v1966_v54, %v12312_v2  ;;  %v2722_v51 = vcombine.low %v12318_v61, %v12317_v23  ;;  %v2719_v29 = vrot.slane %v2705_v1, %v6788_v11  ;;  %v12322_v54 = vld [vmem:[#allocation170_spill] sm:$0xff]  ;;  %v12326_v2 = vld [vmem:[#allocation173_spill] sm:$0xff]  ;;  %v12330_v1 = vld [vmem:[#allocation156_spill] sm:$0xff] }
 0x159   : > { %3954 = vrot.lane.b32.xlu1 %v8515_v48, %s6716_s27  ;;  %v8547_v43 = vpop.permute.xlu0 %3795  ;;  %12311 = vst [vmem:[#allocation78_spill] sm:$0xff] %v8563_v55  ;;  %v2738_v53 = vcombine.low %v12322_v54, %v12321_v7  ;;  %v8596_v34 = vrot.slane %v12330_v1, %v6788_v11  ;;  %v12337_v1 = vld [vmem:[#allocation187_spill] sm:$0xff] }
 0x15a   : > { %12306 = vst [vmem:[#allocation83_spill] sm:$0xff] %v8547_v43  ;;  %v8568_v43 = vcombine.low %v2671_v16, %v2678_v63  ;;  %v8578_v32 = vcombine.low %v2688_v31, %v2695_v62  ;;  %v12323_v16 = vld [vmem:[#allocation174_spill] sm:$0xff]  ;;  %v12324_v63 = vld [vmem:[#allocation172_spill] sm:$0xff]  ;;  %v2736_v54 = vrot.slane %v2722_v51, %v6788_v11 }
 0x15b   : > { %v8553_v22 = vpop.permute.xlu1 %3797  ;;  %3956 = vrot.lane.b32.xlu0 %v8541_v46, %s6716_s27  ;;  %v2739_v61 = vcombine.low %v12324_v63, %v12323_v16  ;;  %12331 = vst [vmem:[#allocation95_spill] sm:$0xff] %v8596_v34 }
 0x15c   : > { %12308 = vst [vmem:[#allocation85_spill] sm:$0xff] %v8553_v22  ;;  %12314 = vst [vmem:[#allocation87_spill] sm:$0xff] %v8568_v43  ;;  %v12315_v22 = vld [vmem:[#allocation167_spill] sm:$0xff] }
 0x15d   : > { %3958 = vrot.lane.b32.xlu1 %v8549_v41, %s6716_s27  ;;  %v8566_v28 = vpop.permute.xlu0 %3799  ;;  %v2721_v36 = vcombine.low %v12316_v49, %v12315_v22  ;;  %12320 = vst [vmem:[#allocation94_spill] sm:$0xff] %v8578_v32  ;;  %v2712_v49 = vrot.slane %v2704_v37, %v6788_v11  ;;  %v12325_v22 = vld [vmem:[#allocation180_spill] sm:$0xff]  ;;  %v12332_v37 = vld [vmem:[#allocation183_spill] sm:$0xff]  ;;  %v2753_v63 = vrot.slane %v2739_v61, %v6788_v11 }
 0x15e   : > { %12313 = vst [vmem:[#allocation44_spill] sm:$0xff] %v8566_v28  ;;  %v2755_v23 = vcombine.low %v12326_v2, %v12325_v22  ;;  %v12328_v28 = vld [vmem:[#allocation177_spill] sm:$0xff]  ;;  %v2038_v18 = vrot.slane %v12332_v37, %v6786_v10  ;;  %v12343_v61 = vld [vmem:[#allocation192_spill] sm:$0xff]  ;;  %v12425_v10 = vld [vmem:[#allocation162_spill] sm:$0xff] }
 0x15f   : > { %v8574_v24 = vpop.permute.xlu1 %3801  ;;  %3960 = vrot.lane.b32.xlu0 %v8563_v55, %s6716_s27  ;;  %v2729_v7 = vrot.slane %v2721_v36, %v6788_v11 }
 0x160   : > { %12319 = vst [vmem:[#allocation90_spill] sm:$0xff] %v8574_v24  ;;  %v12327_v24 = vld [vmem:[#allocation182_spill] sm:$0xff]  ;;  %v2763_v36 = vrot.slane %v2755_v23, %v6788_v11  ;;  %v2779_v37 = vcombine.low %v2038_v18, %v12337_v1  ;;  %v12346_v18 = vld [vmem:[#allocation193_spill] sm:$0xff] }
 0x161   : > { %3962 = vrot.lane.b32.xlu1 %v8568_v43, %s6716_s27  ;;  %v2756_v31 = vcombine.low %v12328_v28, %v12327_v24  ;;  %v8592_v62 = vpop.permute.xlu0 %3803  ;;  %v2746_v24 = vrot.slane %v2738_v53, %v6788_v11  ;;  %v8609_v28 = vcombine.low %v2712_v49, %v2719_v29  ;;  %v8616_v2 = vcombine.low %v2729_v7, %v2736_v54  ;;  %v12344_v23 = vld [vmem:[#allocation190_spill] sm:$0xff]  ;;  %v12345_v7 = vld [vmem:[#allocation195_spill] sm:$0xff] }
 0x162   : > { %12329 = vst [vmem:[#allocation92_spill] sm:$0xff] %v8592_v62  ;;  %v12339_v62 = vld [vmem:[#allocation189_spill] sm:$0xff]  ;;  %v2797_v54 = vcombine.low %v12346_v18, %v12345_v7 }
 0x163   : > { %v8602_v16 = vpop.permute.xlu1 %3805  ;;  %3964 = vrot.lane.b32.xlu0 %v8578_v32, %s6716_s27  ;;  %12334 = vst [vmem:[#allocation98_spill] sm:$0xff] %v8609_v28  ;;  %v2770_v51 = vrot.slane %v2756_v31, %v6788_v11  ;;  %12336 = vst [vmem:[#allocation100_spill] sm:$0xff] %v8616_v2  ;;  %v8627_v29 = vcombine.low %v2746_v24, %v2753_v63  ;;  %v2796_v31 = vcombine.low %v12344_v23, %v12343_v61  ;;  %v12351_v24 = vld [vmem:[#allocation199_spill] sm:$0xff] }
 0x164   : > { %12333 = vst [vmem:[#allocation93_spill] sm:$0xff] %v8602_v16  ;;  %v12338_v16 = vld [vmem:[#allocation191_spill] sm:$0xff] }
 0x165   : > { %3966 = vrot.lane.b32.xlu1 %v8596_v34, %s6716_s27  ;;  %v8614_v22 = vpop.permute.xlu0 %3807  ;;  %v2780_v53 = vcombine.low %v12339_v62, %v12338_v16  ;;  %12341 = vst [vmem:[#allocation104_spill] sm:$0xff] %v8627_v29  ;;  %v8629_v49 = vcombine.low %v2763_v36, %v2770_v51  ;;  %v2787_v62 = vrot.slane %v2779_v37, %v6788_v11  ;;  %v12353_v51 = vld [vmem:[#allocation178_spill] sm:$0xff] }
 0x166   : > { %12335 = vst [vmem:[#allocation96_spill] sm:$0xff] %v8614_v22  ;;  %v12349_v22 = vld [vmem:[#allocation186_spill] sm:$0xff]  ;;  %v8651_v61 = vrot.slane %v12353_v51, %v6788_v11  ;;  %v2804_v37 = vrot.slane %v2796_v31, %v6788_v11 }
 0x167   : > { %v8621_v0 = vpop.permute.xlu1 %3809  ;;  %3968 = vrot.lane.b32.xlu0 %v8609_v28, %s6716_s27  ;;  %12342 = vst [vmem:[#allocation102_spill] sm:$0xff] %v8629_v49  ;;  %v2794_v16 = vrot.slane %v2780_v53, %v6788_v11  ;;  %v2811_v53 = vrot.slane %v2797_v54, %v6788_v11 }
 0x168   : > { %12340 = vst [vmem:[#allocation89_spill] sm:$0xff] %v8621_v0  ;;  %v12348_v0 = vld [vmem:[#allocation197_spill] sm:$0xff]  ;;  %12354 = vst [vmem:[#allocation107_spill] sm:$0xff] %v8651_v61 }
 0x169   : > { %3970 = vrot.lane.b32.xlu1 %v8616_v2, %s6716_s27  ;;  %v8635_v1 = vpop.permute.xlu0 %3811  ;;  %v2813_v28 = vcombine.low %v12349_v22, %v12348_v0  ;;  %v12350_v2 = vld [vmem:[#allocation201_spill] sm:$0xff]  ;;  %v8657_v22 = vcombine.low %v2787_v62, %v2794_v16  ;;  %v8667_v18 = vcombine.low %v2804_v37, %v2811_v53  ;;  %v12368_v53 = vld [vmem:[#allocation20_spill] sm:$0xff] }
 0x16a   : > { %12347 = vst [vmem:[#allocation105_spill] sm:$0xff] %v8635_v1  ;;  %v2814_v63 = vcombine.low %v12351_v24, %v12350_v2  ;;  %v12363_v16 = vld [vmem:[#allocation205_spill] sm:$0xff]  ;;  %v12372_v1 = vld [vmem:[#allocation66_spill] sm:$0xff] }
 0x16b   : > { %v8643_v36 = vpop.permute.xlu1 %3813  ;;  %3972 = vrot.lane.b32.xlu0 %v8627_v29, %s6716_s27  ;;  %12356 = vst [vmem:[#allocation79_spill] sm:$0xff] %v8657_v22  ;;  %v2821_v2 = vrot.slane %v2813_v28, %v6788_v11  ;;  %12358 = vst [vmem:[#allocation115_spill] sm:$0xff] %v8667_v18  ;;  %v8683_v24 = vrot.slane %v12363_v16, %v6788_v11 }
 0x16c   : > { %12352 = vst [vmem:[#allocation103_spill] sm:$0xff] %v8643_v36  ;;  %v2828_v23 = vrot.slane %v2814_v63, %v6788_v11  ;;  %v12417_v36 = vld [vmem:[#allocation155_spill] sm:$0xff] }
 0x16d   : > { %3974 = vrot.lane.b32.xlu1 %v8629_v49, %s6716_s27  ;;  %v8655_v0 = vpop.permute.xlu0 %3815  ;;  %12364 = vst [vmem:[#allocation124_spill] sm:$0xff] %v8683_v24  ;;  %v12389_v49 = vld [vmem:[#allocation86_spill] sm:$0xff] }
 0x16e   : > { %12355 = vst [vmem:[#allocation106_spill] sm:$0xff] %v8655_v0  ;;  %v8671_v54 = vcombine.low %v2821_v2, %v2828_v23  ;;  %v12369_v2 = vld [vmem:[#allocation64_spill] sm:$0xff]  ;;  %v12412_v0 = vld [vmem:[#allocation137_spill] sm:$0xff] }
 0x16f   : > { %v8661_v7 = vpop.permute.xlu1 %3817  ;;  %3976 = vrot.lane.b32.xlu0 %v8651_v61, %s6716_s27 }
 0x170   : > { %12357 = vst [vmem:[#allocation112_spill] sm:$0xff] %v8661_v7  ;;  %12360 = vst [vmem:[#allocation118_spill] sm:$0xff] %v8671_v54 }
 0x171   : > { %3978 = vrot.lane.b32.xlu1 %v8657_v22, %s6716_s27  ;;  %v8669_v31 = vpop.permute.xlu0 %3819  ;;  %v12377_v22 = vld [vmem:[#allocation32_spill] sm:$0xff] }
 0x172   : > { %12359 = vst [vmem:[#allocation120_spill] sm:$0xff] %v8669_v31  ;;  %v12393_v31 = vld [vmem:[#allocation99_spill] sm:$0xff] }
 0x173   : > { %v8673_v62 = vpop.permute.xlu1 %3821  ;;  %3980 = vrot.lane.b32.xlu0 %v8667_v18, %s6716_s27  ;;  %v12376_v18 = vld [vmem:[#allocation42_spill] sm:$0xff] }
 0x174   : > { %12361 = vst [vmem:[#allocation122_spill] sm:$0xff] %v8673_v62 }
 0x175   : > { %3982 = vrot.lane.b32.xlu1 %v8671_v54, %s6716_s27  ;;  %v8679_v28 = vpop.permute.xlu0 %3823 }
 0x176   : > { %12362 = vst [vmem:[#allocation116_spill] sm:$0xff] %v8679_v28  ;;  %v12385_v28 = vld [vmem:[#allocation58_spill] sm:$0xff] }
 0x177   : > { %v8685_v63 = vpop.permute.xlu1 %3825  ;;  %3984 = vrot.lane.b32.xlu0 %v8174_v47, %s6716_s27 }
 0x178   : > { %12365 = vst [vmem:[#allocation123_spill] sm:$0xff] %v8685_v63 }
 0x179   : > { %3986 = vrot.lane.b32.xlu1 %v8683_v24, %s6716_s27  ;;  %v8691_v51 = vpop.permute.xlu0 %3827  ;;  %v12373_v24 = vld [vmem:[#allocation67_spill] sm:$0xff] }
 0x17a   : > { %12366 = vst [vmem:[#allocation126_spill] sm:$0xff] %v8691_v51  ;;  %v12381_v51 = vld [vmem:[#allocation81_spill] sm:$0xff] }
 0x17b   : > { %v8693_v37 = vpop.permute.xlu1 %3829  ;;  %4028 = vrot.lane.b32.xlu0 %v12368_v53, %s6717_s28 }
 0x17c   : > { %12367 = vst [vmem:[#allocation125_spill] sm:$0xff] %v8693_v37 }
 0x17d   : > { %4030 = vrot.lane.b32.xlu1 %v12369_v2, %s6717_s28  ;;  %v8699_v23 = vpop.permute.xlu0 %3831 }
 0x17e   : > { %12370 = vst [vmem:[#allocation129_spill] sm:$0xff] %v8699_v23 }
 0x17f   : > { %v8701_v16 = vpop.permute.xlu1 %3833  ;;  %4032 = vrot.lane.b32.xlu0 %v12372_v1, %s6717_s28 }
 0x180   : > { %12371 = vst [vmem:[#allocation127_spill] sm:$0xff] %v8701_v16  ;;  %v12380_v16 = vld [vmem:[#allocation73_spill] sm:$0xff] }
 0x181   : > { %4034 = vrot.lane.b32.xlu1 %v12373_v24, %s6717_s28  ;;  %v8707_v47 = vpop.permute.xlu0 %3835 }
 0x182   : > { %12374 = vst [vmem:[#allocation133_spill] sm:$0xff] %v8707_v47 }
 0x183   : > { %v8709_v54 = vpop.permute.xlu1 %3837  ;;  %4036 = vrot.lane.b32.xlu0 %v12376_v18, %s6717_s28 }
 0x184   : > { %12375 = vst [vmem:[#allocation128_spill] sm:$0xff] %v8709_v54  ;;  %v12384_v54 = vld [vmem:[#allocation80_spill] sm:$0xff] }
 0x185   : > { %4038 = vrot.lane.b32.xlu1 %v12377_v22, %s6717_s28  ;;  %v8715_v37 = vpop.permute.xlu0 %3839 }
 0x186   : > { %12378 = vst [vmem:[#allocation134_spill] sm:$0xff] %v8715_v37 }
 0x187   : > { %v8717_v23 = vpop.permute.xlu1 %3841  ;;  %4040 = vrot.lane.b32.xlu0 %v12380_v16, %s6717_s28 }
 0x188   : > { %12379 = vst [vmem:[#allocation131_spill] sm:$0xff] %v8717_v23  ;;  %v12388_v23 = vld [vmem:[#allocation27_spill] sm:$0xff] }
 0x189   : > { %4042 = vrot.lane.b32.xlu1 %v12381_v51, %s6717_s28  ;;  %v8723_v63 = vpop.permute.xlu0 %3843 }
 0x18a   : > { %12382 = vst [vmem:[#allocation110_spill] sm:$0xff] %v8723_v63 }
 0x18b   : > { %v8725_v47 = vpop.permute.xlu1 %3845  ;;  %4044 = vrot.lane.b32.xlu0 %v12384_v54, %s6717_s28  ;;  %v12429_v54 = vld [vmem:[#allocation184_spill] sm:$0xff] }
 0x18c   : > { %12383 = vst [vmem:[#allocation135_spill] sm:$0xff] %v8725_v47  ;;  %v12392_v47 = vld [vmem:[#allocation88_spill] sm:$0xff] }
 0x18d   : > { %4046 = vrot.lane.b32.xlu1 %v12385_v28, %s6717_s28  ;;  %v8731_v61 = vpop.permute.xlu0 %3847 }
 0x18e   : > { %12386 = vst [vmem:[#allocation139_spill] sm:$0xff] %v8731_v61 }
 0x18f   : > { %v8733_v37 = vpop.permute.xlu1 %3849  ;;  %4048 = vrot.lane.b32.xlu0 %v12388_v23, %s6717_s28  ;;  %v12397_v23 = vld [vmem:[#allocation109_spill] sm:$0xff] }
 0x190   : > { %12387 = vst [vmem:[#allocation142_spill] sm:$0xff] %v8733_v37  ;;  %v12396_v37 = vld [vmem:[#allocation97_spill] sm:$0xff] }
 0x191   : > { %4050 = vrot.lane.b32.xlu1 %v12389_v49, %s6717_s28  ;;  %v8739_v62 = vpop.permute.xlu0 %3851 }
 0x192   : > { %12390 = vst [vmem:[#allocation140_spill] sm:$0xff] %v8739_v62 }
 0x193   : > { %v8741_v63 = vpop.permute.xlu1 %3853  ;;  %4052 = vrot.lane.b32.xlu0 %v12392_v47, %s6717_s28  ;;  %v12401_v47 = vld [vmem:[#allocation119_spill] sm:$0xff] }
 0x194   : > { %12391 = vst [vmem:[#allocation143_spill] sm:$0xff] %v8741_v63  ;;  %v12400_v63 = vld [vmem:[#allocation111_spill] sm:$0xff] }
 0x195   : > { %4054 = vrot.lane.b32.xlu1 %v12393_v31, %s6717_s28  ;;  %v8747_v29 = vpop.permute.xlu0 %3855 }
 0x196   : > { %12394 = vst [vmem:[#allocation141_spill] sm:$0xff] %v8747_v29 }
 0x197   : > { %v8749_v61 = vpop.permute.xlu1 %3857  ;;  %4056 = vrot.lane.b32.xlu0 %v12396_v37, %s6717_s28  ;;  %v12405_v37 = vld [vmem:[#allocation117_spill] sm:$0xff] }
 0x198   : > { %12395 = vst [vmem:[#allocation146_spill] sm:$0xff] %v8749_v61  ;;  %v12404_v61 = vld [vmem:[#allocation121_spill] sm:$0xff] }
 0x199   : > { %4058 = vrot.lane.b32.xlu1 %v12397_v23, %s6717_s28  ;;  %v8755_v49 = vpop.permute.xlu0 %3859 }
 0x19a   : > { %12398 = vst [vmem:[#allocation144_spill] sm:$0xff] %v8755_v49 }
 0x19b   : > { %v8757_v62 = vpop.permute.xlu1 %3861  ;;  %4060 = vrot.lane.b32.xlu0 %v12400_v63, %s6717_s28  ;;  %v12409_v63 = vld [vmem:[#allocation136_spill] sm:$0xff] }
 0x19c   : > { %12399 = vst [vmem:[#allocation148_spill] sm:$0xff] %v8757_v62  ;;  %v12408_v62 = vld [vmem:[#allocation130_spill] sm:$0xff] }
 0x19d   : > { %4062 = vrot.lane.b32.xlu1 %v12401_v47, %s6717_s28  ;;  %v8763_v31 = vpop.permute.xlu0 %3908 }
 0x19e   : > { %12402 = vst [vmem:[#allocation138_spill] sm:$0xff] %v8763_v31  ;;  %v12421_v31 = vld [vmem:[#allocation164_spill] sm:$0xff] }
 0x19f   : > { %v8765_v29 = vpop.permute.xlu1 %3910  ;;  %4064 = vrot.lane.b32.xlu0 %v12404_v61, %s6717_s28  ;;  %v12413_v61 = vld [vmem:[#allocation147_spill] sm:$0xff] }
 0x1a0   : > { %12403 = vst [vmem:[#allocation151_spill] sm:$0xff] %v8765_v29 }
 0x1a1   : > { %4066 = vrot.lane.b32.xlu1 %v12405_v37, %s6717_s28  ;;  %v8771_v23 = vpop.permute.xlu0 %3912 }
 0x1a2   : > { %12406 = vst [vmem:[#allocation149_spill] sm:$0xff] %v8771_v23 }
 0x1a3   : > { %v8773_v49 = vpop.permute.xlu1 %3914  ;;  %4068 = vrot.lane.b32.xlu0 %v12408_v62, %s6717_s28 }
 0x1a4   : > { %12407 = vst [vmem:[#allocation152_spill] sm:$0xff] %v8773_v49  ;;  %v12416_v49 = vld [vmem:[#allocation145_spill] sm:$0xff] }
 0x1a5   : > { %4070 = vrot.lane.b32.xlu1 %v12409_v63, %s6717_s28  ;;  %v8779_v47 = vpop.permute.xlu0 %3916 }
 0x1a6   : > { %12410 = vst [vmem:[#allocation150_spill] sm:$0xff] %v8779_v47 }
 0x1a7   : > { %v8781_v7 = vpop.permute.xlu1 %3918  ;;  %4072 = vrot.lane.b32.xlu0 %v12412_v0, %s6717_s28 }
 0x1a8   : > { %12411 = vst [vmem:[#allocation154_spill] sm:$0xff] %v8781_v7  ;;  %v12420_v7 = vld [vmem:[#allocation157_spill] sm:$0xff] }
 0x1a9   : > { %4074 = vrot.lane.b32.xlu1 %v12413_v61, %s6717_s28  ;;  %v8787_v37 = vpop.permute.xlu0 %3920 }
 0x1aa   : > { %12414 = vst [vmem:[#allocation153_spill] sm:$0xff] %v8787_v37 }
 0x1ab   : > { %v8789_v23 = vpop.permute.xlu1 %3922  ;;  %4076 = vrot.lane.b32.xlu0 %v12416_v49, %s6717_s28 }
 0x1ac   : > { %12415 = vst [vmem:[#allocation132_spill] sm:$0xff] %v8789_v23  ;;  %v12424_v23 = vld [vmem:[#allocation166_spill] sm:$0xff] }
 0x1ad   : > { %4078 = vrot.lane.b32.xlu1 %v12417_v36, %s6717_s28  ;;  %v8795_v29 = vpop.permute.xlu0 %3924 }
 0x1ae   : > { %12418 = vst [vmem:[#allocation158_spill] sm:$0xff] %v8795_v29 }
 0x1af   : > { %v8797_v47 = vpop.permute.xlu1 %3926  ;;  %4080 = vrot.lane.b32.xlu0 %v12420_v7, %s6717_s28 }
 0x1b0   : > { %12419 = vst [vmem:[#allocation165_spill] sm:$0xff] %v8797_v47  ;;  %v12428_v47 = vld [vmem:[#allocation176_spill] sm:$0xff] }
 0x1b1   : > { %4082 = vrot.lane.b32.xlu1 %v12421_v31, %s6717_s28  ;;  %v8803_v11 = vpop.permute.xlu0 %3928 }
 0x1b2   : > { %12422 = vst [vmem:[#allocation163_spill] sm:$0xff] %v8803_v11 }
 0x1b3   : > { %v8805_v37 = vpop.permute.xlu1 %3930  ;;  %4084 = vrot.lane.b32.xlu0 %v12424_v23, %s6717_s28  ;;  %v12433_v23 = vld [vmem:[#allocation196_spill] sm:$0xff] }
 0x1b4   : > { %12423 = vst [vmem:[#allocation160_spill] sm:$0xff] %v8805_v37  ;;  %v12432_v37 = vld [vmem:[#allocation185_spill] sm:$0xff] }
 0x1b5   : > { %4086 = vrot.lane.b32.xlu1 %v12425_v10, %s6717_s28  ;;  %v8811_v28 = vpop.permute.xlu0 %3932 }
 0x1b6   : > { %12426 = vst [vmem:[#allocation167_spill] sm:$0xff] %v8811_v28 }
 0x1b7   : > { %v8813_v29 = vpop.permute.xlu1 %3934  ;;  %4088 = vrot.lane.b32.xlu0 %v12428_v47, %s6717_s28  ;;  %v12437_v47 = vld [vmem:[#allocation204_spill] sm:$0xff] }
 0x1b8   : > { %12427 = vst [vmem:[#allocation161_spill] sm:$0xff] %v8813_v29  ;;  %v12436_v29 = vld [vmem:[#allocation194_spill] sm:$0xff] }
 0x1b9   : > { %4090 = vrot.lane.b32.xlu1 %v12429_v54, %s6717_s28  ;;  %v8819_v34 = vpop.permute.xlu0 %3936 }
 0x1ba   : > { %12430 = vst [vmem:[#allocation169_spill] sm:$0xff] %v8819_v34 }
 0x1bb   : > { %v8821_v11 = vpop.permute.xlu1 %3938  ;;  %4092 = vrot.lane.b32.xlu0 %v12432_v37, %s6717_s28 }
 0x1bc   : > { %12431 = vst [vmem:[#allocation168_spill] sm:$0xff] %v8821_v11 }
 0x1bd   : > { %4094 = vrot.lane.b32.xlu1 %v12433_v23, %s6717_s28  ;;  %v8827_v10 = vpop.permute.xlu0 %3940 }
 0x1be   : > { %12434 = vst [vmem:[#allocation171_spill] sm:$0xff] %v8827_v10 }
 0x1bf   : > { %v8829_v28 = vpop.permute.xlu1 %3942  ;;  %4096 = vrot.lane.b32.xlu0 %v12436_v29, %s6717_s28 }
 0x1c0   : > { %12435 = vst [vmem:[#allocation170_spill] sm:$0xff] %v8829_v28 }
 0x1c1   : > { %4098 = vrot.lane.b32.xlu1 %v12437_v47, %s6717_s28  ;;  %v8835_v54 = vpop.permute.xlu0 %3944 }
 0x1c2   : > { %12438 = vst [vmem:[#allocation174_spill] sm:$0xff] %v8835_v54 }
 0x1c3   : > { %v8837_v34 = vpop.permute.xlu1 %3946  ;;  %4100 = vrot.lane.b32.xlu0 %v8002_v21, %s6717_s28 }
 0x1c4   : > { %12439 = vst [vmem:[#allocation172_spill] sm:$0xff] %v8837_v34 }
 0x1c5   : > { %4102 = vrot.lane.b32.xlu1 %v8021_v60, %s6717_s28  ;;  %v8843_v11 = vpop.permute.xlu0 %3948 }
 0x1c7   : > { %v8845_v10 = vpop.permute.xlu1 %3950  ;;  %4104 = vrot.lane.b32.xlu0 %v8025_v13, %s6717_s28 }
 0x1c9   : > { %4106 = vrot.lane.b32.xlu1 %v8018_v5, %s6717_s28  ;;  %v8851_v28 = vpop.permute.xlu0 %3952 }
 0x1cb   : > { %v8853_v54 = vpop.permute.xlu1 %3954  ;;  %4148 = vrot.lane.b32.xlu0 %v6906_v9, %s6718_s29 }
 0x1cd   : > { %4150 = vrot.lane.b32.xlu1 %v7180_v17, %s6718_s29  ;;  %v8859_v34 = vpop.permute.xlu0 %3956 }
 0x1cf   : > { %v8861_v60 = vpop.permute.xlu1 %3958  ;;  %4152 = vrot.lane.b32.xlu0 %v7197_v12, %s6718_s29 }
 0x1d0   : > { %12440 = vst [vmem:[#allocation180_spill] sm:$0xff] %v8861_v60 }
 0x1d1   : > { %4154 = vrot.lane.b32.xlu1 %v7027_v27, %s6718_s29  ;;  %v8867_v5 = vpop.permute.xlu0 %3960 }
 0x1d2   : > { %12441 = vst [vmem:[#allocation173_spill] sm:$0xff] %v8867_v5 }
 0x1d3   : > { %v8869_v13 = vpop.permute.xlu1 %3962  ;;  %4156 = vrot.lane.b32.xlu0 %v8072_v42, %s6718_s29 }
 0x1d4   : > { %12442 = vst [vmem:[#allocation182_spill] sm:$0xff] %v8869_v13 }
 0x1d5   : > { %4188 = vrot.lane.b32.xlu1 %v7562_v56, %s6718_s29  ;;  %v8875_v21 = vpop.permute.xlu0 %3964 }
 0x1d6   : > { %12443 = vst [vmem:[#allocation177_spill] sm:$0xff] %v8875_v21 }
 0x1d7   : > { %v8877_v47 = vpop.permute.xlu1 %3966  ;;  %4190 = vrot.lane.b32.xlu0 %v7585_v57, %s6718_s29 }
 0x1d8   : > { %12444 = vst [vmem:[#allocation156_spill] sm:$0xff] %v8877_v47 }
 0x1d9   : > { %4192 = vrot.lane.b32.xlu1 %v7595_v38, %s6718_s29  ;;  %v8883_v60 = vpop.permute.xlu0 %3968 }
 0x1da   : > { %12445 = vst [vmem:[#allocation183_spill] sm:$0xff] %v8883_v60 }
 0x1db   : > { %v8885_v5 = vpop.permute.xlu1 %3970  ;;  %4343 = vrot.lane.b32.xlu0 %v8274_v30, %s6719_s30 }
 0x1dc   : > { %12446 = vst [vmem:[#allocation187_spill] sm:$0xff] %v8885_v5 }
 0x1dd   : > { %4345 = vrot.lane.b32.xlu1 %v8281_v59, %s6719_s30  ;;  %v8891_v21 = vpop.permute.xlu0 %3972 }
 0x1de   : > { %12447 = vst [vmem:[#allocation191_spill] sm:$0xff] %v8891_v21 }
 0x1df   : > { %v8893_v47 = vpop.permute.xlu1 %3974  ;;  %4383 = vrot.lane.b32.xlu0 %v8495_v45, %s6719_s30 }
 0x1e0   : > { %12448 = vst [vmem:[#allocation189_spill] sm:$0xff] %v8893_v47  ;;  %v5633_v47 = vld [vmem:[%s11468_s1] sm:$0xff] }
 0x1e1   : > { %4385 = vrot.lane.b32.xlu1 %v8502_v40, %s6719_s30  ;;  %v8899_v60 = vpop.permute.xlu0 %3976 }
 0x1e2   : > { %12449 = vst [vmem:[#allocation192_spill] sm:$0xff] %v8899_v60  ;;  %v5634_v60 = vld [vmem:[%s11468_s1 + $0x8] sm:$0xff] }
 0x1e3   : > { %v8901_v5 = vpop.permute.xlu1 %3978  ;;  %4347 = vrot.lane.b32.xlu0 %v8294_v58, %s6719_s30 }
 0x1e4   : > { %12450 = vst [vmem:[#allocation190_spill] sm:$0xff] %v8901_v5  ;;  %v6584_v5 = vpack.c.bf16 %v5634_v60, %v5633_v47 }
 0x1e5   : > { %4387 = vrot.lane.b32.xlu1 %v8513_v25, %s6719_s30  ;;  %v8907_v13 = vpop.permute.xlu0 %3980  ;;  %v5636_v25 = vld [vmem:[%s11468_s1 + $0x18] sm:$0xff] }
 0x1e6   : > { %12451 = vst [vmem:[#allocation195_spill] sm:$0xff] %v8907_v13  ;;  %6585 = vmatprep.subr.bf16.mxu0 %v6584_v5  ;;  %6592 = vmatprep.subr.bf16.mxu1 %v6584_v5  ;;  %v5635_v13 = vld [vmem:[%s11468_s1 + $0x10] sm:$0xff] }
 0x1e7   : > { %v8909_v21 = vpop.permute.xlu1 %3982  ;;  %4553 = vrot.lane.b32.xlu0 %v12368_v53, %s6720_s8  ;;  %6587 = vmatpush3.bf16.msra.mxu0 %v6584_v5  ;;  %v6588_v60 = vpack.c.bf16 %v5636_v25, %v5635_v13  ;;  %v5637_v13 = vld [vmem:[%s11468_s1 + $0x20] sm:$0xf] }
 0x1e8   : > { %12452 = vst [vmem:[#allocation193_spill] sm:$0xff] %v8909_v21  ;;  %6595 = vmatpush3.bf16.msra.mxu1 %v6584_v5 }
 0x1e9   : > { %4555 = vrot.lane.b32.xlu1 %v12369_v2, %s6720_s8  ;;  %v8921_v40 = vpop.permute.xlu0 %3984  ;;  %6589 = vmatprep.subr.bf16.mxu0 %v6588_v60 }
 0x1ea   : > { %12453 = vst [vmem:[#allocation197_spill] sm:$0xff] %v8921_v40  ;;  %6593 = vmatprep.subr.bf16.mxu1 %v6588_v60 }
 0x1eb   : > { %v8923_v21 = vpop.permute.xlu1 %3986  ;;  %4593 = vrot.lane.b32.xlu0 %v12408_v62, %s6720_s8  ;;  %6591 = vmatpush3.bf16.msra.mxu0 %v6588_v60 }
 0x1ec   : > { %12454 = vst [vmem:[#allocation186_spill] sm:$0xff] %v8923_v21  ;;  %6596 = vmatpush3.bf16.msra.mxu1 %v6588_v60  ;;  %6486 = vmatprep.subr.msk.mxu0 %vm5774_vm1, %v5637_v13 }
 0x1ed   : > { %4595 = vrot.lane.b32.xlu1 %v12409_v63, %s6720_s8  ;;  %v8935_v47 = vpop.permute.xlu0 %4028  ;;  %6594 = vmatprep.subr.msk.mxu1 %vm5774_vm1, %v5637_v13 }
 0x1ef   : > { %v8937_v53 = vpop.permute.xlu1 %4030  ;;  %4557 = vrot.lane.b32.xlu0 %v12372_v1, %s6720_s8  ;;  %6487 = vmatpush3.msk.msra.mxu0 %vm5774_vm1, %v5637_v13 }
 0x1f0   : > { %6597 = vmatpush3.msk.msra.mxu1 %vm5774_vm1, %v5637_v13 }
 0x1f1   : > { %4597 = vrot.lane.b32.xlu1 %v12412_v0, %s6720_s8  ;;  %v8946_v5 = vpop.permute.xlu0 %4032 }
 0x1f3   : > { %v8948_v25 = vpop.permute.xlu1 %4034  ;;  %4695 = vrot.lane.b32.xlu0 %v6906_v9, %s6721_s22 }
 0x1f5   : > { %4697 = vrot.lane.b32.xlu1 %v7180_v17, %s6721_s22  ;;  %v8954_v1 = vpop.permute.xlu0 %4036 }
 0x1f6   : > { %12455 = vst [vmem:[#allocation201_spill] sm:$0xff] %v8954_v1 }
 0x1f7   : > { %v8956_v0 = vpop.permute.xlu1 %4038  ;;  %4735 = vrot.lane.b32.xlu0 %v7562_v56, %s6721_s22 }
 0x1f8   : > { %12456 = vst [vmem:[#allocation199_spill] sm:$0xff] %v8956_v0 }
 0x1f9   : > { %4737 = vrot.lane.b32.xlu1 %v7585_v57, %s6721_s22  ;;  %v8962_v62 = vpop.permute.xlu0 %4040 }
 0x1fa   : > { %12457 = vst [vmem:[#allocation178_spill] sm:$0xff] %v8962_v62 }
 0x1fb   : > { %v8964_v63 = vpop.permute.xlu1 %4042  ;;  %4194 = vrot.lane.b32.xlu0 %v7636_v39, %s6718_s29 }
 0x1fc   : > { %12458 = vst [vmem:[#allocation205_spill] sm:$0xff] %v8964_v63  ;;  %v12507_v63 = vld [vmem:[#allocation37_spill] sm:$0xff] }
 0x1fd   : > { %4699 = vrot.lane.b32.xlu1 %v7197_v12, %s6721_s22  ;;  %v8970_v9 = vpop.permute.xlu0 %4044 }
 0x1fe   : > { %12459 = vst [vmem:[#allocation20_spill] sm:$0xff] %v8970_v9 }
 0x1ff   : > { %v8972_v17 = vpop.permute.xlu1 %4046  ;;  %4739 = vrot.lane.b32.xlu0 %v7595_v38, %s6721_s22 }
 0x200   : > { %12460 = vst [vmem:[#allocation64_spill] sm:$0xff] %v8972_v17  ;;  %v12504_v17 = vld [vmem:[#allocation36_spill] sm:$0xff] }
 0x201   : > { %4196 = vrot.lane.b32.xlu1 %v8170_v44, %s6718_s29  ;;  %v8978_v56 = vpop.permute.xlu0 %4048 }
 0x202   : > { %12461 = vst [vmem:[#allocation66_spill] sm:$0xff] %v8978_v56  ;;  %v12491_v56 = vld [vmem:[#allocation58_spill] sm:$0xff] }
 0x203   : > { %v8980_v57 = vpop.permute.xlu1 %4050  ;;  %4349 = vrot.lane.b32.xlu0 %v8301_v8, %s6719_s30 }
 0x204   : > { %12462 = vst [vmem:[#allocation67_spill] sm:$0xff] %v8980_v57  ;;  %v12492_v57 = vld [vmem:[#allocation162_spill] sm:$0xff] }
 0x205   : > { %4389 = vrot.lane.b32.xlu1 %v8515_v48, %s6719_s30  ;;  %v8986_v12 = vpop.permute.xlu0 %4052 }
 0x206   : > { %12463 = vst [vmem:[#allocation42_spill] sm:$0xff] %v8986_v12  ;;  %v12490_v12 = vld [vmem:[#allocation166_spill] sm:$0xff] }
 0x207   : > { %v8988_v2 = vpop.permute.xlu1 %4054  ;;  %4351 = vrot.lane.b32.xlu0 %v8313_v20, %s6719_s30 }
 0x208   : > { %12464 = vst [vmem:[#allocation32_spill] sm:$0xff] %v8988_v2 }
 0x209   : > { %4391 = vrot.lane.b32.xlu1 %v8541_v46, %s6719_s30  ;;  %v8994_v38 = vpop.permute.xlu0 %4056  ;;  %v12522_v46 = vld [vmem:[#allocation232_spill] sm:$0xff] }
 0x20a   : > { %12465 = vst [vmem:[#allocation73_spill] sm:$0xff] %v8994_v38 }
 0x20b   : > { %v8996_v60 = vpop.permute.xlu1 %4058  ;;  %4559 = vrot.lane.b32.xlu0 %v12373_v24, %s6720_s8 }
 0x20c   : > { %12466 = vst [vmem:[#allocation81_spill] sm:$0xff] %v8996_v60 }
 0x20d   : > { %4599 = vrot.lane.b32.xlu1 %v12413_v61, %s6720_s8  ;;  %v9002_v13 = vpop.permute.xlu0 %4060 }
 0x20e   : > { %12467 = vst [vmem:[#allocation130_spill] sm:$0xff] %v9002_v13 }
 0x20f   : > { %v9004_v21 = vpop.permute.xlu1 %4062  ;;  %4561 = vrot.lane.b32.xlu0 %v12376_v18, %s6720_s8 }
 0x210   : > { %12468 = vst [vmem:[#allocation136_spill] sm:$0xff] %v9004_v21 }
 0x211   : > { %4601 = vrot.lane.b32.xlu1 %v12416_v49, %s6720_s8  ;;  %v9010_v40 = vpop.permute.xlu0 %4064 }
 0x212   : > { %12469 = vst [vmem:[#allocation137_spill] sm:$0xff] %v9010_v40 }
 0x213   : > { %v9012_v38 = vpop.permute.xlu1 %4066  ;;  %4701 = vrot.lane.b32.xlu0 %v7027_v27, %s6721_s22 }
 0x214   : > { %12470 = vst [vmem:[#allocation147_spill] sm:$0xff] %v9012_v38 }
 0x215   : > { %4741 = vrot.lane.b32.xlu1 %v7636_v39, %s6721_s22  ;;  %v9018_v61 = vpop.permute.xlu0 %4068 }
 0x217   : > { %v9020_v24 = vpop.permute.xlu1 %4070  ;;  %4703 = vrot.lane.b32.xlu0 %v8072_v42, %s6721_s22 }
 0x219   : > { %4743 = vrot.lane.b32.xlu1 %v8170_v44, %s6721_s22  ;;  %v9026_v49 = vpop.permute.xlu0 %4072 }
 0x21b   : > { %v9028_v18 = vpop.permute.xlu1 %4074  ;;  %4353 = vrot.lane.b32.xlu0 %v8325_v4, %s6719_s30 }
 0x21d   : > { %4355 = vrot.lane.b32.xlu1 %v8338_v6, %s6719_s30  ;;  %v9034_v27 = vpop.permute.xlu0 %4076  ;;  %v12501_v6 = vld [vmem:[#allocation10_spill] sm:$0xff] }
 0x21e   : > { %12471 = vst [vmem:[#allocation145_spill] sm:$0xff] %v9034_v27 }
 0x21f   : > { %v9036_v39 = vpop.permute.xlu1 %4078  ;;  %4393 = vrot.lane.b32.xlu0 %v8549_v41, %s6719_s30 }
 0x220   : > { %12472 = vst [vmem:[#allocation155_spill] sm:$0xff] %v9036_v39  ;;  %v12508_v39 = vld [vmem:[#allocation43_spill] sm:$0xff] }
 0x221   : > { %4395 = vrot.lane.b32.xlu1 %v8563_v55, %s6719_s30  ;;  %v9042_v42 = vpop.permute.xlu0 %4080 }
 0x222   : > { %12473 = vst [vmem:[#allocation157_spill] sm:$0xff] %v9042_v42 }
 0x223   : > { %v9044_v44 = vpop.permute.xlu1 %4082  ;;  %4357 = vrot.lane.b32.xlu0 %v8342_v35, %s6719_s30 }
 0x224   : > { %12474 = vst [vmem:[#allocation164_spill] sm:$0xff] %v9044_v44  ;;  %v12506_v44 = vld [vmem:[#allocation38_spill] sm:$0xff] }
 0x225   : > { %4397 = vrot.lane.b32.xlu1 %v8568_v43, %s6719_s30  ;;  %v9050_v38 = vpop.permute.xlu0 %4084  ;;  %v12495_v43 = vld [vmem:[#allocation56_spill] sm:$0xff]  ;;  %v2213_v42 = vcombine.low %v12507_v63, %v12506_v44 }
 0x226   : > { %12475 = vst [vmem:[#allocation185_spill] sm:$0xff] %v9050_v38  ;;  %v12505_v38 = vld [vmem:[#allocation31_spill] sm:$0xff] }
 0x227   : > { %v9052_v40 = vpop.permute.xlu1 %4086  ;;  %4563 = vrot.lane.b32.xlu0 %v12377_v22, %s6720_s8  ;;  %v2197_v9 = vcombine.low %v12505_v38, %v12504_v17 }
 0x228   : > { %12476 = vst [vmem:[#allocation196_spill] sm:$0xff] %v9052_v40  ;;  %v12502_v40 = vld [vmem:[#allocation33_spill] sm:$0xff] }
 0x229   : > { %4565 = vrot.lane.b32.xlu1 %v12380_v16, %s6720_s8  ;;  %v9058_v21 = vpop.permute.xlu0 %4088 }
 0x22a   : > { %12477 = vst [vmem:[#allocation194_spill] sm:$0xff] %v9058_v21 }
 0x22b   : > { %v9060_v13 = vpop.permute.xlu1 %4090  ;;  %4603 = vrot.lane.b32.xlu0 %v12417_v36, %s6720_s8 }
 0x22c   : > { %12478 = vst [vmem:[#allocation250_spill] sm:$0xff] %v9060_v13 }
 0x22d   : > { %4605 = vrot.lane.b32.xlu1 %v12420_v7, %s6720_s8  ;;  %v9066_v60 = vpop.permute.xlu0 %4092 }
 0x22e   : > { %12479 = vst [vmem:[#allocation251_spill] sm:$0xff] %v9066_v60  ;;  %v12489_v60 = vld [vmem:[#allocation80_spill] sm:$0xff] }
 0x22f   : > { %v9068_v2 = vpop.permute.xlu1 %4094  ;;  %4567 = vrot.lane.b32.xlu0 %v12381_v51, %s6720_s8 }
 0x230   : > { %12480 = vst [vmem:[#allocation252_spill] sm:$0xff] %v9068_v2 }
 0x231   : > { %4607 = vrot.lane.b32.xlu1 %v12421_v31, %s6720_s8  ;;  %v9074_v22 = vpop.permute.xlu0 %4096 }
 0x232   : > { %12481 = vst [vmem:[#allocation253_spill] sm:$0xff] %v9074_v22 }
 0x233   : > { %v9076_v16 = vpop.permute.xlu1 %4098  ;;  %4705 = vrot.lane.b32.xlu0 %v6998_v33, %s6721_s22 }
 0x234   : > { %12482 = vst [vmem:[#allocation254_spill] sm:$0xff] %v9076_v16 }
 0x235   : > { %4707 = vrot.lane.b32.xlu1 %v7239_v52, %s6721_s22  ;;  %v9082_v36 = vpop.permute.xlu0 %4100 }
 0x236   : > { %12483 = vst [vmem:[#allocation255_spill] sm:$0xff] %v9082_v36 }
 0x237   : > { %v9084_v7 = vpop.permute.xlu1 %4102  ;;  %4745 = vrot.lane.b32.xlu0 %v7689_v50, %s6721_s22 }
 0x238   : > { %12484 = vst [vmem:[#allocation256_spill] sm:$0xff] %v9084_v7 }
 0x239   : > { %4747 = vrot.lane.b32.xlu1 %v7711_v19, %s6721_s22  ;;  %v9090_v31 = vpop.permute.xlu0 %4104 }
 0x23a   : > { %12485 = vst [vmem:[#allocation257_spill] sm:$0xff] %v9090_v31 }
 0x23b   : > { %v9092_v51 = vpop.permute.xlu1 %4106  ;;  %4709 = vrot.lane.b32.xlu0 %v7279_v14, %s6721_s22 }
 0x23c   : > { %12486 = vst [vmem:[#allocation258_spill] sm:$0xff] %v9092_v51  ;;  %v12487_v51 = vld [vmem:[#allocation95_spill] sm:$0xff] }
 0x23d   : > { %4749 = vrot.lane.b32.xlu1 %v7747_v26, %s6721_s22  ;;  %v9098_v16 = vpop.permute.xlu0 %4148 }
 0x23f   : > { %v9100_v36 = vpop.permute.xlu1 %4150  ;;  %4359 = vrot.lane.b32.xlu0 %v8360_v15, %s6719_s30  ;;  %v12493_v15 = vld [vmem:[#allocation3_spill] sm:$0xff] }
 0x241   : > { %4399 = vrot.lane.b32.xlu1 %v8578_v32, %s6719_s30  ;;  %v9106_v7 = vpop.permute.xlu0 %4152 }
 0x243   : > { %v9108_v31 = vpop.permute.xlu1 %4154  ;;  %4361 = vrot.lane.b32.xlu0 %v8370_v3, %s6719_s30  ;;  %v12494_v3 = vld [vmem:[#allocation5_spill] sm:$0xff] }
 0x245   : > { %4401 = vrot.lane.b32.xlu1 %v12487_v51, %s6719_s30  ;;  %v9114_v22 = vpop.permute.xlu0 %4156 }
 0x246   : > { %12488 = vst [vmem:[#allocation259_spill] sm:$0xff] %v9114_v22 }
 0x247   : > { %v9116_v2 = vpop.permute.xlu1 %4188  ;;  %4569 = vrot.lane.b32.xlu0 %v12489_v60, %s6720_s8  ;;  %v1462_v60 = vrot.slane %v12494_v3, %v12493_v15  ;;  %v12503_v3 = vld [vmem:[#allocation12_spill] sm:$0xff] }
 0x248   : > { %v2196_v15 = vcombine.low %v12503_v3, %v12502_v40 }
 0x249   : > { %4609 = vrot.lane.b32.xlu1 %v12490_v12, %s6720_s8  ;;  %v9122_v13 = vpop.permute.xlu0 %4190  ;;  %v12496_v12 = vld [vmem:[#allocation159_spill] sm:$0xff] }
 0x24b   : > { %v9124_v21 = vpop.permute.xlu1 %4192  ;;  %4571 = vrot.lane.b32.xlu0 %v12491_v56, %s6720_s8  ;;  %v12499_v56 = vld [vmem:[#allocation9_spill] sm:$0xff] }
 0x24c   : > { %v2179_v35 = vcombine.low %v1462_v60, %v12499_v56  ;;  %v12509_v60 = vld [vmem:[#allocation40_spill] sm:$0xff] }
 0x24d   : > { %4611 = vrot.lane.b32.xlu1 %v12492_v57, %s6720_s8  ;;  %v9130_v51 = vpop.permute.xlu0 %4343  ;;  %v12500_v57 = vld [vmem:[#allocation13_spill] sm:$0xff]  ;;  %v2214_v56 = vcombine.low %v12509_v60, %v12508_v39 }
 0x24e   : > { %v2180_v4 = vcombine.low %v12501_v6, %v12500_v57 }
 0x24f   : > { %v9132_v32 = vpop.permute.xlu1 %4345  ;;  %4711 = vrot.lane.b32.xlu0 %v12495_v43, %s6721_s22 }
 0x251   : > { %4751 = vrot.lane.b32.xlu1 %v12496_v12, %s6721_s22  ;;  %v9140_v55 = vpop.permute.xlu0 %4383 }
 0x252   : > { %12497 = vst [vmem:[#allocation80_spill] sm:$0xff] %v9140_v55 }
 0x253   : > { %v9142_v41 = vpop.permute.xlu1 %4385  ;;  %4158 = vrot.lane.b32.xlu0 %v6998_v33, %s6718_s29  ;;  %v12511_v33 = vld [vmem:[#allocation4_spill] sm:$0xff] }
 0x254   : > { %12498 = vst [vmem:[#allocation166_spill] sm:$0xff] %v9142_v41  ;;  %v2187_v57 = vrot.slane %v2179_v35, %v12511_v33  ;;  %v2194_v40 = vrot.slane %v2180_v4, %v12511_v33  ;;  %v2204_v17 = vrot.slane %v2196_v15, %v12511_v33  ;;  %v2221_v63 = vrot.slane %v2213_v42, %v12511_v33  ;;  %v12512_v35 = vld [vmem:[#allocation224_spill] sm:$0xff] }
 0x255   : > { %4160 = vrot.lane.b32.xlu1 %v7239_v52, %s6718_s29  ;;  %v9159_v62 = vpop.permute.xlu0 %4347  ;;  %v2211_v52 = vrot.slane %v2197_v9, %v12511_v33  ;;  %v2228_v38 = vrot.slane %v2214_v56, %v12511_v33  ;;  %v12516_v42 = vld [vmem:[#allocation200_spill] sm:$0xff]  ;;  %v12517_v56 = vld [vmem:[#allocation218_spill] sm:$0xff] }
 0x256   : > { %v2195_v3 = vcombine.low %v2187_v57, %v2194_v40  ;;  %v12518_v40 = vld [vmem:[#allocation65_spill] sm:$0xff] }
 0x257   : > { %v9161_v6 = vpop.permute.xlu1 %4387  ;;  %4198 = vrot.lane.b32.xlu0 %v7689_v50, %s6718_s29  ;;  %v2212_v4 = vcombine.low %v2204_v17, %v2211_v52  ;;  %v12513_v50 = vld [vmem:[#allocation242_spill] sm:$0xff]  ;;  %v2229_v15 = vcombine.low %v2221_v63, %v2228_v38  ;;  %v12519_v52 = vld [vmem:[#allocation217_spill] sm:$0xff]  ;;  %v12520_v38 = vld [vmem:[#allocation68_spill] sm:$0xff] }
 0x258   : > { %12510 = vst [vmem:[#allocation58_spill] sm:$0xff] %v9161_v6  ;;  %v4831_v60 = vsel %vm4830_vm2, %v2195_v3, %v12516_v42  ;;  %v12521_v42 = vld [vmem:[#allocation138_spill] sm:$0xff] }
 0x259   : > { %4200 = vrot.lane.b32.xlu1 %v7711_v19, %s6718_s29  ;;  %v4554_v39 = vpop.permute.xlu0 %4553  ;;  %v4832_v57 = vsel %vm4830_vm2, %v2212_v4, %v12517_v56  ;;  %v4877_v17 = vsel %vm4876_vm3, %v4831_v60, %v12518_v40  ;;  %v4833_v63 = vsel %vm4830_vm2, %v2229_v15, %v12519_v52  ;;  %v12523_v4 = vld [vmem:[#allocation63_spill] sm:$0xff]  ;;  %v12526_v52 = vld [vmem:[#allocation234_spill] sm:$0xff] }
 0x25a   : > { %v4878_v3 = vsel %vm4876_vm3, %v4832_v57, %v12520_v38  ;;  %v4923_v0 = vsel %vm4922_vm4, %v4877_v17, %v12521_v42  ;;  %v4851_v56 = vsel %vm4830_vm2, %v12523_v4, %v12522_v46  ;;  %v12524_v60 = vld [vmem:[#allocation151_spill] sm:$0xff]  ;;  %v12527_v57 = vld [vmem:[#allocation25_spill] sm:$0xff] }
 0x25b   : > { %v4556_v44 = vpop.permute.xlu1 %4555  ;;  %4713 = vrot.lane.b32.xlu0 %v12512_v35, %s6721_s22  ;;  %v4924_v40 = vsel %vm4922_vm4, %v4878_v3, %v12524_v60  ;;  %v4852_v38 = vsel %vm4830_vm2, %v12527_v57, %v12526_v52  ;;  %v12528_v46 = vld [vmem:[#allocation103_spill] sm:$0xff]  ;;  %v12530_v3 = vld [vmem:[#allocation106_spill] sm:$0xff] }
 0x25c   : > { %v5005_v17 = vsel %vm5003_vm5, %v4924_v40, %v8937_v53  ;;  %v9221_v48 = vsel %vm4876_vm3, %v4852_v38, %v12530_v3 }
 0x25d   : > { %4753 = vrot.lane.b32.xlu1 %v12513_v50, %s6721_s22  ;;  %v9177_v9 = vpop.permute.xlu0 %4593  ;;  %12531 = vst [vmem:[#allocation9_spill] sm:$0xff] %v9221_v48  ;;  %v5086_v52 = vsel %vm5084_vm6, %v5005_v17, %v9100_v36 }
 0x25e   : > { %12514 = vst [vmem:[#allocation162_spill] sm:$0xff] %v9177_v9 }
 0x25f   : > { %v9179_v19 = vpop.permute.xlu1 %4595  ;;  %4162 = vrot.lane.b32.xlu0 %v7279_v14, %s6718_s29 }
 0x260   : > { %12515 = vst [vmem:[#allocation5_spill] sm:$0xff] %v9179_v19 }
 0x261   : > { %4202 = vrot.lane.b32.xlu1 %v7747_v26, %s6718_s29  ;;  %v4558_v14 = vpop.permute.xlu0 %4557  ;;  %v5004_v26 = vsel %vm5003_vm5, %v4923_v0, %v8935_v47  ;;  %v9217_v0 = vsel %vm4876_vm3, %v4851_v56, %v12528_v46 }
 0x262   : > { %v5085_v20 = vsel %vm5084_vm6, %v5004_v26, %v9098_v16  ;;  %12529 = vst [vmem:[#allocation159_spill] sm:$0xff] %v9217_v0  ;;  %v4963_v56 = vsel %vm4922_vm4, %v9217_v0, %v8843_v11  ;;  %v5167_v26 = vsel %vm5165_vm7, %v5086_v52, %v9132_v32 }
 0x263   : > { %v9204_v15 = vpop.permute.xlu1 %4597  ;;  %4164 = vrot.lane.b32.xlu0 %v12495_v43, %s6718_s29  ;;  %v5166_v40 = vsel %vm5165_vm7, %v5085_v20, %v9130_v51  ;;  %v4964_v43 = vsel %vm4922_vm4, %v9221_v48, %v8845_v10  ;;  %v5044_v20 = vsel %vm5003_vm5, %v4963_v56, %v9018_v61  ;;  %v5248_v51 = vsel %vm5246_vm8, %v5167_v26, %v4556_v44 }
 0x264   : > { %12525 = vst [vmem:[#allocation56_spill] sm:$0xff] %v9204_v15  ;;  %v5247_v38 = vsel %vm5246_vm8, %v5166_v40, %v4554_v39  ;;  %v5045_v3 = vsel %vm5003_vm5, %v4964_v43, %v9020_v24  ;;  %v5125_v48 = vsel %vm5084_vm6, %v5044_v20, %v9116_v2  ;;  %v12532_v43 = vld [vmem:[#allocation6_spill] sm:$0xff] }
 0x265   : > { %4204 = vrot.lane.b32.xlu1 %v12496_v12, %s6718_s29  ;;  %v4696_v17 = vpop.permute.xlu0 %4695  ;;  %v5126_v39 = vsel %vm5084_vm6, %v5045_v3, %v9122_v13  ;;  %v5206_v44 = vsel %vm5165_vm7, %v5125_v48, %v9140_v55  ;;  %v4879_v56 = vsel %vm4876_vm3, %v4833_v63, %v12532_v43  ;;  %v12538_v43 = vld [vmem:[#allocation23_spill] sm:$0xff] }
 0x266   : > { %v5328_v46 = vsel %vm5327_vm9, %v5247_v38, %v4696_v17  ;;  %v5207_v26 = vsel %vm5165_vm7, %v5126_v39, %v9142_v41  ;;  %v12534_v17 = vld [vmem:[#allocation149_spill] sm:$0xff] }
 0x267   : > { %v4698_v12 = vpop.permute.xlu1 %4697  ;;  %v5489_v52 = vrot.slane %v5328_v46, 1  ;;  %4166 = vrot.lane.b32.xlu0 %v12512_v35, %s6718_s29  ;;  %v5287_v35 = vsel %vm5246_vm8, %v5206_v44, %v9177_v9  ;;  %v4925_v20 = vsel %vm4922_vm4, %v4879_v56, %v12534_v17  ;;  %v5288_v48 = vsel %vm5246_vm8, %v5207_v26, %v9179_v19  ;;  %v12537_v46 = vld [vmem:[#allocation62_spill] sm:$0xff]  ;;  %v12539_v56 = vld [vmem:[#allocation112_spill] sm:$0xff]  ;;  %v12549_v19 = vld [vmem:[#allocation35_spill] sm:$0xff] }
 0x268   : > { %v5329_v32 = vsel %vm5327_vm9, %v5248_v51, %v4698_v12  ;;  %v12536_v12 = vld [vmem:[#allocation235_spill] sm:$0xff] }
 0x269   : > { %v5490_v40 = vrot.slane %v5329_v32, 1  ;;  %4206 = vrot.lane.b32.xlu1 %v12513_v50, %s6718_s29  ;;  %v9261_v38 = vpop.permute.xlu0 %4735  ;;  %v4853_v3 = vsel %vm4830_vm2, %v12537_v46, %v12536_v12  ;;  %v5006_v32 = vsel %vm5003_vm5, %v4925_v20, %v8946_v5  ;;  %v12541_v12 = vld [vmem:[#allocation21_spill] sm:$0xff] }
 0x26a   : > { %12533 = vst [vmem:[#allocation13_spill] sm:$0xff] %v9261_v38  ;;  %v5368_v50 = vsel %vm5327_vm9, %v5287_v35, %v9261_v38  ;;  %v9284_v26 = vsel %vm4876_vm3, %v4853_v3, %v12539_v56  ;;  %v12548_v38 = vld [vmem:[#allocation39_spill] sm:$0xff] }
 0x26b   : > { %v9267_v51 = vpop.permute.xlu1 %4737  ;;  %v5491_v63 = vsel %vm5488_vm10, %v5489_v52, %v5490_v40  ;;  %v5561_v44 = vrot.slane %v5368_v50, 1  ;;  %4363 = vrot.lane.b32.xlu0 %v12538_v43, %s6719_s30  ;;  %12540 = vst [vmem:[#allocation33_spill] sm:$0xff] %v9284_v26  ;;  %v5087_v52 = vsel %vm5084_vm6, %v5006_v32, %v9106_v7  ;;  %v4965_v20 = vsel %vm4922_vm4, %v9284_v26, %v8851_v28  ;;  %v12573_v43 = vld [vmem:[#allocation47_spill] sm:$0xff] }
 0x26c   : > { %12535 = vst [vmem:[#allocation10_spill] sm:$0xff] %v9267_v51  ;;  %v5369_v39 = vsel %vm5327_vm9, %v5288_v48, %v9267_v51  ;;  %6488 = vmatprep.mubr.msk.f32.mxu0 %vm5645_vm11, %v5491_v63  ;;  %v5168_v48 = vsel %vm5165_vm7, %v5087_v52, %v9159_v62  ;;  %v5046_v63 = vsel %vm5003_vm5, %v4965_v20, %v9026_v49  ;;  %v12542_v62 = vld [vmem:[#allocation98_spill] sm:$0xff] }
 0x26d   : > { %v5562_v35 = vrot.slane %v5369_v39, 1  ;;  %4365 = vrot.lane.b32.xlu1 %v12541_v12, %s6719_s30  ;;  %v9295_v50 = vpop.permute.xlu0 %4194  ;;  %v5249_v3 = vsel %vm5246_vm8, %v5168_v48, %v4558_v14  ;;  %v5127_v39 = vsel %vm5084_vm6, %v5046_v63, %v9124_v21  ;;  %v12543_v14 = vld [vmem:[#allocation100_spill] sm:$0xff]  ;;  %v2231_v9 = vcombine.low %v12549_v19, %v12548_v38 }
 0x26e   : > { %v5208_v52 = vsel %vm5165_vm7, %v5127_v39, %v9161_v6  ;;  %v12547_v39 = vld [vmem:[#allocation41_spill] sm:$0xff] }
 0x26f   : > { %v4700_v56 = vpop.permute.xlu1 %4699  ;;  %v5563_v32 = vsel %vm5488_vm10, %v5561_v44, %v5562_v35  ;;  %4403 = vrot.lane.b32.xlu0 %v12542_v62, %s6719_s30  ;;  %v5289_v44 = vsel %vm5246_vm8, %v5208_v52, %v9204_v15  ;;  %v12550_v15 = vld [vmem:[#allocation19_spill] sm:$0xff]  ;;  %v2245_v38 = vrot.slane %v2231_v9, %v12511_v33  ;;  %v12559_v9 = vld [vmem:[#allocation26_spill] sm:$0xff] }
 0x270   : > { %v9304_v51 = vsel %vm5327_vm9, %v5249_v3, %v4700_v56  ;;  %6536 = vmatprep.mubr.msk.f32.mxu1 %vm5645_vm11, %v5563_v32  ;;  %v12546_v32 = vld [vmem:[#allocation34_spill] sm:$0xff]  ;;  %v2253_v26 = vrot.slane %v12559_v9, %v12511_v33  ;;  %v12567_v9 = vld [vmem:[#allocation152_spill] sm:$0xff] }
 0x271   : > { %v11878_v20 = vrot.slane %v9304_v51, 1  ;;  %4405 = vrot.lane.b32.xlu1 %v12543_v14, %s6719_s30  ;;  %v9316_v48 = vpop.permute.xlu0 %4739  ;;  %v2230_v6 = vcombine.low %v12547_v39, %v12546_v32  ;;  %v12554_v32 = vld [vmem:[#allocation86_spill] sm:$0xff]  ;;  %v12562_v14 = vld [vmem:[#allocation236_spill] sm:$0xff] }
 0x272   : > { %12544 = vst [vmem:[#allocation12_spill] sm:$0xff] %v9316_v48  ;;  %v9322_v3 = vsel %vm5327_vm9, %v5289_v44, %v9316_v48  ;;  %v12551_v44 = vld [vmem:[#allocation104_spill] sm:$0xff] }
 0x273   : > { %v9318_v63 = vpop.permute.xlu1 %4196  ;;  %v5493_v56 = vsel %vm5488_vm10, %v5490_v40, %v11878_v20  ;;  %v11881_v52 = vrot.slane %v9322_v3, 1  ;;  %4367 = vrot.lane.b32.xlu0 %v12550_v15, %s6719_s30  ;;  %v2238_v19 = vrot.slane %v2230_v6, %v12511_v33  ;;  %v12572_v15 = vld [vmem:[#allocation18_spill] sm:$0xff] }
 0x274   : > { %12545 = vst [vmem:[#allocation36_spill] sm:$0xff] %v9318_v63  ;;  %6489 = vmatmul.mubr.msk.f32.vlgmr.msra.gmra.mrb[0].mxu0 %vm5645_vm11, %v5493_v56  ;;  %v12553_v56 = vld [vmem:[#allocation27_spill] sm:$0xff] }
 0x275   : > { %4407 = vrot.lane.b32.xlu1 %v12551_v44, %s6719_s30  ;;  %v4350_v48 = vpop.permute.xlu0 %4349  ;;  %v5565_v40 = vsel %vm5488_vm10, %v5562_v35, %v11881_v52  ;;  %v2246_v55 = vcombine.low %v2238_v19, %v2245_v38  ;;  %v12556_v35 = vld [vmem:[#allocation176_spill] sm:$0xff]  ;;  %v12563_v19 = vld [vmem:[#allocation46_spill] sm:$0xff] }
 0x276   : > { %6537 = vmatmul.mubr.msk.f32.vlgmr.msra.gmra.mrb[0].mxu1 %vm5645_vm11, %v5565_v40  ;;  %v12557_v52 = vld [vmem:[#allocation184_spill] sm:$0xff]  ;;  %v4854_v38 = vsel %vm4830_vm2, %v12563_v19, %v12562_v14  ;;  %v12577_v19 = vld [vmem:[#allocation150_spill] sm:$0xff] }
 0x277   : > { %v9340_v20 = vpop.permute.xlu1 %4389  ;;  %4573 = vrot.lane.b32.xlu0 %v12553_v56, %s6720_s8  ;;  %v12560_v56 = vld [vmem:[#allocation219_spill] sm:$0xff] }
 0x278   : > { %12552 = vst [vmem:[#allocation31_spill] sm:$0xff] %v9340_v20  ;;  %v4834_v0 = vsel %vm4830_vm2, %v2246_v55, %v12560_v56 }
 0x279   : > { %4575 = vrot.lane.b32.xlu1 %v12554_v32, %s6720_s8  ;;  %v4352_v39 = vpop.permute.xlu0 %4351  ;;  %v12561_v32 = vld [vmem:[#allocation88_spill] sm:$0xff] }
 0x27b   : > { %v9349_v41 = vpop.permute.xlu1 %4391  ;;  %4613 = vrot.lane.b32.xlu0 %v12556_v35, %s6720_s8  ;;  %v12564_v35 = vld [vmem:[#allocation45_spill] sm:$0xff] }
 0x27c   : > { %12555 = vst [vmem:[#allocation38_spill] sm:$0xff] %v9349_v41  ;;  %v4880_v44 = vsel %vm4876_vm3, %v4834_v0, %v12564_v35  ;;  %v12569_v0 = vld [vmem:[#allocation214_spill] sm:$0xff] }
 0x27d   : > { %4615 = vrot.lane.b32.xlu1 %v12557_v52, %s6720_s8  ;;  %v4560_v40 = vpop.permute.xlu0 %4559  ;;  %v12565_v52 = vld [vmem:[#allocation120_spill] sm:$0xff]  ;;  %v4926_v55 = vsel %vm4922_vm4, %v4880_v44, %v12567_v9 }
 0x27e   : > { %v9372_v62 = vsel %vm4876_vm3, %v4854_v38, %v12565_v52  ;;  %v5007_v14 = vsel %vm5003_vm5, %v4926_v55, %v8948_v25  ;;  %v12570_v44 = vld [vmem:[#allocation24_spill] sm:$0xff]  ;;  %v12571_v52 = vld [vmem:[#allocation237_spill] sm:$0xff] }
 0x27f   : > { %v9355_v6 = vpop.permute.xlu1 %4599  ;;  %4577 = vrot.lane.b32.xlu0 %v12561_v32, %s6720_s8  ;;  %12566 = vst [vmem:[#allocation43_spill] sm:$0xff] %v9372_v62  ;;  %v4966_v32 = vsel %vm4922_vm4, %v9372_v62, %v8853_v54  ;;  %v5088_v35 = vsel %vm5084_vm6, %v5007_v14, %v9108_v31  ;;  %v4855_v62 = vsel %vm4830_vm2, %v12572_v15, %v12571_v52  ;;  %v12598_v15 = vld [vmem:[#allocation221_spill] sm:$0xff] }
 0x280   : > { %12558 = vst [vmem:[#allocation37_spill] sm:$0xff] %v9355_v6  ;;  %v5047_v38 = vsel %vm5003_vm5, %v4966_v32, %v9028_v18  ;;  %v12574_v32 = vld [vmem:[#allocation82_spill] sm:$0xff] }
 0x281   : > { %4617 = vrot.lane.b32.xlu1 %v12432_v37, %s6720_s8  ;;  %v4562_v56 = vpop.permute.xlu0 %4561  ;;  %v4835_v37 = vsel %vm4830_vm2, %v2253_v26, %v12569_v0  ;;  %v5128_v33 = vsel %vm5084_vm6, %v5047_v38, %v9295_v50  ;;  %v5169_v26 = vsel %vm5165_vm7, %v5088_v35, %v4350_v48  ;;  %v12575_v0 = vld [vmem:[#allocation122_spill] sm:$0xff] }
 0x282   : > { %v4881_v55 = vsel %vm4876_vm3, %v4835_v37, %v12573_v43  ;;  %v9403_v14 = vsel %vm4876_vm3, %v4855_v62, %v12575_v0  ;;  %v5209_v52 = vsel %vm5165_vm7, %v5128_v33, %v9340_v20  ;;  %v5250_v43 = vsel %vm5246_vm8, %v5169_v26, %v4560_v40  ;;  %v12579_v20 = vld [vmem:[#allocation175_spill] sm:$0xff] }
 0x283   : > { %v9381_v12 = vpop.permute.xlu1 %4601  ;;  %4715 = vrot.lane.b32.xlu0 %v12570_v44, %s6721_s22  ;;  %12576 = vst [vmem:[#allocation224_spill] sm:$0xff] %v9403_v14  ;;  %v4927_v46 = vsel %vm4922_vm4, %v4881_v55, %v12577_v19  ;;  %v4967_v48 = vsel %vm4922_vm4, %v9403_v14, %v8859_v34  ;;  %v5290_v62 = vsel %vm5246_vm8, %v5209_v52, %v9355_v6  ;;  %v12594_v14 = vld [vmem:[#allocation220_spill] sm:$0xff] }
 0x284   : > { %12568 = vst [vmem:[#allocation40_spill] sm:$0xff] %v9381_v12  ;;  %v5008_v38 = vsel %vm5003_vm5, %v4927_v46, %v8954_v1  ;;  %v5048_v33 = vsel %vm5003_vm5, %v4967_v48, %v9034_v27  ;;  %v12602_v27 = vld [vmem:[#allocation240_spill] sm:$0xff]  ;;  %v12603_v1 = vld [vmem:[#allocation14_spill] sm:$0xff] }
 0x285   : > { %4717 = vrot.lane.b32.xlu1 %v12574_v32, %s6721_s22  ;;  %v4702_v37 = vpop.permute.xlu0 %4701  ;;  %v5089_v40 = vsel %vm5084_vm6, %v5008_v38, %v9114_v22  ;;  %v5129_v46 = vsel %vm5084_vm6, %v5048_v33, %v9318_v63  ;;  %v12601_v63 = vld [vmem:[#allocation70_spill] sm:$0xff] }
 0x286   : > { %v5331_v55 = vsel %vm5327_vm9, %v5250_v43, %v4702_v37  ;;  %v5170_v52 = vsel %vm5165_vm7, %v5089_v40, %v4352_v39  ;;  %v12580_v43 = vld [vmem:[#allocation179_spill] sm:$0xff]  ;;  %v5210_v37 = vsel %vm5165_vm7, %v5129_v46, %v9349_v41  ;;  %v12583_v40 = vrot.slane %v9322_v3, 1  ;;  %v12592_v41 = vld [vmem:[#allocation202_spill] sm:$0xff] }
 0x287   : > { %v9417_v35 = vpop.permute.xlu1 %4741  ;;  %v5494_v0 = vrot.slane %v5331_v55, 1  ;;  %4755 = vrot.lane.b32.xlu0 %v12579_v20, %s6721_s22  ;;  %v5251_v48 = vsel %vm5246_vm8, %v5170_v52, %v4562_v56 }
 0x288   : > { %12578 = vst [vmem:[#allocation242_spill] sm:$0xff] %v9417_v35  ;;  %v5371_v26 = vsel %vm5327_vm9, %v5290_v62, %v9417_v35  ;;  %v12581_v62 = vrot.slane %v9304_v51, 1  ;;  %v5291_v35 = vsel %vm5246_vm8, %v5210_v37, %v9381_v12  ;;  %v12584_v51 = vld [vmem:[#allocation84_spill] sm:$0xff]  ;;  %v12585_v37 = vld [vmem:[#allocation181_spill] sm:$0xff] }
 0x289   : > { %v5566_v6 = vrot.slane %v5371_v26, 1  ;;  %4757 = vrot.lane.b32.xlu1 %v12580_v43, %s6721_s22  ;;  %v4704_v38 = vpop.permute.xlu0 %4703 }
 0x28a   : > { %v5495_v55 = vsel %vm5488_vm10, %v12581_v62, %v5494_v0  ;;  %v5332_v39 = vsel %vm5327_vm9, %v5251_v48, %v4704_v38  ;;  %v12586_v62 = vld [vmem:[#allocation61_spill] sm:$0xff] }
 0x28b   : > { %v9441_v33 = vpop.permute.xlu1 %4743  ;;  %6491 = vmatprep.mubr.msk.f32.mxu0 %vm5645_vm11, %v5495_v55  ;;  %v5567_v26 = vsel %vm5488_vm10, %v12583_v40, %v5566_v6  ;;  %v5496_v46 = vrot.slane %v5332_v39, 1  ;;  %4719 = vrot.lane.b32.xlu0 %v12584_v51, %s6721_s22  ;;  %v12587_v55 = vld [vmem:[#allocation102_spill] sm:$0xff] }
 0x28c   : > { %12582 = vst [vmem:[#allocation200_spill] sm:$0xff] %v9441_v33  ;;  %v5372_v56 = vsel %vm5327_vm9, %v5291_v35, %v9441_v33  ;;  %6539 = vmatprep.mubr.msk.f32.mxu1 %vm5645_vm11, %v5567_v26  ;;  %v12589_v26 = vld [vmem:[#allocation107_spill] sm:$0xff] }
 0x28d   : > { %v5568_v52 = vrot.slane %v5372_v56, 1  ;;  %4759 = vrot.lane.b32.xlu1 %v12585_v37, %s6721_s22  ;;  %v9455_v48 = vpop.permute.xlu0 %4353  ;;  %v5497_v38 = vsel %vm5488_vm10, %v5494_v0, %v5496_v46  ;;  %v12588_v0 = vld [vmem:[#allocation60_spill] sm:$0xff]  ;;  %v12590_v46 = vld [vmem:[#allocation99_spill] sm:$0xff] }
 0x28e   : > { %6492 = vmatmul.mubr.msk.f32.gmra.mrb[2].mxu0 %vm5645_vm11, %v5497_v38 }
 0x28f   : > { %v9458_v3 = vpop.permute.xlu1 %4355  ;;  %v5569_v35 = vsel %vm5488_vm10, %v5566_v6, %v5568_v52  ;;  %4369 = vrot.lane.b32.xlu0 %v12586_v62, %s6719_s30 }
 0x290   : > { %6540 = vmatmul.mubr.msk.f32.gmra.mrb[2].mxu1 %vm5645_vm11, %v5569_v35  ;;  %v12591_v35 = vld [vmem:[#allocation97_spill] sm:$0xff] }
 0x291   : > { %4409 = vrot.lane.b32.xlu1 %v12587_v55, %s6719_s30  ;;  %v9467_v39 = vpop.permute.xlu0 %4393  ;;  %v4837_v55 = vsel %vm4830_vm2, %v8281_v59, %v12594_v14  ;;  %v4838_v59 = vsel %vm4830_vm2, %v8294_v58, %v12598_v15  ;;  %v12599_v14 = vld [vmem:[#allocation239_spill] sm:$0xff]  ;;  %v4857_v58 = vsel %vm4830_vm2, %v12603_v1, %v12602_v27 }
 0x292   : > { %v12606_v27 = vld [vmem:[#allocation123_spill] sm:$0xff] }
 0x293   : > { %v9469_v40 = vpop.permute.xlu1 %4395  ;;  %4371 = vrot.lane.b32.xlu0 %v12588_v0, %s6719_s30  ;;  %v12597_v0 = vld [vmem:[#allocation16_spill] sm:$0xff] }
 0x294   : > { %v9511_v62 = vsel %vm4876_vm3, %v4837_v55, %v12597_v0 }
 0x295   : > { %4411 = vrot.lane.b32.xlu1 %v12589_v26, %s6719_s30  ;;  %v9475_v56 = vpop.permute.xlu0 %4357  ;;  %v12595_v26 = vld [vmem:[#allocation15_spill] sm:$0xff] }
 0x297   : > { %v9477_v6 = vpop.permute.xlu1 %4397  ;;  %4579 = vrot.lane.b32.xlu0 %v12590_v46, %s6720_s8  ;;  %v4836_v46 = vsel %vm4830_vm2, %v8274_v30, %v12592_v41 }
 0x299   : > { %4619 = vrot.lane.b32.xlu1 %v12433_v23, %s6720_s8  ;;  %v9483_v52 = vpop.permute.xlu0 %4563  ;;  %v12593_v23 = vld [vmem:[#allocation91_spill] sm:$0xff] }
 0x29b   : > { %v9485_v38 = vpop.permute.xlu1 %4565  ;;  %4581 = vrot.lane.b32.xlu0 %v12591_v35, %s6720_s8  ;;  %v9505_v35 = vsel %vm4876_vm3, %v4836_v46, %v12595_v26  ;;  %v4856_v26 = vsel %vm4830_vm2, %v8495_v45, %v12599_v14  ;;  %v4929_v46 = vsel %vm4922_vm4, %v9511_v62, %v12524_v60 }
 0x29c   : > { %v4928_v30 = vsel %vm4922_vm4, %v9505_v35, %v12521_v42  ;;  %v12600_v42 = vld [vmem:[#allocation241_spill] sm:$0xff]  ;;  %v5010_v45 = vsel %vm5003_vm5, %v4929_v46, %v8937_v53 }
 0x29d   : > { %4621 = vrot.lane.b32.xlu1 %v12436_v29, %s6720_s8  ;;  %v9491_v33 = vpop.permute.xlu0 %4603  ;;  %v12596_v29 = vld [vmem:[#allocation188_spill] sm:$0xff]  ;;  %v5009_v55 = vsel %vm5003_vm5, %v4928_v30, %v8935_v47  ;;  %v4858_v22 = vsel %vm4830_vm2, %v12601_v63, %v12600_v42  ;;  %v12604_v47 = vld [vmem:[#allocation69_spill] sm:$0xff]  ;;  %v5091_v1 = vsel %vm5084_vm6, %v5010_v45, %v9100_v36 }
 0x29e   : > { %v5090_v15 = vsel %vm5084_vm6, %v5009_v55, %v9098_v16  ;;  %v9545_v60 = vsel %vm4876_vm3, %v4838_v59, %v12604_v47  ;;  %v12605_v30 = vld [vmem:[#allocation116_spill] sm:$0xff]  ;;  %v9559_v16 = vsel %vm4876_vm3, %v4857_v58, %v12606_v27  ;;  %v5172_v59 = vsel %vm5165_vm7, %v5091_v1, %v9458_v3 }
 0x29f   : > { %v9493_v12 = vpop.permute.xlu1 %4605  ;;  %4721 = vrot.lane.b32.xlu0 %v12593_v23, %s6721_s22  ;;  %v9549_v63 = vsel %vm4876_vm3, %v4856_v26, %v12605_v30  ;;  %v5171_v53 = vsel %vm5165_vm7, %v5090_v15, %v9455_v48  ;;  %v5253_v46 = vsel %vm5246_vm8, %v5172_v59, %v9485_v38 }
 0x2a0   : > { %v5252_v36 = vsel %vm5246_vm8, %v5171_v53, %v9483_v52 }
 0x2a1   : > { %4761 = vrot.lane.b32.xlu1 %v12596_v29, %s6721_s22  ;;  %v9516_v41 = vpop.permute.xlu0 %4567 }
 0x2a3   : > { %v9529_v0 = vpop.permute.xlu1 %4607  ;;  %4168 = vrot.lane.b32.xlu0 %v12570_v44, %s6718_s29  ;;  %v4968_v44 = vsel %vm4922_vm4, %v9549_v63, %v8843_v11 }
 0x2a4   : > { %v5049_v26 = vsel %vm5003_vm5, %v4968_v44, %v9018_v61  ;;  %v12607_v61 = vld [vmem:[#allocation126_spill] sm:$0xff] }
 0x2a5   : > { %4170 = vrot.lane.b32.xlu1 %v12574_v32, %s6718_s29  ;;  %v9568_v14 = vpop.permute.xlu0 %4705  ;;  %v4969_v32 = vsel %vm4922_vm4, %v9559_v16, %v8845_v10  ;;  %v5130_v58 = vsel %vm5084_vm6, %v5049_v26, %v9116_v2  ;;  %v9591_v15 = vsel %vm4876_vm3, %v4858_v22, %v12607_v61  ;;  %v4930_v2 = vsel %vm4922_vm4, %v9545_v60, %v12534_v17 }
 0x2a6   : > { %v5333_v11 = vsel %vm5327_vm9, %v5252_v36, %v9568_v14  ;;  %v5050_v42 = vsel %vm5003_vm5, %v4969_v32, %v9020_v24  ;;  %v5211_v24 = vsel %vm5165_vm7, %v5130_v58, %v9467_v39  ;;  %v5011_v53 = vsel %vm5003_vm5, %v4930_v2, %v8946_v5  ;;  %v12608_v32 = vld [vmem:[#allocation229_spill] sm:$0xff] }
 0x2a7   : > { %v9577_v55 = vpop.permute.xlu1 %4707  ;;  %v5498_v45 = vrot.slane %v5333_v11, 1  ;;  %4208 = vrot.lane.b32.xlu0 %v12579_v20, %s6718_s29  ;;  %v5131_v47 = vsel %vm5084_vm6, %v5050_v42, %v9122_v13  ;;  %v4970_v20 = vsel %vm4922_vm4, %v9591_v15, %v8851_v28  ;;  %v5292_v13 = vsel %vm5246_vm8, %v5211_v24, %v9491_v33 }
 0x2a8   : > { %v5334_v10 = vsel %vm5327_vm9, %v5253_v46, %v9577_v55  ;;  %v5212_v22 = vsel %vm5165_vm7, %v5131_v47, %v9469_v40  ;;  %v5051_v44 = vsel %vm5003_vm5, %v4970_v20, %v9026_v49  ;;  %v5092_v59 = vsel %vm5084_vm6, %v5011_v53, %v9106_v7  ;;  %v12609_v49 = vld [vmem:[#allocation247_spill] sm:$0xff] }
 0x2a9   : > { %v5499_v30 = vrot.slane %v5334_v10, 1  ;;  %4210 = vrot.lane.b32.xlu1 %v12580_v43, %s6718_s29  ;;  %v9609_v1 = vpop.permute.xlu0 %4745  ;;  %v5293_v43 = vsel %vm5246_vm8, %v5212_v22, %v9493_v12  ;;  %v5132_v26 = vsel %vm5084_vm6, %v5051_v44, %v9124_v21  ;;  %v5173_v46 = vsel %vm5165_vm7, %v5092_v59, %v9475_v56  ;;  %v12613_v59 = vld [vmem:[#allocation71_spill] sm:$0xff] }
 0x2aa   : > { %v5373_v17 = vsel %vm5327_vm9, %v5292_v13, %v9609_v1  ;;  %v5213_v7 = vsel %vm5165_vm7, %v5132_v26, %v9477_v6  ;;  %v5254_v42 = vsel %vm5246_vm8, %v5173_v46, %v9516_v41 }
 0x2ab   : > { %v9615_v27 = vpop.permute.xlu1 %4747  ;;  %v5500_v28 = vsel %vm5488_vm10, %v5498_v45, %v5499_v30  ;;  %v5570_v5 = vrot.slane %v5373_v17, 1  ;;  %4723 = vrot.lane.b32.xlu0 %v12608_v32, %s6721_s22  ;;  %v5294_v10 = vsel %vm5246_vm8, %v5213_v7, %v9529_v0  ;;  %v12610_v17 = vld [vmem:[#allocation222_spill] sm:$0xff]  ;;  %v12615_v7 = vld [vmem:[#allocation79_spill] sm:$0xff] }
 0x2ac   : > { %v5374_v36 = vsel %vm5327_vm9, %v5293_v43, %v9615_v27  ;;  %6494 = vmatprep.mubr.msk.f32.mxu0 %vm5645_vm11, %v5500_v28  ;;  %v12612_v28 = vld [vmem:[#allocation74_spill] sm:$0xff] }
 0x2ad   : > { %v5571_v11 = vrot.slane %v5374_v36, 1  ;;  %4763 = vrot.lane.b32.xlu1 %v12609_v49, %s6721_s22  ;;  %v9639_v58 = vpop.permute.xlu0 %4709 }
 0x2ae   : > { %v5335_v21 = vsel %vm5327_vm9, %v5254_v42, %v9639_v58  ;;  %v12616_v42 = vld [vmem:[#allocation115_spill] sm:$0xff] }
 0x2af   : > { %v9643_v45 = vpop.permute.xlu1 %4749  ;;  %v5572_v61 = vsel %vm5488_vm10, %v5570_v5, %v5571_v11  ;;  %v5501_v24 = vrot.slane %v5335_v21, 1  ;;  %4172 = vrot.lane.b32.xlu0 %v12584_v51, %s6718_s29  ;;  %v12614_v5 = vld [vmem:[#allocation125_spill] sm:$0xff] }
 0x2b0   : > { %v9650_v47 = vsel %vm5327_vm9, %v5294_v10, %v9643_v45  ;;  %6542 = vmatprep.mubr.msk.f32.mxu1 %vm5645_vm11, %v5572_v61 }
 0x2b1   : > { %v5573_v2 = vrot.slane %v9650_v47, 1  ;;  %4212 = vrot.lane.b32.xlu1 %v12585_v37, %s6718_s29  ;;  %v9658_v20 = vpop.permute.xlu0 %4359  ;;  %v5502_v22 = vsel %vm5488_vm10, %v5499_v30, %v5501_v24 }
 0x2b2   : > { %6495 = vmatmul.mubr.msk.f32.gmra.mrb[4].mxu0 %vm5645_vm11, %v5502_v22  ;;  %v12617_v22 = vld [vmem:[#allocation62_spill] sm:$0xff] }
 0x2b3   : > { %v9661_v13 = vpop.permute.xlu1 %4399  ;;  %v5574_v53 = vsel %vm5488_vm10, %v5571_v11, %v5573_v2  ;;  %4174 = vrot.lane.b32.xlu0 %v12593_v23, %s6718_s29  ;;  %v4839_v23 = vsel %vm4830_vm2, %v8301_v8, %v12610_v17  ;;  %v12619_v17 = vld [vmem:[#allocation49_spill] sm:$0xff] }
 0x2b4   : > { %6543 = vmatmul.mubr.msk.f32.gmra.mrb[4].mxu1 %vm5645_vm11, %v5574_v53  ;;  %v9692_v36 = vsel %vm4876_vm3, %v4839_v23, %v12613_v59  ;;  %v12618_v53 = vld [vmem:[#allocation215_spill] sm:$0xff]  ;;  %v12622_v59 = vld [vmem:[#allocation154_spill] sm:$0xff] }
 0x2b5   : > { %4214 = vrot.lane.b32.xlu1 %v12596_v29, %s6718_s29  ;;  %v9670_v51 = vpop.permute.xlu0 %4361  ;;  %v12611_v29 = vld [vmem:[#allocation243_spill] sm:$0xff]  ;;  %v4931_v8 = vsel %vm4922_vm4, %v9692_v36, %v12567_v9  ;;  %v4840_v23 = vsel %vm4830_vm2, %v12619_v17, %v12618_v53  ;;  %v12628_v53 = vld [vmem:[#allocation178_spill] sm:$0xff] }
 0x2b6   : > { %v4859_v44 = vsel %vm4830_vm2, %v12612_v28, %v12611_v29  ;;  %v5012_v46 = vsel %vm5003_vm5, %v4931_v8, %v8948_v25  ;;  %v12620_v29 = vld [vmem:[#allocation244_spill] sm:$0xff] }
 0x2b7   : > { %v9672_v37 = vpop.permute.xlu1 %4401  ;;  %4176 = vrot.lane.b32.xlu0 %v12608_v32, %s6718_s29  ;;  %v9698_v32 = vsel %vm4876_vm3, %v4859_v44, %v12614_v5  ;;  %v12621_v28 = vld [vmem:[#allocation76_spill] sm:$0xff]  ;;  %v4933_v5 = vsel %vm4922_vm4, %v9505_v35, %v12622_v59 }
 0x2b8   : > { %v4971_v26 = vsel %vm4922_vm4, %v9698_v32, %v8853_v54  ;;  %v4860_v44 = vsel %vm4830_vm2, %v12621_v28, %v12620_v29 }
 0x2b9   : > { %4216 = vrot.lane.b32.xlu1 %v12609_v49, %s6718_s29  ;;  %v9678_v30 = vpop.permute.xlu0 %4569  ;;  %v5093_v49 = vsel %vm5084_vm6, %v5012_v46, %v9108_v31  ;;  %v12624_v46 = vld [vmem:[#allocation72_spill] sm:$0xff] }
 0x2ba   : > { %v5174_v54 = vsel %vm5165_vm7, %v5093_v49, %v9658_v20  ;;  %v12625_v49 = vld [vmem:[#allocation153_spill] sm:$0xff] }
 0x2bb   : > { %v9680_v43 = vpop.permute.xlu1 %4609  ;;  %4373 = vrot.lane.b32.xlu0 %v12523_v4, %s6719_s30 }
 0x2bd   : > { %4375 = vrot.lane.b32.xlu1 %v12527_v57, %s6719_s30  ;;  %v9703_v4 = vpop.permute.xlu0 %4571  ;;  %v5052_v57 = vsel %vm5003_vm5, %v4971_v26, %v9028_v18  ;;  %v5255_v18 = vsel %vm5246_vm8, %v5174_v54, %v9678_v30  ;;  %v12623_v26 = vld [vmem:[#allocation118_spill] sm:$0xff]  ;;  %v12626_v54 = vld [vmem:[#allocation199_spill] sm:$0xff] }
 0x2be   : > { %v5133_v9 = vsel %vm5084_vm6, %v5052_v57, %v9295_v50  ;;  %v9759_v57 = vsel %vm4876_vm3, %v4840_v23, %v12624_v46  ;;  %v12630_v46 = vld [vmem:[#allocation180_spill] sm:$0xff] }
 0x2bf   : > { %v9710_v11 = vpop.permute.xlu1 %4611  ;;  %4413 = vrot.lane.b32.xlu0 %v12615_v7, %s6719_s30  ;;  %v5214_v25 = vsel %vm5165_vm7, %v5133_v9, %v9661_v13  ;;  %v4934_v9 = vsel %vm4922_vm4, %v9511_v62, %v12625_v49  ;;  %v12681_v7 = vld [vmem:[#allocation248_spill] sm:$0xff] }
 0x2c0   : > { %v5295_v31 = vsel %vm5246_vm8, %v5214_v25, %v9680_v43  ;;  %v5014_v25 = vsel %vm5003_vm5, %v4933_v5, %v12626_v54  ;;  %v5015_v17 = vsel %vm5003_vm5, %v4934_v9, %v12628_v53  ;;  %v12629_v5 = vld [vmem:[#allocation109_spill] sm:$0xff]  ;;  %v4973_v9 = vsel %vm4922_vm4, %v9549_v63, %v12630_v46 }
 0x2c1   : > { %4415 = vrot.lane.b32.xlu1 %v12616_v42, %s6719_s30  ;;  %v9728_v10 = vpop.permute.xlu0 %4711 }
 0x2c2   : > { %v9736_v50 = vsel %vm5327_vm9, %v5255_v18, %v9728_v10 }
 0x2c3   : > { %v9732_v21 = vpop.permute.xlu1 %4751  ;;  %v5503_v47 = vrot.slane %v9736_v50, 1  ;;  %4377 = vrot.lane.b32.xlu0 %v12617_v22, %s6719_s30 }
 0x2c4   : > { %v9740_v61 = vsel %vm5327_vm9, %v5295_v31, %v9732_v21  ;;  %v12627_v31 = vld [vmem:[#allocation129_spill] sm:$0xff] }
 0x2c5   : > { %v11897_v8 = vrot.slane %v9740_v61, 1  ;;  %4417 = vrot.lane.b32.xlu1 %v12623_v26, %s6719_s30  ;;  %v9766_v18 = vpop.permute.xlu0 %4158  ;;  %v5504_v35 = vsel %vm5488_vm10, %v5501_v24, %v5503_v47  ;;  %v9773_v22 = vsel %vm4876_vm3, %v4860_v44, %v12627_v31  ;;  %v4932_v24 = vsel %vm4922_vm4, %v9759_v57, %v12577_v19  ;;  %v12631_v19 = vld [vmem:[#allocation173_spill] sm:$0xff] }
 0x2c6   : > { %v5095_v62 = vsel %vm5084_vm6, %v5014_v25, %v9766_v18  ;;  %6497 = vmatprep.mubr.msk.f32.mxu0 %vm5645_vm11, %v5504_v35  ;;  %v4974_v25 = vsel %vm4922_vm4, %v9559_v16, %v12631_v19  ;;  %v12632_v35 = vld [vmem:[#allocation111_spill] sm:$0xff]  ;;  %v12633_v31 = vld [vmem:[#allocation201_spill] sm:$0xff] }
 0x2c7   : > { %v9777_v23 = vpop.permute.xlu1 %4160  ;;  %v5576_v29 = vsel %vm5488_vm10, %v5573_v2, %v11897_v8  ;;  %v5176_v44 = vsel %vm5165_vm7, %v5095_v62, %v9455_v48  ;;  %4583 = vrot.lane.b32.xlu0 %v12629_v5, %s6720_s8  ;;  %v4972_v2 = vsel %vm4922_vm4, %v9773_v22, %v8859_v34  ;;  %v12634_v62 = vld [vmem:[#allocation155_spill] sm:$0xff]  ;;  %v12635_v16 = vld [vmem:[#allocation145_spill] sm:$0xff] }
 0x2c8   : > { %v5096_v28 = vsel %vm5084_vm6, %v5015_v17, %v9777_v23  ;;  %6545 = vmatprep.mubr.msk.f32.mxu1 %vm5645_vm11, %v5576_v29  ;;  %v5013_v17 = vsel %vm5003_vm5, %v4932_v24, %v12633_v31  ;;  %v5054_v63 = vsel %vm5003_vm5, %v4973_v9, %v12634_v62  ;;  %v5257_v34 = vsel %vm5246_vm8, %v5176_v44, %v9483_v52  ;;  %v12637_v8 = vld [vmem:[#allocation259_spill] sm:$0xff] }
 0x2c9   : > { %v5177_v48 = vsel %vm5165_vm7, %v5096_v28, %v9458_v3  ;;  %4585 = vrot.lane.b32.xlu1 %v12632_v35, %s6720_s8  ;;  %v9816_v5 = vpop.permute.xlu0 %4198  ;;  %v5053_v3 = vsel %vm5003_vm5, %v4972_v2, %v12635_v16  ;;  %v12636_v28 = vld [vmem:[#allocation157_spill] sm:$0xff]  ;;  %v5094_v24 = vsel %vm5084_vm6, %v5013_v17, %v12637_v8  ;;  %v5338_v16 = vsel %vm5327_vm9, %v5257_v34, %v9568_v14 }
 0x2ca   : > { %v5258_v29 = vsel %vm5246_vm8, %v5177_v48, %v9485_v38  ;;  %v5055_v35 = vsel %vm5003_vm5, %v4974_v25, %v12636_v28  ;;  %v5135_v9 = vsel %vm5084_vm6, %v5054_v63, %v9816_v5  ;;  %v12638_v38 = vld [vmem:[#allocation36_spill] sm:$0xff]  ;;  %v5175_v52 = vsel %vm5165_vm7, %v5094_v24, %v9670_v51  ;;  %v12640_v63 = vld [vmem:[#allocation206_spill] sm:$0xff] }
 0x2cb   : > { %v9824_v31 = vpop.permute.xlu1 %4200  ;;  %v5134_v48 = vsel %vm5084_vm6, %v5053_v3, %v12638_v38  ;;  %v5216_v2 = vsel %vm5165_vm7, %v5135_v9, %v9467_v39  ;;  %v12639_v25 = vld [vmem:[#allocation204_spill] sm:$0xff]  ;;  %v5339_v3 = vsel %vm5327_vm9, %v5258_v29, %v9577_v55  ;;  %v12641_v38 = vld [vmem:[#allocation119_spill] sm:$0xff] }
 0x2cc   : > { %v5136_v44 = vsel %vm5084_vm6, %v5055_v35, %v9824_v31  ;;  %4623 = vrot.lane.b32.xlu0 %v12639_v25, %s6720_s8  ;;  %v5297_v17 = vsel %vm5246_vm8, %v5216_v2, %v9491_v33  ;;  %v5215_v39 = vsel %vm5165_vm7, %v5134_v48, %v9672_v37  ;;  %v5256_v35 = vsel %vm5246_vm8, %v5175_v52, %v9703_v4  ;;  %v12642_v52 = vld [vmem:[#allocation132_spill] sm:$0xff] }
 0x2cd   : > { %v5217_v8 = vsel %vm5165_vm7, %v5136_v44, %v9469_v40  ;;  %4625 = vrot.lane.b32.xlu1 %v12640_v63, %s6720_s8  ;;  %v9854_v24 = vpop.permute.xlu0 %4713  ;;  %v5378_v33 = vsel %vm5327_vm9, %v5297_v17, %v9609_v1  ;;  %v5296_v14 = vsel %vm5246_vm8, %v5215_v39, %v9710_v11  ;;  %v5507_v48 = vrot.slane %v5338_v16, 1  ;;  %v12643_v25 = vld [vmem:[#allocation212_spill] sm:$0xff]  ;;  %v12645_v39 = vld [vmem:[#allocation205_spill] sm:$0xff] }
 0x2ce   : > { %v5298_v40 = vsel %vm5246_vm8, %v5217_v8, %v9493_v12  ;;  %v5337_v55 = vsel %vm5327_vm9, %v5256_v35, %v9854_v24  ;;  %v5508_v1 = vrot.slane %v5339_v3, 1  ;;  %v4935_v44 = vsel %vm4922_vm4, %v9545_v60, %v12642_v52  ;;  %v12646_v60 = vld [vmem:[#allocation158_spill] sm:$0xff] }
 0x2cf   : > { %v9860_v34 = vpop.permute.xlu1 %4753  ;;  %v5379_v29 = vsel %vm5327_vm9, %v5298_v40, %v9615_v27  ;;  %v5505_v12 = vrot.slane %v5337_v55, 1  ;;  %v5579_v8 = vrot.slane %v5378_v33, 1  ;;  %v12644_v27 = vld [vmem:[#allocation182_spill] sm:$0xff]  ;;  %v5016_v35 = vsel %vm5003_vm5, %v4935_v44, %v12645_v39  ;;  %v12650_v44 = vld [vmem:[#allocation108_spill] sm:$0xff] }
 0x2d0   : > { %v5377_v9 = vsel %vm5327_vm9, %v5296_v14, %v9860_v34  ;;  %4587 = vrot.lane.b32.xlu0 %v12641_v38, %s6720_s8  ;;  %v5580_v17 = vrot.slane %v5379_v29, 1  ;;  %v4975_v63 = vsel %vm4922_vm4, %v9591_v15, %v12644_v27  ;;  %v4936_v3 = vsel %vm4922_vm4, %v9692_v36, %v12646_v60  ;;  %v12647_v14 = vld [vmem:[#allocation164_spill] sm:$0xff] }
 0x2d1   : > { %v5577_v2 = vrot.slane %v5377_v9, 1  ;;  %4627 = vrot.lane.b32.xlu1 %v12643_v25, %s6720_s8  ;;  %v9880_v40 = vpop.permute.xlu0 %4162  ;;  %v5506_v16 = vsel %vm5488_vm10, %v5503_v47, %v5505_v12  ;;  %v5056_v33 = vsel %vm5003_vm5, %v4975_v63, %v12647_v14  ;;  %v12648_v29 = vrot.slane %v9740_v61, 1  ;;  %v12649_v9 = vld [vmem:[#allocation101_spill] sm:$0xff]  ;;  %v12652_v63 = vld [vmem:[#allocation20_spill] sm:$0xff] }
 0x2d2   : > { %v5097_v15 = vsel %vm5084_vm6, %v5016_v35, %v9880_v40  ;;  %6498 = vmatmul.mubr.msk.f32.gmra.mrb[6].mxu0 %vm5645_vm11, %v5506_v16  ;;  %v5509_v12 = vsel %vm5488_vm10, %v5507_v48, %v5508_v1  ;;  %v5017_v48 = vsel %vm5003_vm5, %v4936_v3, %v12652_v63  ;;  %v12653_v16 = vld [vmem:[#allocation185_spill] sm:$0xff] }
 0x2d3   : > { %v9890_v55 = vpop.permute.xlu1 %4202  ;;  %v5578_v50 = vsel %vm5488_vm10, %v12648_v29, %v5577_v2  ;;  %v5178_v36 = vsel %vm5165_vm7, %v5097_v15, %v9475_v56  ;;  %6500 = vmatprep.mubr.msk.f32.mxu0 %vm5645_vm11, %v5509_v12  ;;  %v5581_v56 = vsel %vm5488_vm10, %v5579_v8, %v5580_v17  ;;  %v12651_v2 = vld [vmem:[#allocation177_spill] sm:$0xff]  ;;  %v12656_v12 = vld [vmem:[#allocation156_spill] sm:$0xff] }
 0x2d4   : > { %v5137_v47 = vsel %vm5084_vm6, %v5056_v33, %v9890_v55  ;;  %6546 = vmatmul.mubr.msk.f32.gmra.mrb[6].mxu1 %vm5645_vm11, %v5578_v50  ;;  %4725 = vrot.lane.b32.xlu0 %v12649_v9, %s6721_s22  ;;  %v5259_v61 = vsel %vm5246_vm8, %v5178_v36, %v9516_v41  ;;  %v4976_v25 = vsel %vm4922_vm4, %v9698_v32, %v12651_v2 }
 0x2d5   : > { %v5218_v38 = vsel %vm5165_vm7, %v5137_v47, %v9477_v6  ;;  %4727 = vrot.lane.b32.xlu1 %v12650_v44, %s6721_s22  ;;  %6548 = vmatprep.mubr.msk.f32.mxu1 %vm5645_vm11, %v5581_v56  ;;  %v9922_v41 = vpop.permute.xlu0 %4164  ;;  %v5340_v35 = vsel %vm5327_vm9, %v5259_v61, %v9639_v58  ;;  %v5057_v8 = vsel %vm5003_vm5, %v4976_v25, %v12653_v16  ;;  %v12655_v47 = vld [vmem:[#allocation198_spill] sm:$0xff]  ;;  %v12657_v61 = vld [vmem:[#allocation203_spill] sm:$0xff] }
 0x2d6   : > { %v5299_v6 = vsel %vm5246_vm8, %v5218_v38, %v9529_v0  ;;  %v5098_v32 = vsel %vm5084_vm6, %v5017_v48, %v9922_v41  ;;  %v5510_v15 = vrot.slane %v5340_v35, 1  ;;  %v12654_v0 = vld [vmem:[#allocation165_spill] sm:$0xff]  ;;  %v12660_v35 = vld [vmem:[#allocation196_spill] sm:$0xff] }
 0x2d7   : > { %v9928_v33 = vpop.permute.xlu1 %4204  ;;  %v5380_v3 = vsel %vm5327_vm9, %v5299_v6, %v9643_v45  ;;  %v4937_v29 = vsel %vm4922_vm4, %v9759_v57, %v12654_v0  ;;  %v5179_v50 = vsel %vm5165_vm7, %v5098_v32, %v9658_v20  ;;  %v4977_v45 = vsel %vm4922_vm4, %v9773_v22, %v12656_v12  ;;  %v12658_v20 = vld [vmem:[#allocation64_spill] sm:$0xff] }
 0x2d8   : > { %v5138_v58 = vsel %vm5084_vm6, %v5057_v8, %v9928_v33  ;;  %4765 = vrot.lane.b32.xlu0 %v12655_v47, %s6721_s22  ;;  %v5582_v36 = vrot.slane %v5380_v3, 1  ;;  %v5260_v57 = vsel %vm5246_vm8, %v5179_v50, %v9678_v30  ;;  %v5511_v56 = vsel %vm5488_vm10, %v5508_v1, %v5510_v15  ;;  %v226_v30 = vld [vmem:[%s6783_s24 + $0xd8] sm:$0xff] }
 0x2d9   : > { %v5219_v38 = vsel %vm5165_vm7, %v5138_v58, %v9661_v13  ;;  %4767 = vrot.lane.b32.xlu1 %v12657_v61, %s6721_s22  ;;  %v5018_v25 = vsel %vm5003_vm5, %v4937_v29, %v12658_v20  ;;  %v9958_v22 = vpop.permute.xlu0 %4166  ;;  %6501 = vmatmul.mubr.msk.f32.gmra.mrb[8].mxu0 %vm5645_vm11, %v5511_v56  ;;  %v5341_v13 = vsel %vm5327_vm9, %v5260_v57, %v9728_v10  ;;  %v12662_v29 = vld [vmem:[#allocation113_spill] sm:$0xff]  ;;  %v12697_v20 = vld [vmem:[#allocation3_spill] sm:$0xff] }
 0x2da   : > { %v5300_v48 = vsel %vm5246_vm8, %v5219_v38, %v9680_v43  ;;  %v5583_v6 = vsel %vm5488_vm10, %v5580_v17, %v5582_v36  ;;  %12659 = vst [vmem:[#allocation218_spill] sm:$0xff] %v9958_v22  ;;  %v5058_v8 = vsel %vm5003_vm5, %v4977_v45, %v12660_v35  ;;  %v5099_v43 = vsel %vm5084_vm6, %v5018_v25, %v9958_v22  ;;  %v12663_v38 = vld [vmem:[#allocation208_spill] sm:$0xff] }
 0x2db   : > { %v9966_v1 = vpop.permute.xlu1 %4206  ;;  %6549 = vmatmul.mubr.msk.f32.gmra.mrb[8].mxu1 %vm5645_vm11, %v5583_v6  ;;  %v5381_v17 = vsel %vm5327_vm9, %v5300_v48, %v9732_v21  ;;  %v5512_v32 = vrot.slane %v5341_v13, 1  ;;  %v5180_v10 = vsel %vm5165_vm7, %v5099_v43, %v9670_v51  ;;  %v1339_v57 = vcombine.high %v226_v30, %v226_v30  ;;  %v12664_v6 = vld [vmem:[#allocation46_spill] sm:$0xff] }
 0x2dc   : > { %12661 = vst [vmem:[#allocation65_spill] sm:$0xff] %v9966_v1  ;;  %v5139_v3 = vsel %vm5084_vm6, %v5058_v8, %v9966_v1  ;;  %4729 = vrot.lane.b32.xlu0 %v12662_v29, %s6721_s22  ;;  %v5584_v58 = vrot.slane %v5381_v17, 1  ;;  %v5261_v45 = vsel %vm5246_vm8, %v5180_v10, %v9703_v4  ;;  %v12666_v8 = vld [vmem:[#allocation2_spill] sm:$0xff] }
 0x2dd   : > { %v5220_v50 = vsel %vm5165_vm7, %v5139_v3, %v9672_v37  ;;  %4769 = vrot.lane.b32.xlu1 %v12663_v38, %s6721_s22  ;;  %v5513_v21 = vsel %vm5488_vm10, %v5510_v15, %v5512_v32  ;;  %v9989_v25 = vpop.permute.xlu0 %4363  ;;  %v5342_v37 = vsel %vm5327_vm9, %v5261_v45, %v9854_v24  ;;  %v1353_v43 = vrot.slane %v1339_v57, %v12666_v8  ;;  %v12667_v10 = vld [vmem:[#allocation18_spill] sm:$0xff]  ;;  %v12669_v57 = vld [vmem:[#allocation121_spill] sm:$0xff] }
 0x2de   : > { %v5301_v56 = vsel %vm5246_vm8, %v5220_v50, %v9710_v11  ;;  %v5585_v51 = vsel %vm5488_vm10, %v5582_v36, %v5584_v58  ;;  %6503 = vmatprep.mubr.msk.f32.mxu0 %vm5645_vm11, %v5513_v21  ;;  %v5514_v15 = vrot.slane %v5342_v37, 1  ;;  %v12665_v36 = vld [vmem:[#allocation238_spill] sm:$0xff]  ;;  %v12668_v50 = vld [vmem:[#allocation124_spill] sm:$0xff]  ;;  %v12671_v37 = vld [vmem:[#allocation207_spill] sm:$0xff] }
 0x2df   : > { %v9994_v48 = vpop.permute.xlu1 %4365  ;;  %6551 = vmatprep.mubr.msk.f32.mxu1 %vm5645_vm11, %v5585_v51  ;;  %v5382_v4 = vsel %vm5327_vm9, %v5301_v56, %v9860_v34  ;;  %v1346_v34 = vrot.slane %v226_v30, %v12666_v8  ;;  %v12670_v56 = vld [vmem:[#allocation213_spill] sm:$0xff]  ;;  %v1369_v30 = vrot.slane %v1353_v43, %v12666_v8 }
 0x2e0   : > { %4379 = vrot.lane.b32.xlu0 %v12664_v6, %s6719_s30  ;;  %v5586_v11 = vrot.slane %v5382_v4, 1  ;;  %v5515_v13 = vsel %vm5488_vm10, %v5512_v32, %v5514_v15  ;;  %v1355_v32 = vcombine.high %v1353_v43, %v1353_v43  ;;  %v12672_v4 = vld [vmem:[#allocation52_spill] sm:$0xff]  ;;  %v12673_v6 = vld [vmem:[#allocation223_spill] sm:$0xff]  ;;  %v12679_v43 = vld [vmem:[#allocation246_spill] sm:$0xff] }
 0x2e1   : > { %4419 = vrot.lane.b32.xlu1 %v12665_v36, %s6719_s30  ;;  %v10006_v17 = vpop.permute.xlu0 %4403  ;;  %6504 = vmatmul.mubr.msk.f32.gmra.mrb[10].mxu0 %vm5645_vm11, %v5515_v13  ;;  %v1354_v21 = vcombine.high %v1346_v34, %v1346_v34  ;;  %v4841_v15 = vsel %vm4830_vm2, %v12672_v4, %v12671_v37  ;;  %v12678_v36 = vld [vmem:[#allocation75_spill] sm:$0xff] }
 0x2e2   : > { %v5587_v24 = vsel %vm5488_vm10, %v5584_v58, %v5586_v11  ;;  %v1383_v51 = vrot.slane %v1355_v32, %v12666_v8  ;;  %v12674_v11 = vld [vmem:[#allocation55_spill] sm:$0xff]  ;;  %v12680_v32 = vld [vmem:[#allocation78_spill] sm:$0xff] }
 0x2e3   : > { %v10009_v3 = vpop.permute.xlu1 %4405  ;;  %6552 = vmatmul.mubr.msk.f32.gmra.mrb[10].mxu1 %vm5645_vm11, %v5587_v24  ;;  %v4842_v13 = vsel %vm4830_vm2, %v12674_v11, %v12673_v6  ;;  %v12675_v24 = vld [vmem:[#allocation225_spill] sm:$0xff]  ;;  %v4862_v42 = vsel %vm4830_vm2, %v12680_v32, %v12679_v43  ;;  %v12682_v37 = vld [vmem:[#allocation87_spill] sm:$0xff]  ;;  %v1362_v6 = vrot.slane %v1346_v34, %v12666_v8  ;;  %v1376_v11 = vrot.slane %v1354_v21, %v12666_v8  ;;  %v12691_v21 = vld [vmem:[#allocation128_spill] sm:$0xff] }
 0x2e4   : > { %4381 = vrot.lane.b32.xlu0 %v12667_v10, %s6719_s30  ;;  %v12676_v10 = vld [vmem:[#allocation54_spill] sm:$0xff]  ;;  %v4863_v4 = vsel %vm4830_vm2, %v12682_v37, %v12681_v7  ;;  %v12686_v43 = vld [vmem:[#allocation83_spill] sm:$0xff]  ;;  %v12690_v34 = vld [vmem:[#allocation117_spill] sm:$0xff] }
 0x2e5   : > { %4421 = vrot.lane.b32.xlu1 %v12668_v50, %s6719_s30  ;;  %v10017_v45 = vpop.permute.xlu0 %4367  ;;  %v4843_v50 = vsel %vm4830_vm2, %v12676_v10, %v12675_v24  ;;  %v227_v24 = vld [vmem:[%s6783_s24 + $0xe0] sm:$0xff]  ;;  %v12683_v10 = vld [vmem:[#allocation77_spill] sm:$0xff]  ;;  %v10062_v32 = vsel %vm4876_vm3, %v4842_v13, %v12686_v43  ;;  %v12688_v7 = vld [vmem:[#allocation127_spill] sm:$0xff]  ;;  %v10072_v35 = vsel %vm4876_vm3, %v4863_v4, %v12691_v21  ;;  %v1385_v13 = vcombine.high %v1369_v30, %v1369_v30 }
 0x2e6   : > { %12687 = vst [vmem:[#allocation68_spill] sm:$0xff] %v10062_v32  ;;  %12692 = vst [vmem:[#allocation232_spill] sm:$0xff] %v10072_v35  ;;  %v4939_v4 = vsel %vm4922_vm4, %v10062_v32, %v12625_v49  ;;  %v4980_v49 = vsel %vm4922_vm4, %v10072_v35, %v12644_v27  ;;  %v1388_v12 = vcombine.high %v227_v24, %v227_v24 }
 0x2e7   : > { %v10019_v58 = vpop.permute.xlu1 %4407 }
 0x2e8   : > { %4589 = vrot.lane.b32.xlu0 %v12669_v57, %s6720_s8  ;;  %v12677_v57 = vld [vmem:[#allocation245_spill] sm:$0xff] }
 0x2e9   : > { %4629 = vrot.lane.b32.xlu1 %v12670_v56, %s6720_s8  ;;  %v4861_v56 = vsel %vm4830_vm2, %v12678_v36, %v12677_v57  ;;  %v10039_v26 = vpop.permute.xlu0 %4573  ;;  %v10054_v36 = vsel %vm4876_vm3, %v4841_v15, %v12683_v10  ;;  %v12684_v57 = vld [vmem:[#allocation85_spill] sm:$0xff] }
 0x2ea   : > { %v10058_v22 = vsel %vm4876_vm3, %v4843_v50, %v12684_v57  ;;  %v10066_v37 = vsel %vm4876_vm3, %v4861_v56, %v12688_v7  ;;  %v12693_v15 = vld [vmem:[#allocation133_spill] sm:$0xff]  ;;  %v12695_v50 = vld [vmem:[#allocation211_spill] sm:$0xff]  ;;  %v1387_v57 = vcombine.high %v1383_v51, %v1383_v51  ;;  %v4938_v56 = vsel %vm4922_vm4, %v10054_v36, %v12622_v59 }
 0x2eb   : > { %v10047_v1 = vpop.permute.xlu1 %4575  ;;  %12685 = vst [vmem:[#allocation217_spill] sm:$0xff] %v10058_v22  ;;  %12689 = vst [vmem:[#allocation138_spill] sm:$0xff] %v10066_v37  ;;  %v10076_v10 = vsel %vm4876_vm3, %v4862_v42, %v12693_v15  ;;  %v4940_v43 = vsel %vm4922_vm4, %v10058_v22, %v12642_v52  ;;  %v1395_v42 = vrot.slane %v227_v24, %v12666_v8  ;;  %v12696_v22 = vld [vmem:[#allocation114_spill] sm:$0xff] }
 0x2ec   : > { %4591 = vrot.lane.b32.xlu0 %v12690_v34, %s6720_s8  ;;  %12694 = vst [vmem:[#allocation63_spill] sm:$0xff] %v10076_v10  ;;  %v4978_v34 = vsel %vm4922_vm4, %v10066_v37, %v12630_v46  ;;  %v4979_v59 = vsel %vm4922_vm4, %v10076_v10, %v12631_v19  ;;  %v1384_v15 = vcombine.high %v1362_v6, %v1362_v6  ;;  %v12698_v19 = vld [vmem:[#allocation210_spill] sm:$0xff] }
 0x2ed   : > { %4631 = vrot.lane.b32.xlu1 %v12695_v50, %s6720_s8  ;;  %v10089_v7 = vpop.permute.xlu0 %4613  ;;  %v1386_v52 = vcombine.high %v1376_v11, %v1376_v11  ;;  %v5019_v50 = vsel %vm5003_vm5, %v4938_v56, %v12626_v54  ;;  %v10108_v46 = vrot.slane %v1369_v30, %v12697_v20  ;;  %v10111_v37 = vrot.slane %v1383_v51, %v12697_v20 }
 0x2ee   : > { %v10116_v10 = vrot.slane %v1385_v13, %v12697_v20  ;;  %v10119_v27 = vrot.slane %v1387_v57, %v12697_v20  ;;  %v2110_v54 = vrot.slane %v1362_v6, %v12697_v20  ;;  %v10123_v56 = vrot.slane %v1376_v11, %v12697_v20 }
 0x2ef   : > { %v10098_v21 = vpop.permute.xlu1 %4615  ;;  %v5021_v30 = vsel %vm5003_vm5, %v4940_v43, %v12645_v39  ;;  %v5020_v51 = vsel %vm5003_vm5, %v4939_v4, %v12628_v53  ;;  %v1403_v32 = vcombine.high %v1395_v42, %v1395_v42  ;;  %v5059_v13 = vsel %vm5003_vm5, %v4978_v34, %v12634_v62 }
 0x2f0   : > { %4731 = vrot.lane.b32.xlu0 %v12696_v22, %s6721_s22  ;;  %v5060_v57 = vsel %vm5003_vm5, %v4979_v59, %v12636_v28  ;;  %v10138_v11 = vrot.slane %v1384_v15, %v12697_v20  ;;  %v10141_v39 = vrot.slane %v1386_v52, %v12697_v20  ;;  %v5061_v53 = vsel %vm5003_vm5, %v4980_v49, %v12647_v14 }
 0x2f1   : > { %4771 = vrot.lane.b32.xlu1 %v12698_v19, %s6721_s22  ;;  %v10129_v35 = vpop.permute.xlu0 %4577  ;;  %v5100_v24 = vsel %vm5084_vm6, %v5019_v50, %v9766_v18  ;;  %v1411_v28 = vrot.slane %v1395_v42, %v12666_v8  ;;  %v5101_v43 = vsel %vm5084_vm6, %v5020_v51, %v9777_v23  ;;  %v10161_v14 = vcombine.low %v2110_v54, %v10123_v56 }
 0x2f2   : > { %v5181_v4 = vsel %vm5165_vm7, %v5100_v24, %v9989_v25  ;;  %v1425_v23 = vrot.slane %v1403_v32, %v12666_v8  ;;  %v1402_v59 = vrot.slane %v1388_v12, %v12666_v8  ;;  %v4269_v49 = vcombine.low %v10138_v11, %v10141_v39 }
 0x2f3   : > { %v10135_v6 = vpop.permute.xlu1 %4617  ;;  %v5262_v42 = vsel %vm5246_vm8, %v5181_v4, %v10039_v26  ;;  %v5140_v54 = vsel %vm5084_vm6, %v5059_v13, %v9816_v5  ;;  %v1433_v51 = vcombine.high %v1411_v28, %v1411_v28  ;;  %v5141_v24 = vsel %vm5084_vm6, %v5060_v57, %v9824_v31 }
 0x2f4   : > { %12699 = vst [vmem:[#allocation151_spill] sm:$0xff] %v10135_v6  ;;  %4178 = vrot.lane.b32.xlu0 %v12649_v9, %s6718_s29  ;;  %v5182_v9 = vsel %vm5165_vm7, %v5101_v43, %v9994_v48  ;;  %v5221_v43 = vsel %vm5165_vm7, %v5140_v54, %v10006_v17  ;;  %v10194_v5 = vrot.slane %v1411_v28, %v12697_v20 }
 0x2f5   : > { %4180 = vrot.lane.b32.xlu1 %v12650_v44, %s6718_s29  ;;  %v10167_v34 = vpop.permute.xlu0 %4715  ;;  %v5263_v44 = vsel %vm5246_vm8, %v5182_v9, %v10047_v1  ;;  %v5222_v13 = vsel %vm5165_vm7, %v5141_v24, %v10009_v3  ;;  %v10203_v31 = vrot.slane %v1402_v59, %v12666_v8  ;;  %v5102_v54 = vsel %vm5084_vm6, %v5021_v30, %v9880_v40  ;;  %v12701_v40 = vld [vmem:[#allocation11_spill] sm:$0xff] }
 0x2f6   : > { %v5343_v52 = vsel %vm5327_vm9, %v5262_v42, %v10167_v34  ;;  %v1435_v42 = vcombine.high %v1425_v23, %v1425_v23  ;;  %v5303_v57 = vsel %vm5246_vm8, %v5222_v13, %v10098_v21  ;;  %v2146_v13 = vrot.slane %v1425_v23, %v12697_v20 }
 0x2f7   : > { %v10173_v15 = vpop.permute.xlu1 %4717  ;;  %v5516_v32 = vrot.slane %v5343_v52, 1  ;;  %v1404_v52 = vcombine.high %v1402_v59, %v1402_v59  ;;  %v5183_v59 = vsel %vm5165_vm7, %v5102_v54, %v10017_v45  ;;  %v2150_v30 = vrot.slane %v1433_v51, %v12697_v20 }
 0x2f8   : > { %v5344_v12 = vsel %vm5327_vm9, %v5263_v44, %v10173_v15  ;;  %4218 = vrot.lane.b32.xlu0 %v12655_v47, %s6718_s29  ;;  %v5302_v47 = vsel %vm5246_vm8, %v5221_v43, %v10089_v7  ;;  %v12700_v43 = vld [vmem:[#allocation233_spill] sm:$0xff] }
 0x2f9   : > { %v5517_v4 = vrot.slane %v5344_v12, 1  ;;  %4220 = vrot.lane.b32.xlu1 %v12657_v61, %s6718_s29  ;;  %v10200_v9 = vpop.permute.xlu0 %4755 }
 0x2fa   : > { %v5383_v61 = vsel %vm5327_vm9, %v5302_v47, %v10200_v9  ;;  %v5142_v47 = vsel %vm5084_vm6, %v5061_v53, %v9890_v55  ;;  %v2154_v55 = vrot.slane %v1435_v42, %v12697_v20  ;;  %v10236_v53 = vrot.slane %v10203_v31, %v12697_v20 }
 0x2fb   : > { %v10207_v44 = vpop.permute.xlu1 %4757  ;;  %v5518_v28 = vsel %vm5488_vm10, %v5516_v32, %v5517_v4  ;;  %v5588_v24 = vrot.slane %v5383_v61, 1  ;;  %v5264_v61 = vsel %vm5246_vm8, %v5183_v59, %v10129_v35 }
 0x2fc   : > { %v5384_v12 = vsel %vm5327_vm9, %v5303_v57, %v10207_v44  ;;  %6506 = vmatprep.mubr.msk.f32.mxu0 %vm5645_vm11, %v5518_v28  ;;  %4733 = vrot.lane.b32.xlu0 %v12700_v43, %s6721_s22  ;;  %v5223_v57 = vsel %vm5165_vm7, %v5142_v47, %v10019_v58  ;;  %v1432_v47 = vrot.slane %v1404_v52, %v12666_v8 }
 0x2fd   : > { %v5589_v32 = vrot.slane %v5384_v12, 1  ;;  %4773 = vrot.lane.b32.xlu1 %v12701_v40, %s6721_s22  ;;  %v10231_v23 = vpop.permute.xlu0 %4719  ;;  %v5304_v28 = vsel %vm5246_vm8, %v5223_v57, %v10135_v6  ;;  %v4495_v57 = vcombine.low %v10111_v37, %v10116_v10  ;;  %v4512_v52 = vcombine.low %v2146_v13, %v2150_v30 }
 0x2fe   : > { %12702 = vst [vmem:[#allocation234_spill] sm:$0xff] %v10231_v23  ;;  %v10244_v51 = vsel %vm5327_vm9, %v5264_v61, %v10231_v23  ;;  %v4496_v61 = vcombine.low %v10119_v27, %v10194_v5  ;;  %v4513_v23 = vcombine.low %v2154_v55, %v10236_v53  ;;  %v1436_v6 = vcombine.high %v1432_v47, %v1432_v47 }
 0x2ff   : > { %v10240_v54 = vpop.permute.xlu1 %4759  ;;  %v5590_v12 = vsel %vm5488_vm10, %v5588_v24, %v5589_v32  ;;  %v11908_v59 = vrot.slane %v10244_v51, 1  ;;  %v10261_v24 = vld.sshfl [vmem:[%s6783_s24 + $0xe8] sm:$0x11 pattern:$0x75316420]  ;;  %s6326_s24 = sshll.u32 %s12877_s23, 2 }
 0x300   : > { %12703 = vst [vmem:[#allocation25_spill] sm:$0xff] %v10240_v54  ;;  %v10250_v42 = vsel %vm5327_vm9, %v5304_v28, %v10240_v54  ;;  %6554 = vmatprep.mubr.msk.f32.mxu1 %vm5645_vm11, %v5590_v12  ;;  %4182 = vrot.lane.b32.xlu0 %v12662_v29, %s6718_s29  ;;  %v12704_v28 = vld [vmem:[#allocation4_spill] sm:$0xff]  ;;  %v4479_v29 = vcombine.low %v10141_v39, %v10108_v46  ;;  %s10709_s12 = sadd.s32 %s6327_s25, %s6326_s24 }
 0x301   : > { %4222 = vrot.lane.b32.xlu1 %v12663_v38, %s6718_s29  ;;  %v4276_v50 = vrot.slane %v10161_v14, %v12704_v28  ;;  %v4283_v12 = vrot.slane %v4269_v49, %v12704_v28  ;;  %v10271_v18 = vpop.permute.xlu0 %4369  ;;  %v5520_v62 = vsel %vm5488_vm10, %v5517_v4, %v11908_v59  ;;  %v4302_v54 = vcombine.low %v10194_v5, %v2146_v13  ;;  %v12717_v59 = vld [vmem:[#allocation44_spill] sm:$0xff]  ;;  %s6328_s13 = sshll.u32 %s10709_s12, 3 }
 0x302   : > { %6507 = vmatmul.mubr.msk.f32.gmra.mrb[12].mxu0 %vm5645_vm11, %v5520_v62  ;;  %v12705_v14 = vrot.slane %v10250_v42, 1  ;;  %v1434_v39 = vcombine.high %v10203_v31, %v10203_v31  ;;  %v1451_v4 = vrot.slane %v10261_v24, %v12666_v8  ;;  %v4303_v5 = vcombine.low %v2150_v30, %v2154_v55 }
 0x303   : > { %v10278_v38 = vpop.permute.xlu1 %4409  ;;  %v4503_v13 = vrot.slane %v4495_v57, %v12704_v28  ;;  %v4510_v62 = vrot.slane %v4496_v61, %v12704_v28  ;;  %v12706_v31 = vcombine.low %v10108_v46, %v10111_v37  ;;  %v4493_v55 = vrot.slane %v4479_v29, %v12704_v28 }
 0x304   : > { %v5592_v49 = vsel %vm5488_vm10, %v5589_v32, %v12705_v14  ;;  %4184 = vrot.lane.b32.xlu0 %v12696_v22, %s6718_s29  ;;  %v12707_v14 = vcombine.low %v10116_v10, %v10119_v27  ;;  %v12708_v22 = vcombine.low %v10123_v56, %v10138_v11  ;;  %v4527_v61 = vrot.slane %v4513_v23, %v12704_v28 }
 0x305   : > { %6555 = vmatmul.mubr.msk.f32.gmra.mrb[12].mxu1 %vm5645_vm11, %v5592_v49  ;;  %4224 = vrot.lane.b32.xlu1 %v12698_v19, %s6718_s29  ;;  %v4293_v32 = vrot.slane %v12706_v31, %v12704_v28  ;;  %v10308_v57 = vpop.permute.xlu0 %4371  ;;  %v4520_v19 = vrot.slane %v4512_v52, %v12704_v28  ;;  %v10315_v46 = vrot.slane %v1432_v47, %v12697_v20 }
 0x306   : > { %v4300_v49 = vrot.slane %v12707_v14, %v12704_v28  ;;  %v4486_v30 = vrot.slane %v12708_v22, %v12704_v28  ;;  %v10318_v10 = vrot.slane %v1434_v39, %v12697_v20  ;;  %v10321_v27 = vrot.slane %v1436_v6, %v12697_v20  ;;  %v12714_v22 = vld [vmem:[#allocation94_spill] sm:$0xff] }
 0x307   : > { %v10312_v37 = vpop.permute.xlu1 %4411  ;;  %v10324_v56 = vrot.slane %v1451_v4, %v12697_v20  ;;  %v4284_v11 = vcombine.low %v4276_v50, %v4283_v12  ;;  %v4310_v23 = vrot.slane %v4302_v54, %v12704_v28  ;;  %v4317_v52 = vrot.slane %v4303_v5, %v12704_v28  ;;  %v12709_v54 = vld [vmem:[#allocation216_spill] sm:$0xff]  ;;  %v12710_v12 = vld [vmem:[#allocation29_spill] sm:$0xff] }
 0x308   : > { %4186 = vrot.lane.b32.xlu0 %v12700_v43, %s6718_s29  ;;  %v10330_v29 = vcombine.low %v4503_v13, %v4510_v62  ;;  %v4301_v47 = vcombine.low %v4293_v32, %v4300_v49  ;;  %v10334_v39 = vcombine.low %v4486_v30, %v4493_v55  ;;  %v10338_v4 = vcombine.low %v4520_v19, %v4527_v61  ;;  %v12712_v13 = vld [vmem:[#allocation30_spill] sm:$0xff]  ;;  %v12713_v49 = vld [vmem:[#allocation249_spill] sm:$0xff]  ;;  %v12715_v55 = vld [vmem:[#allocation7_spill] sm:$0xff] }
 0x309   : > { %4226 = vrot.lane.b32.xlu1 %v12701_v40, %s6718_s29  ;;  %v10336_v6 = vpop.permute.xlu0 %4579  ;;  %v4529_v50 = vcombine.low %v10315_v46, %v10318_v10  ;;  %v4530_v43 = vcombine.low %v10321_v27, %v10324_v56  ;;  %v4845_v5 = vsel %vm4830_vm2, %v12710_v12, %v12709_v54  ;;  %v12711_v40 = vld [vmem:[#allocation226_spill] sm:$0xff]  ;;  %v4318_v32 = vcombine.low %v4310_v23, %v4317_v52  ;;  %v12716_v19 = vld [vmem:[#allocation95_spill] sm:$0xff] }
 0x30a   : > { %v4844_v62 = vsel %vm4830_vm2, %v12712_v13, %v12711_v40  ;;  %v4547_v14 = vrot.slane %v10330_v29, 7  ;;  %v4864_v30 = vsel %vm4830_vm2, %v12714_v22, %v12713_v49  ;;  %v4865_v61 = vsel %vm4830_vm2, %v12716_v19, %v12715_v55  ;;  %v12719_v52 = vld [vmem:[#allocation134_spill] sm:$0xff]  ;;  %v12720_v55 = vld [vmem:[#allocation131_spill] sm:$0xff] }
 0x30b   : > { %v10340_v31 = vpop.permute.xlu1 %4619  ;;  %v10362_v54 = vsel %vm4876_vm3, %v4844_v62, %v12717_v59  ;;  %v4546_v12 = vrot.slane %v10334_v39, 7  ;;  %v10372_v40 = vsel %vm4876_vm3, %v4864_v30, %v12719_v52  ;;  %v11909_v59 = vrot.slane %v10338_v4, 7 }
 0x30c   : > { %4423 = vrot.lane.b32.xlu0 %v4284_v11, %s6719_s30  ;;  %v12718_v11 = vld [vmem:[#allocation90_spill] sm:$0xff]  ;;  %v4941_v13 = vsel %vm4922_vm4, %v10362_v54, %v12646_v60  ;;  %v4537_v22 = vrot.slane %v4529_v50, %v12704_v28  ;;  %v4544_v30 = vrot.slane %v4530_v43, %v12704_v28  ;;  %v10391_v60 = vsel %vm4876_vm3, %v4865_v61, %v12720_v55 }
 0x30d   : > { %4425 = vrot.lane.b32.xlu1 %v4301_v47, %s6719_s30  ;;  %v10368_v23 = vsel %vm4876_vm3, %v4845_v5, %v12718_v11  ;;  %v10377_v49 = vpop.permute.xlu0 %4581  ;;  %v4981_v47 = vsel %vm4922_vm4, %v10372_v40, %v12651_v2  ;;  %v5022_v5 = vsel %vm5003_vm5, %v4941_v13, %v12652_v63  ;;  %v4548_v2 = vsel %vm3511_vm0, %v4546_v12, %v4547_v14  ;;  %v12722_v13 = vld [vmem:[#allocation160_spill] sm:$0xff] }
 0x30e   : > { %v5062_v19 = vsel %vm5003_vm5, %v4981_v47, %v12653_v16  ;;  %v5103_v11 = vsel %vm5084_vm6, %v5022_v5, %v9922_v41  ;;  %v4319_v43 = vcombine.low %v10236_v53, %v10315_v46  ;;  %v4320_v16 = vcombine.low %v10318_v10, %v10321_v27  ;;  %v12721_v53 = vld [vmem:[#allocation163_spill] sm:$0xff]  ;;  %v12723_v47 = vld [vmem:[#allocation68_spill] sm:$0xff] }
 0x30f   : > { %v10385_v62 = vpop.permute.xlu1 %4621  ;;  %v5143_v63 = vsel %vm5084_vm6, %v5062_v19, %v9928_v33  ;;  %v5184_v50 = vsel %vm5165_vm7, %v5103_v11, %v10271_v18  ;;  %v4942_v41 = vsel %vm4922_vm4, %v10368_v23, %v12654_v0  ;;  %v4943_v46 = vsel %vm4922_vm4, %v10054_v36, %v12721_v53  ;;  %v12725_v11 = vld [vmem:[#allocation183_spill] sm:$0xff] }
 0x310   : > { %4427 = vrot.lane.b32.xlu0 %v4318_v32, %s6719_s30  ;;  %v5224_v32 = vsel %vm5165_vm7, %v5143_v63, %v10278_v38  ;;  %v5265_v33 = vsel %vm5246_vm8, %v5184_v50, %v10336_v6  ;;  %v10431_v52 = vcombine.low %v4537_v22, %v4544_v30  ;;  %v4944_v5 = vsel %vm4922_vm4, %v12723_v47, %v12722_v13  ;;  %v12726_v63 = vld [vmem:[#allocation138_spill] sm:$0xff]  ;;  %v12728_v47 = vld [vmem:[#allocation63_spill] sm:$0xff] }
 0x311   : > { %4633 = vrot.lane.b32.xlu1 %v4546_v12, %s6720_s8  ;;  %v10415_v61 = vpop.permute.xlu0 %4721  ;;  %v4550_v12 = vsel %vm3511_vm0, %v4547_v14, %v11909_v59  ;;  %v5305_v10 = vsel %vm5246_vm8, %v5224_v32, %v10340_v31  ;;  %v12724_v14 = vld [vmem:[#allocation156_spill] sm:$0xff]  ;;  %v4983_v22 = vsel %vm4922_vm4, %v12726_v63, %v12725_v11  ;;  %v4327_v50 = vrot.slane %v4319_v43, %v12704_v28 }
 0x312   : > { %v10429_v27 = vsel %vm5327_vm9, %v5265_v33, %v10415_v61  ;;  %v4982_v55 = vsel %vm4922_vm4, %v10391_v60, %v12724_v14  ;;  %v4334_v32 = vrot.slane %v4320_v16, %v12704_v28  ;;  %v12727_v33 = vld [vmem:[#allocation187_spill] sm:$0xff]  ;;  %v12735_v11 = vld [vmem:[#allocation64_spill] sm:$0xff] }
 0x313   : > { %v10425_v0 = vpop.permute.xlu1 %4761  ;;  %v12729_v14 = vld [vmem:[#allocation67_spill] sm:$0xff]  ;;  %v12731_v63 = vrot.slane %v10429_v27, 1 }
 0x314   : > { %v10441_v36 = vsel %vm5327_vm9, %v5305_v10, %v10425_v0  ;;  %4635 = vrot.lane.b32.xlu0 %v4548_v2, %s6720_s8  ;;  %v4984_v10 = vsel %vm4922_vm4, %v12728_v47, %v12727_v33  ;;  %v5025_v59 = vsel %vm5003_vm5, %v4944_v5, %v12729_v14  ;;  %v12730_v2 = vld [vmem:[#allocation66_spill] sm:$0xff]  ;;  %v12734_v47 = vrot.slane %v10250_v42, 1  ;;  %v12736_v42 = vld [vmem:[#allocation196_spill] sm:$0xff] }
 0x315   : > { %4637 = vrot.lane.b32.xlu1 %v4550_v12, %s6720_s8  ;;  %v5024_v19 = vsel %vm5003_vm5, %v4943_v46, %v12730_v2  ;;  %v10459_v13 = vpop.permute.xlu0 %4168  ;;  %v12732_v12 = vrot.slane %v10244_v51, 1  ;;  %v12733_v5 = vrot.slane %v10441_v36, 1  ;;  %v4551_v33 = vrot.slane %v10431_v52, 7 }
 0x316   : > { %v5105_v16 = vsel %vm5084_vm6, %v5024_v19, %v10459_v13  ;;  %v1444_v51 = vcombine.high %v10261_v24, %v10261_v24 }
 0x317   : > { %v5522_v43 = vsel %vm5488_vm10, %v12732_v12, %v12731_v63  ;;  %v10466_v30 = vpop.permute.xlu1 %4170  ;;  %v5594_v46 = vsel %vm5488_vm10, %v12734_v47, %v12733_v5  ;;  %v5023_v63 = vsel %vm5003_vm5, %v4942_v41, %v12735_v11  ;;  %v5186_v19 = vsel %vm5165_vm7, %v5105_v16, %v9989_v25  ;;  %v12737_v5 = vld [vmem:[#allocation194_spill] sm:$0xff] }
 0x318   : > { %6509 = vmatprep.mubr.msk.f32.mxu0 %vm5645_vm11, %v5522_v43  ;;  %v5106_v12 = vsel %vm5084_vm6, %v5025_v59, %v10466_v30  ;;  %6557 = vmatprep.mubr.msk.f32.mxu1 %vm5645_vm11, %v5594_v46  ;;  %v5063_v43 = vsel %vm5003_vm5, %v4982_v55, %v12736_v42  ;;  %v5064_v24 = vsel %vm5003_vm5, %v4983_v22, %v12737_v5  ;;  %v12738_v11 = vld [vmem:[#allocation250_spill] sm:$0xff] }
 0x319   : > { %4775 = vrot.lane.b32.xlu0 %v10334_v39, %s6721_s22  ;;  %v5187_v41 = vsel %vm5165_vm7, %v5106_v12, %v9994_v48  ;;  %4777 = vrot.lane.b32.xlu1 %v10330_v29, %s6721_s22  ;;  %v4335_v59 = vcombine.low %v4327_v50, %v4334_v32  ;;  %v5065_v25 = vsel %vm5003_vm5, %v4984_v10, %v12738_v11  ;;  %v10502_v55 = vpop.permute.xlu0 %4208  ;;  %v12739_v47 = vld [vmem:[#allocation218_spill] sm:$0xff]  ;;  %v12741_v32 = vld [vmem:[#allocation65_spill] sm:$0xff] }
 0x31a   : > { %v5268_v16 = vsel %vm5246_vm8, %v5187_v41, %v10047_v1  ;;  %v5267_v39 = vsel %vm5246_vm8, %v5186_v19, %v10039_v26  ;;  %v4342_v22 = vrot.slane %v10324_v56, %v12704_v28  ;;  %v5104_v48 = vsel %vm5084_vm6, %v5023_v63, %v12739_v47  ;;  %v12743_v47 = vld [vmem:[#allocation217_spill] sm:$0xff] }
 0x31b   : > { %v10508_v46 = vpop.permute.xlu1 %4210  ;;  %v5145_v29 = vsel %vm5084_vm6, %v5064_v24, %v10502_v55  ;;  %v12740_v1 = vrot.slane %v10338_v4, 7  ;;  %v1458_v26 = vrot.slane %v1444_v51, %v12666_v8  ;;  %v5144_v10 = vsel %vm5084_vm6, %v5063_v43, %v12741_v32  ;;  %v12744_v32 = vld [vmem:[#allocation161_spill] sm:$0xff] }
 0x31c   : > { %v5185_v56 = vsel %vm5165_vm7, %v5104_v48, %v10308_v57  ;;  %v5146_v63 = vsel %vm5084_vm6, %v5065_v25, %v10508_v46  ;;  %v5226_v12 = vsel %vm5165_vm7, %v5145_v29, %v10006_v17  ;;  %v5348_v51 = vsel %vm5327_vm9, %v5267_v39, %v10167_v34  ;;  %v12742_v39 = vld [vmem:[#allocation167_spill] sm:$0xff] }
 0x31d   : > { %v4552_v50 = vsel %vm3511_vm0, %v12740_v1, %v4551_v33  ;;  %4779 = vrot.lane.b32.xlu0 %v10338_v4, %s6721_s22  ;;  %v5227_v19 = vsel %vm5165_vm7, %v5146_v63, %v10009_v3  ;;  %v5307_v8 = vsel %vm5246_vm8, %v5226_v12, %v10089_v7  ;;  %4429 = vrot.lane.b32.xlu1 %v4335_v59, %s6719_s30  ;;  %v10545_v43 = vpop.permute.xlu0 %4723 }
 0x31e   : > { %v10537_v42 = vsel %vm5327_vm9, %v5268_v16, %v10173_v15  ;;  %v5225_v17 = vsel %vm5165_vm7, %v5144_v10, %v10312_v37  ;;  %v5266_v4 = vsel %vm5246_vm8, %v5185_v56, %v10377_v49  ;;  %v5308_v3 = vsel %vm5246_vm8, %v5227_v19, %v10098_v21  ;;  %v12746_v10 = vld [vmem:[#allocation232_spill] sm:$0xff]  ;;  %v12747_v56 = vld [vmem:[#allocation42_spill] sm:$0xff] }
 0x31f   : > { %v5388_v7 = vsel %vm5327_vm9, %v5307_v8, %v10200_v9  ;;  %v5306_v34 = vsel %vm5246_vm8, %v5225_v17, %v10385_v62  ;;  %v10551_v24 = vpop.permute.xlu1 %4763  ;;  %v5347_v15 = vsel %vm5327_vm9, %v5266_v4, %v10545_v43  ;;  %v5389_v41 = vsel %vm5327_vm9, %v5308_v3, %v10207_v44 }
 0x320   : > { %v2178_v59 = vrot.slane %v1458_v26, %v12697_v20  ;;  %v5387_v21 = vsel %vm5327_vm9, %v5306_v34, %v10551_v24  ;;  %v5523_v25 = vrot.slane %v5347_v15, 1  ;;  %v5525_v9 = vrot.slane %v5348_v51, 1  ;;  %v12745_v26 = vld [vmem:[#allocation191_spill] sm:$0xff]  ;;  %v12751_v15 = vld [vmem:[#allocation189_spill] sm:$0xff] }
 0x321   : > { %4431 = vrot.lane.b32.xlu0 %v4342_v22, %s6719_s30  ;;  %v5526_v16 = vrot.slane %v10537_v42, 1  ;;  %v4945_v48 = vsel %vm4922_vm4, %v12743_v47, %v12742_v39  ;;  %v5595_v29 = vrot.slane %v5387_v21, 1  ;;  %4639 = vrot.lane.b32.xlu1 %v4552_v50, %s6720_s8  ;;  %v5597_v1 = vrot.slane %v5388_v7, 1  ;;  %v10574_v12 = vpop.permute.xlu0 %4172  ;;  %v12749_v50 = vld [vmem:[#allocation251_spill] sm:$0xff]  ;;  %s10797_s30 = scalar_lea.vmem %s11470_s3, %s6328_s13 }
 0x322   : > { %v5598_v44 = vrot.slane %v5389_v41, 1  ;;  %v4946_v20 = vsel %vm4922_vm4, %v10362_v54, %v12744_v32  ;;  %v4985_v22 = vsel %vm4922_vm4, %v12746_v10, %v12745_v26  ;;  %v5026_v63 = vsel %vm5003_vm5, %v4945_v48, %v12747_v56  ;;  %v12753_v21 = vld [vmem:[#allocation151_spill] sm:$0xff]  ;;  %v12757_v10 = vld [vmem:[#allocation169_spill] sm:$0xff] }
 0x323   : > { %v12748_v19 = vrot.slane %v10429_v27, 1  ;;  %v5066_v51 = vsel %vm5003_vm5, %v4985_v22, %v12749_v50  ;;  %v10581_v42 = vpop.permute.xlu1 %4212  ;;  %v5107_v54 = vsel %vm5084_vm6, %v5026_v63, %v10574_v12  ;;  %v12750_v17 = vrot.slane %v10441_v36, 1 }
 0x324   : > { %v4694_v3 = vrot.slane %v2178_v59, %v12704_v28  ;;  %v5147_v27 = vsel %vm5084_vm6, %v5066_v51, %v10581_v42  ;;  %v5188_v7 = vsel %vm5165_vm7, %v5107_v54, %v10017_v45  ;;  %v5527_v34 = vsel %vm5488_vm10, %v5525_v9, %v5526_v16  ;;  %v12755_v9 = vld [vmem:[#allocation252_spill] sm:$0xff] }
 0x325   : > { %v5524_v8 = vsel %vm5488_vm10, %v12748_v19, %v5523_v25  ;;  %v5596_v4 = vsel %vm5488_vm10, %v12750_v17, %v5595_v29  ;;  %4641 = vrot.lane.b32.xlu0 %v4551_v33, %s6720_s8  ;;  %v5228_v36 = vsel %vm5165_vm7, %v5147_v27, %v10019_v58  ;;  %v5269_v28 = vsel %vm5246_vm8, %v5188_v7, %v10129_v35  ;;  %v12752_v33 = vld [vmem:[#allocation32_spill] sm:$0xff]  ;;  %v10615_v35 = vpop.permute.xlu0 %4174  ;;  %v12754_v25 = vld [vmem:[#allocation234_spill] sm:$0xff]  ;;  %v12756_v29 = vld [vmem:[#allocation25_spill] sm:$0xff] }
 0x326   : > { %6510 = vmatmul.mubr.msk.f32.gmra.mrb[14].mxu0 %vm5645_vm11, %v5524_v8  ;;  %6558 = vmatmul.mubr.msk.f32.gmra.mrb[14].mxu1 %vm5645_vm11, %v5596_v4  ;;  %v5599_v45 = vsel %vm5488_vm10, %v5597_v1, %v5598_v44  ;;  %v4986_v41 = vsel %vm4922_vm4, %v10372_v40, %v12751_v15  ;;  %v5027_v59 = vsel %vm5003_vm5, %v4946_v20, %v12752_v33  ;;  %v12758_v51 = vld [vmem:[#allocation192_spill] sm:$0xff]  ;;  %v12759_v27 = vld [vmem:[#allocation73_spill] sm:$0xff] }
 0x327   : > { %4781 = vrot.lane.b32.xlu1 %v10431_v52, %s6721_s22  ;;  %6512 = vmatprep.mubr.msk.f32.mxu0 %vm5645_vm11, %v5527_v34  ;;  %v5309_v58 = vsel %vm5246_vm8, %v5228_v36, %v12753_v21  ;;  %v5350_v52 = vsel %vm5327_vm9, %v5269_v28, %v12754_v25  ;;  %v5067_v47 = vsel %vm5003_vm5, %v4986_v41, %v12755_v9  ;;  %v10621_v48 = vpop.permute.xlu1 %4214 }
 0x328   : > { %6560 = vmatprep.mubr.msk.f32.mxu1 %vm5645_vm11, %v5599_v45  ;;  %v5108_v40 = vsel %vm5084_vm6, %v5027_v59, %v10615_v35  ;;  %v5390_v1 = vsel %vm5327_vm9, %v5309_v58, %v12756_v29  ;;  %v5528_v20 = vrot.slane %v5350_v52, 1  ;;  %v4947_v22 = vsel %vm4922_vm4, %v10368_v23, %v12757_v10 }
 0x329   : > { %v5148_v63 = vsel %vm5084_vm6, %v5067_v47, %v10621_v48  ;;  %v5189_v19 = vsel %vm5165_vm7, %v5108_v40, %v10271_v18  ;;  %4783 = vrot.lane.b32.xlu0 %v4694_v3, %s6721_s22  ;;  %v5600_v8 = vrot.slane %v5390_v1, 1  ;;  %v4987_v54 = vsel %vm4922_vm4, %v10391_v60, %v12758_v51  ;;  %v10648_v34 = vpop.permute.xlu0 %4176  ;;  %v12760_v60 = vld [vmem:[#allocation253_spill] sm:$0xff] }
 0x32a   : > { %v5229_v17 = vsel %vm5165_vm7, %v5148_v63, %v10278_v38  ;;  %v5270_v4 = vsel %vm5246_vm8, %v5189_v19, %v10336_v6  ;;  %v5529_v23 = vsel %vm5488_vm10, %v5526_v16, %v5528_v20  ;;  %v5028_v7 = vsel %vm5003_vm5, %v4947_v22, %v12759_v27 }
 0x32b   : > { %v5310_v18 = vsel %vm5246_vm8, %v5229_v17, %v10340_v31  ;;  %v5601_v3 = vsel %vm5488_vm10, %v5598_v44, %v5600_v8  ;;  %6513 = vmatmul.mubr.msk.f32.gmra.mrb[16].mxu0 %vm5645_vm11, %v5529_v23  ;;  %v5351_v38 = vsel %vm5327_vm9, %v5270_v4, %v10415_v61  ;;  %v5068_v6 = vsel %vm5003_vm5, %v4987_v54, %v12760_v60  ;;  %v10655_v36 = vpop.permute.xlu1 %4216  ;;  %v12762_v54 = vld [vmem:[#allocation23_spill] sm:$0xff]  ;;  %v12763_v4 = vld [vmem:[#allocation228_spill] sm:$0xff] }
 0x32c   : > { %6561 = vmatmul.mubr.msk.f32.gmra.mrb[16].mxu1 %vm5645_vm11, %v5601_v3  ;;  %v5109_v16 = vsel %vm5084_vm6, %v5028_v7, %v10648_v34  ;;  %v5391_v31 = vsel %vm5327_vm9, %v5310_v18, %v10425_v0  ;;  %v5530_v44 = vrot.slane %v5351_v38, 1  ;;  %v5149_v28 = vsel %vm5084_vm6, %v5068_v6, %v10655_v36  ;;  %v12764_v23 = vld [vmem:[#allocation19_spill] sm:$0xff]  ;;  %v12766_v3 = vld [vmem:[#allocation21_spill] sm:$0xff]  ;;  %v12767_v6 = vld [vmem:[#allocation48_spill] sm:$0xff] }
 0x32d   : > { %v5190_v61 = vsel %vm5165_vm7, %v5109_v16, %v10308_v57  ;;  %v5602_v45 = vrot.slane %v5391_v31, 1  ;;  %v5230_v41 = vsel %vm5165_vm7, %v5149_v28, %v10312_v37  ;;  %v10674_v25 = vpop.permute.xlu0 %4373  ;;  %v4848_v7 = vsel %vm4830_vm2, %v12764_v23, %v12763_v4  ;;  %v12765_v18 = vld [vmem:[#allocation227_spill] sm:$0xff]  ;;  %v12768_v16 = vld [vmem:[#allocation98_spill] sm:$0xff] }
 0x32e   : > { %v5271_v59 = vsel %vm5246_vm8, %v5190_v61, %v10377_v49  ;;  %v5531_v21 = vsel %vm5488_vm10, %v5528_v20, %v5530_v44  ;;  %v5311_v0 = vsel %vm5246_vm8, %v5230_v41, %v10385_v62  ;;  %v4847_v38 = vsel %vm4830_vm2, %v12766_v3, %v12765_v18  ;;  %v12770_v61 = vld [vmem:[#allocation50_spill] sm:$0xff] }
 0x32f   : > { %v5603_v58 = vsel %vm5488_vm10, %v5600_v8, %v5602_v45  ;;  %6515 = vmatprep.mubr.msk.f32.mxu0 %vm5645_vm11, %v5531_v21  ;;  %v5352_v57 = vsel %vm5327_vm9, %v5271_v59, %v10545_v43  ;;  %v10679_v52 = vpop.permute.xlu1 %4375  ;;  %v5392_v37 = vsel %vm5327_vm9, %v5311_v0, %v10551_v24  ;;  %v12761_v8 = vld [vmem:[#allocation209_spill] sm:$0xff]  ;;  %v4866_v31 = vsel %vm4830_vm2, %v12768_v16, %v12767_v6  ;;  %v12772_v59 = vld [vmem:[#allocation8_spill] sm:$0xff]  ;;  %v12780_v16 = vld [vmem:[#allocation183_spill] sm:$0xff] }
 0x330   : > { %6563 = vmatprep.mubr.msk.f32.mxu1 %vm5645_vm11, %v5603_v58  ;;  %v5532_v49 = vrot.slane %v5352_v57, 1  ;;  %v5604_v47 = vrot.slane %v5392_v37, 1  ;;  %v4846_v17 = vsel %vm4830_vm2, %v12762_v54, %v12761_v8  ;;  %v12773_v21 = vld [vmem:[#allocation100_spill] sm:$0xff]  ;;  %v12774_v58 = vld [vmem:[#allocation93_spill] sm:$0xff] }
 0x331   : > { %v10686_v29 = vpop.permute.xlu0 %4413  ;;  %v4867_v0 = vsel %vm4830_vm2, %v12773_v21, %v12772_v59  ;;  %v10732_v57 = vsel %vm4876_vm3, %v4847_v38, %v12774_v58  ;;  %v12777_v54 = vld [vmem:[#allocation160_spill] sm:$0xff] }
 0x332   : > { %v5533_v62 = vsel %vm5488_vm10, %v5530_v44, %v5532_v49  ;;  %v5605_v40 = vsel %vm5488_vm10, %v5602_v45, %v5604_v47  ;;  %v12769_v44 = vld [vmem:[#allocation92_spill] sm:$0xff] }
 0x333   : > { %6516 = vmatmul.mubr.msk.f32.gmra.mrb[18].mxu0 %vm5645_vm11, %v5533_v62  ;;  %v10690_v43 = vpop.permute.xlu1 %4415  ;;  %6564 = vmatmul.mubr.msk.f32.gmra.mrb[18].mxu1 %vm5645_vm11, %v5605_v40  ;;  %v10722_v28 = vsel %vm4876_vm3, %v4846_v17, %v12769_v44  ;;  %v12771_v45 = vld [vmem:[#allocation104_spill] sm:$0xff]  ;;  %v12776_v40 = vld [vmem:[#allocation110_spill] sm:$0xff]  ;;  %v4949_v17 = vsel %vm4922_vm4, %v10732_v57, %v12777_v54 }
 0x334   : > { %v4868_v41 = vsel %vm4830_vm2, %v12771_v45, %v12770_v61  ;;  %v4948_v37 = vsel %vm4922_vm4, %v10722_v28, %v12721_v53  ;;  %v12775_v47 = vld [vmem:[#allocation96_spill] sm:$0xff]  ;;  %v10745_v8 = vsel %vm4876_vm3, %v4866_v31, %v12776_v40  ;;  %v12778_v53 = vld [vmem:[#allocation135_spill] sm:$0xff]  ;;  %v5030_v38 = vsel %vm5003_vm5, %v4949_v17, %v12729_v14  ;;  %v10780_v14 = vld [vmem:[%s11469_s2] ss:$0 sm:$0xff] }
 0x335   : > { %v10693_v1 = vpop.permute.xlu0 %4377  ;;  %v10741_v62 = vsel %vm4876_vm3, %v4848_v7, %v12775_v47  ;;  %v5029_v4 = vsel %vm5003_vm5, %v4948_v37, %v12730_v2  ;;  %v10757_v18 = vsel %vm4876_vm3, %v4867_v0, %v12778_v53  ;;  %v12779_v7 = vld [vmem:[#allocation139_spill] sm:$0xff]  ;;  %v4988_v31 = vsel %vm4922_vm4, %v10745_v8, %v12780_v16 }
 0x336   : > { %v10761_v3 = vsel %vm4876_vm3, %v4868_v41, %v12779_v7  ;;  %v5110_v6 = vsel %vm5084_vm6, %v5029_v4, %v10459_v13  ;;  %v4950_v2 = vsel %vm4922_vm4, %v10741_v62, %v12742_v39  ;;  %v5111_v44 = vsel %vm5084_vm6, %v5030_v38, %v10466_v30  ;;  %v12781_v13 = vld [vmem:[#allocation187_spill] sm:$0xff] }
 0x337   : > { %v10695_v24 = vpop.permute.xlu1 %4417  ;;  %v5191_v61 = vsel %vm5165_vm7, %v5110_v6, %v10674_v25  ;;  %v4989_v45 = vsel %vm4922_vm4, %v10757_v18, %v12781_v13  ;;  %v4990_v39 = vsel %vm4922_vm4, %v10761_v3, %v12745_v26  ;;  %v5192_v41 = vsel %vm5165_vm7, %v5111_v44, %v10679_v52 }
 0x338   : > { %v5070_v21 = vsel %vm5003_vm5, %v4989_v45, %v12738_v11  ;;  %v5069_v0 = vsel %vm5003_vm5, %v4988_v31, %v12737_v5  ;;  %v5071_v6 = vsel %vm5003_vm5, %v4990_v39, %v12749_v50 }
 0x339   : > { %v10697_v20 = vpop.permute.xlu0 %4583  ;;  %v5150_v40 = vsel %vm5084_vm6, %v5069_v0, %v10502_v55  ;;  %v5151_v4 = vsel %vm5084_vm6, %v5070_v21, %v10508_v46  ;;  %v5031_v55 = vsel %vm5003_vm5, %v4950_v2, %v12747_v56  ;;  %v5152_v0 = vsel %vm5084_vm6, %v5071_v6, %v10581_v42 }
 0x33a   : > { %v5272_v30 = vsel %vm5246_vm8, %v5191_v61, %v10697_v20  ;;  %v5231_v53 = vsel %vm5165_vm7, %v5150_v40, %v10686_v29  ;;  %v5232_v16 = vsel %vm5165_vm7, %v5151_v4, %v10690_v43  ;;  %v5112_v39 = vsel %vm5084_vm6, %v5031_v55, %v10574_v12 }
 0x33b   : > { %v10699_v22 = vpop.permute.xlu1 %4585 }
 0x33c   : > { %v5273_v26 = vsel %vm5246_vm8, %v5192_v41, %v10699_v22 }
 0x33e   : > { %v10702_v63 = vpop.permute.xlu0 %4623 }
 0x33f   : > { %v10704_v19 = vpop.permute.xlu1 %4625  ;;  %v5312_v31 = vsel %vm5246_vm8, %v5231_v53, %v10702_v63 }
 0x340   : > { %v5313_v61 = vsel %vm5246_vm8, %v5232_v16, %v10704_v19 }
 0x342   : > { %v10737_v49 = vpop.permute.xlu0 %4587 }
 0x343   : > { %v10752_v23 = vpop.permute.xlu1 %4627 }
 0x346   : > { %v10792_v59 = vpop.permute.xlu0 %4725 }
 0x347   : > { %v10805_v58 = vpop.permute.xlu1 %4727  ;;  %v5353_v37 = vsel %vm5327_vm9, %v5272_v30, %v10792_v59  ;;  %v6490_v47 = vpop.f32.mrb[0].mxu0 }
 0x348   : > { %v5354_v54 = vsel %vm5327_vm9, %v5273_v26, %v10805_v58  ;;  %v5534_v11 = vrot.slane %v5353_v37, 1  ;;  %v5850_v5 = vadd.f32 %v6490_v47, %v10780_v14  ;;  %v5844_v17 = vpop.f32.mrb[1].mxu0  ;;  %v5193_v26 = vsel %vm5165_vm7, %v5112_v39, %v10693_v1  ;;  %v12786_v39 = vld [vmem:[#allocation51_spill] sm:$0xff] }
 0x349   : > { %v5535_v7 = vrot.slane %v5354_v54, 1  ;;  %v5845_v38 = vadd.f32 %v10780_v14, %v5844_v17  ;;  %v6538_v46 = vpop.f32.mrb[0].mxu1  ;;  %v5233_v47 = vsel %vm5165_vm7, %v5152_v0, %v10695_v24  ;;  %v5274_v12 = vsel %vm5246_vm8, %v5193_v26, %v10737_v49  ;;  %v12789_v0 = vld [vmem:[#allocation102_spill] sm:$0xff] }
 0x34a   : > { %6164 = vst [vmem:[%s10797_s30 + $0x8] sm:$0xff] %v5850_v5  ;;  %v10828_v44 = vpop.permute.xlu0 %4765  ;;  %v6010_v56 = vadd.f32 %v6538_v46, %v10780_v14  ;;  %v6004_v45 = vpop.f32.mrb[1].mxu1  ;;  %v5314_v54 = vsel %vm5246_vm8, %v5233_v47, %v10752_v23 }
 0x34b   : > { %6163 = vst [vmem:[%s10797_s30] sm:$0xff] %v5845_v38  ;;  %v10833_v13 = vpop.permute.xlu1 %4767  ;;  %v5393_v50 = vsel %vm5327_vm9, %v5312_v31, %v10828_v44  ;;  %v5536_v2 = vsel %vm5488_vm10, %v5534_v11, %v5535_v7  ;;  %v6005_v21 = vadd.f32 %v10780_v14, %v6004_v45 }
 0x34c   : > { %v5394_v41 = vsel %vm5327_vm9, %v5313_v61, %v10833_v13  ;;  %v5606_v30 = vrot.slane %v5393_v50, 1  ;;  %6518 = vmatprep.mubr.msk.f32.mxu0 %vm5645_vm11, %v5536_v2  ;;  %6196 = vst [vmem:[%s10797_s30 + $0x108] sm:$0xff] %v6010_v56  ;;  %v12782_v61 = vld [vmem:[#allocation230_spill] sm:$0xff]  ;;  %v12783_v56 = vld [vmem:[#allocation61_spill] sm:$0xff]  ;;  %v12784_v2 = vld [vmem:[#allocation231_spill] sm:$0xff] }
 0x34d   : > { %v5607_v37 = vrot.slane %v5394_v41, 1  ;;  %6195 = vst [vmem:[%s10797_s30 + $0x100] sm:$0xff] %v6005_v21  ;;  %v4849_v50 = vsel %vm4830_vm2, %v12783_v56, %v12782_v61  ;;  %v12787_v41 = vld [vmem:[#allocation107_spill] sm:$0xff]  ;;  %v12788_v21 = vld [vmem:[#allocation17_spill] sm:$0xff]  ;;  %v12793_v61 = vld [vmem:[#allocation140_spill] sm:$0xff] }
 0x34e   : > { %v10855_v40 = vpop.permute.xlu0 %4729  ;;  %v4869_v26 = vsel %vm4830_vm2, %v12789_v0, %v12788_v21  ;;  %v12796_v0 = vld [vmem:[#allocation171_spill] sm:$0xff] }
 0x34f   : > { %v10859_v11 = vpop.permute.xlu1 %4769  ;;  %v10863_v42 = vsel %vm5327_vm9, %v5274_v12, %v10855_v40  ;;  %v5608_v5 = vsel %vm5488_vm10, %v5606_v30, %v5607_v37  ;;  %v4870_v30 = vsel %vm4830_vm2, %v12787_v41, %v12786_v39  ;;  %v12794_v39 = vld [vmem:[#allocation168_spill] sm:$0xff]  ;;  %v12795_v41 = vld [vmem:[#allocation159_spill] sm:$0xff] }
 0x350   : > { %v10868_v17 = vsel %vm5327_vm9, %v5314_v54, %v10859_v11  ;;  %v11911_v4 = vrot.slane %v10863_v42, 1  ;;  %6566 = vmatprep.mubr.msk.f32.mxu1 %vm5645_vm11, %v5608_v5  ;;  %v12791_v54 = vld [vmem:[#allocation105_spill] sm:$0xff]  ;;  %v4916_v56 = vsel %vm4876_vm3, %v4870_v30, %v12793_v61  ;;  %v4958_v21 = vsel %vm4922_vm4, %v12795_v41, %v12794_v39  ;;  %v12800_v61 = vld [vmem:[#allocation174_spill] sm:$0xff] }
 0x351   : > { %v11910_v53 = vrot.slane %v10868_v17, 1  ;;  %v4954_v30 = vsel %vm4922_vm4, %v10732_v57, %v12796_v0 }
 0x352   : > { %v10873_v38 = vpop.permute.xlu0 %4379  ;;  %v5538_v55 = vsel %vm5488_vm10, %v5535_v7, %v11911_v4  ;;  %v12785_v7 = vld [vmem:[#allocation60_spill] sm:$0xff]  ;;  %v12806_v4 = vld [vmem:[#allocation195_spill] sm:$0xff] }
 0x353   : > { %v10878_v6 = vpop.permute.xlu1 %4419  ;;  %6519 = vmatmul.mubr.msk.f32.gmra.mrb[20].mxu0 %vm5645_vm11, %v5538_v55  ;;  %v5610_v16 = vsel %vm5488_vm10, %v5607_v37, %v11910_v53  ;;  %v4850_v45 = vsel %vm4830_vm2, %v12785_v7, %v12784_v2  ;;  %v12790_v37 = vld [vmem:[#allocation89_spill] sm:$0xff]  ;;  %v12792_v55 = vld [vmem:[#allocation142_spill] sm:$0xff]  ;;  %v4992_v53 = vsel %vm4922_vm4, %v4916_v56, %v12758_v51 }
 0x354   : > { %6567 = vmatmul.mubr.msk.f32.gmra.mrb[20].mxu1 %vm5645_vm11, %v5610_v16  ;;  %v4895_v47 = vsel %vm4876_vm3, %v4849_v50, %v12790_v37  ;;  %v4896_v5 = vsel %vm4876_vm3, %v4850_v45, %v12791_v54  ;;  %v4915_v16 = vsel %vm4876_vm3, %v4869_v26, %v12792_v55  ;;  %v4953_v50 = vsel %vm4922_vm4, %v10722_v28, %v12794_v39  ;;  %v12797_v26 = vld [vmem:[#allocation170_spill] sm:$0xff]  ;;  %v12798_v37 = vld [vmem:[#allocation33_spill] sm:$0xff]  ;;  %v12801_v39 = vld [vmem:[#allocation172_spill] sm:$0xff] }
 0x355   : > { %v4951_v2 = vsel %vm4922_vm4, %v4895_v47, %v12744_v32  ;;  %v4952_v45 = vsel %vm4922_vm4, %v4896_v5, %v12757_v10  ;;  %v10929_v32 = vsel %vm4922_vm4, %v10741_v62, %v12797_v26  ;;  %v10934_v28 = vsel %vm4922_vm4, %v12798_v37, %v12797_v26  ;;  %v12799_v54 = vld [vmem:[#allocation9_spill] sm:$0xff]  ;;  %v12802_v62 = vld [vmem:[#allocation224_spill] sm:$0xff]  ;;  %v12804_v26 = vld [vmem:[#allocation43_spill] sm:$0xff] }
 0x356   : > { %v10885_v31 = vpop.permute.xlu0 %4381  ;;  %v4959_v55 = vsel %vm4922_vm4, %v12799_v54, %v12796_v0  ;;  %v10941_v10 = vsel %vm4922_vm4, %v4895_v47, %v12800_v61  ;;  %v10945_v57 = vsel %vm4922_vm4, %v4896_v5, %v12801_v39  ;;  %v10950_v41 = vsel %vm4922_vm4, %v12802_v62, %v12801_v39  ;;  %v12805_v47 = vld [vmem:[#allocation190_spill] sm:$0xff] }
 0x357   : > { %v10887_v46 = vpop.permute.xlu1 %4421  ;;  %12803 = vst [vmem:[#allocation103_spill] sm:$0xff] %v10950_v41  ;;  %v10955_v37 = vsel %vm4922_vm4, %v12804_v26, %v12800_v61  ;;  %v4991_v0 = vsel %vm4922_vm4, %v4915_v16, %v12751_v15  ;;  %v4993_v5 = vsel %vm4922_vm4, %v10745_v8, %v12805_v47  ;;  %v4994_v39 = vsel %vm4922_vm4, %v10757_v18, %v12806_v4  ;;  %v12807_v26 = vld [vmem:[#allocation193_spill] sm:$0xff]  ;;  %v12809_v4 = vld [vmem:[#allocation186_spill] sm:$0xff] }
 0x358   : > { %v5032_v61 = vsel %vm5003_vm5, %v4951_v2, %v12752_v33  ;;  %v10976_v15 = vsel %vm4922_vm4, %v10761_v3, %v12807_v26  ;;  %v12808_v41 = vld [vmem:[#allocation197_spill] sm:$0xff]  ;;  %v5072_v51 = vsel %vm5003_vm5, %v4991_v0, %v12755_v9  ;;  %v10988_v33 = vsel %vm4922_vm4, %v4916_v56, %v12809_v4 }
 0x359   : > { %v10980_v8 = vsel %vm4922_vm4, %v4915_v16, %v12808_v41  ;;  %v5113_v18 = vsel %vm5084_vm6, %v5032_v61, %v10615_v35  ;;  %v5033_v2 = vsel %vm5003_vm5, %v4952_v45, %v12759_v27  ;;  %v5153_v3 = vsel %vm5084_vm6, %v5072_v51, %v10621_v48  ;;  %v12810_v41 = vld [vmem:[#allocation81_spill] sm:$0xff]  ;;  %v12812_v48 = vld [vmem:[#allocation130_spill] sm:$0xff] }
 0x35a   : > { %v10903_v12 = vpop.permute.xlu0 %4589  ;;  %v5194_v16 = vsel %vm5165_vm7, %v5113_v18, %v10873_v38  ;;  %v5034_v26 = vsel %vm5003_vm5, %v4953_v50, %v12810_v41  ;;  %v5039_v9 = vsel %vm5003_vm5, %v4958_v21, %v12810_v41  ;;  %v5234_v35 = vsel %vm5165_vm7, %v5153_v3, %v10878_v6 }
 0x35b   : > { %v10913_v7 = vpop.permute.xlu1 %4629  ;;  %v5275_v56 = vsel %vm5246_vm8, %v5194_v16, %v10903_v12  ;;  %v5035_v45 = vsel %vm5003_vm5, %v4954_v30, %v12812_v48  ;;  %v5040_v18 = vsel %vm5003_vm5, %v4959_v55, %v12812_v48  ;;  %v5114_v16 = vsel %vm5084_vm6, %v5033_v2, %v10648_v34 }
 0x35c   : > { %v5315_v61 = vsel %vm5246_vm8, %v5234_v35, %v10913_v7  ;;  %v12818_v34 = vrot.slane %v10868_v17, 1 }
 0x35e   : > { %v10959_v54 = vpop.permute.xlu0 %4591 }
 0x35f   : > { %v10971_v62 = vpop.permute.xlu1 %4631 }
 0x361   : > { %v6493_v27 = vpop.f32.mrb[2].mxu0 }
 0x362   : > { %v11004_v0 = vpop.permute.xlu0 %4731  ;;  %v5860_v41 = vadd.f32 %v6493_v27, %v10780_v14  ;;  %v5854_v35 = vpop.f32.mrb[3].mxu0 }
 0x363   : > { %12811 = vst [vmem:[#allocation106_spill] sm:$0xff] %v11004_v0  ;;  %v11010_v50 = vpop.permute.xlu1 %4771  ;;  %v6541_v51 = vpop.f32.mrb[2].mxu1  ;;  %v11014_v21 = vsel %vm5327_vm9, %v5275_v56, %v11004_v0  ;;  %v5073_v56 = vsel %vm5003_vm5, %v4992_v53, %v12760_v60  ;;  %v5855_v55 = vadd.f32 %v10780_v14, %v5854_v35  ;;  %v12817_v53 = vrot.slane %v10863_v42, 1 }
 0x364   : > { %12813 = vst [vmem:[#allocation6_spill] sm:$0xff] %v11010_v50  ;;  %v11021_v3 = vsel %vm5327_vm9, %v5315_v61, %v11010_v50  ;;  %v6020_v30 = vadd.f32 %v6541_v51, %v10780_v14  ;;  %v6014_v4 = vpop.f32.mrb[3].mxu1  ;;  %6166 = vst [vmem:[%s10797_s30 + $0x18] sm:$0xff] %v5860_v41  ;;  %v12814_v61 = vld [vmem:[#allocation254_spill] sm:$0xff]  ;;  %v12815_v51 = vld [vmem:[#allocation255_spill] sm:$0xff]  ;;  %v12816_v60 = vrot.slane %v11014_v21, 1 }
 0x365   : > { %v5611_v27 = vrot.slane %v11021_v3, 1  ;;  %v6015_v48 = vadd.f32 %v10780_v14, %v6014_v4  ;;  %v5074_v47 = vsel %vm5003_vm5, %v4993_v5, %v12814_v61  ;;  %v5075_v50 = vsel %vm5003_vm5, %v4994_v39, %v12815_v51  ;;  %6165 = vst [vmem:[%s10797_s30 + $0x10] sm:$0xff] %v5855_v55 }
 0x366   : > { %6198 = vst [vmem:[%s10797_s30 + $0x118] sm:$0xff] %v6020_v30  ;;  %v4179_v0 = vpop.permute.xlu0 %4178  ;;  %v5540_v41 = vsel %vm5488_vm10, %v12817_v53, %v12816_v60  ;;  %v5154_v4 = vsel %vm5084_vm6, %v5073_v56, %v10655_v36  ;;  %v12819_v56 = vld [vmem:[#allocation80_spill] sm:$0xff]  ;;  %v12822_v60 = vld [vmem:[#allocation5_spill] sm:$0xff] }
 0x367   : > { %6197 = vst [vmem:[%s10797_s30 + $0x110] sm:$0xff] %v6015_v48  ;;  %v4181_v5 = vpop.permute.xlu1 %4180  ;;  %v5115_v35 = vsel %vm5084_vm6, %v5034_v26, %v4179_v0  ;;  %v5120_v39 = vsel %vm5084_vm6, %v5039_v9, %v4179_v0  ;;  %6521 = vmatprep.mubr.msk.f32.mxu0 %vm5645_vm11, %v5540_v41  ;;  %v5612_v42 = vsel %vm5488_vm10, %v12818_v34, %v5611_v27  ;;  %v12820_v0 = vld [vmem:[#allocation166_spill] sm:$0xff] }
 0x368   : > { %v5116_v2 = vsel %vm5084_vm6, %v5035_v45, %v4181_v5  ;;  %v5121_v30 = vsel %vm5084_vm6, %v5040_v18, %v4181_v5  ;;  %v5196_v36 = vsel %vm5165_vm7, %v5115_v35, %v10674_v25  ;;  %v5201_v26 = vsel %vm5165_vm7, %v5120_v39, %v12819_v56  ;;  %6569 = vmatprep.mubr.msk.f32.mxu1 %vm5645_vm11, %v5612_v42  ;;  %v12821_v45 = vld [vmem:[#allocation162_spill] sm:$0xff] }
 0x369   : > { %v5197_v9 = vsel %vm5165_vm7, %v5116_v2, %v10679_v52  ;;  %v5202_v17 = vsel %vm5165_vm7, %v5121_v30, %v12820_v0  ;;  %v5277_v55 = vsel %vm5246_vm8, %v5196_v36, %v10697_v20  ;;  %v5282_v18 = vsel %vm5246_vm8, %v5201_v26, %v12821_v45  ;;  %v12823_v52 = vld [vmem:[#allocation13_spill] sm:$0xff] }
 0x36a   : > { %v5195_v25 = vsel %vm5165_vm7, %v5114_v16, %v10885_v31  ;;  %v5278_v48 = vsel %vm5246_vm8, %v5197_v9, %v10699_v22  ;;  %v5283_v53 = vsel %vm5246_vm8, %v5202_v17, %v12822_v60  ;;  %v11076_v41 = vpop.permute.xlu0 %4218  ;;  %v5363_v5 = vsel %vm5327_vm9, %v5282_v18, %v12823_v52 }
 0x36b   : > { %v5235_v20 = vsel %vm5165_vm7, %v5154_v4, %v10887_v46  ;;  %v5276_v35 = vsel %vm5246_vm8, %v5195_v25, %v10959_v54  ;;  %v11084_v39 = vpop.permute.xlu1 %4220  ;;  %v5155_v16 = vsel %vm5084_vm6, %v5074_v47, %v11076_v41  ;;  %v5358_v22 = vsel %vm5327_vm9, %v5277_v55, %v10792_v59  ;;  %v12824_v59 = vld [vmem:[#allocation10_spill] sm:$0xff]  ;;  %v12825_v25 = vld [vmem:[#allocation136_spill] sm:$0xff] }
 0x36c   : > { %v5316_v34 = vsel %vm5246_vm8, %v5235_v20, %v10971_v62  ;;  %v5156_v42 = vsel %vm5084_vm6, %v5075_v50, %v11084_v39  ;;  %v5236_v4 = vsel %vm5165_vm7, %v5155_v16, %v10686_v29  ;;  %v11098_v2 = vsel %vm5327_vm9, %v5278_v48, %v10805_v58  ;;  %v12828_v16 = vld [vmem:[#allocation256_spill] sm:$0xff] }
 0x36d   : > { %v5237_v30 = vsel %vm5165_vm7, %v5156_v42, %v10690_v43  ;;  %v5317_v47 = vsel %vm5246_vm8, %v5236_v4, %v10702_v63  ;;  %v11106_v36 = vsel %vm5327_vm9, %v5283_v53, %v12824_v59  ;;  %v5552_v56 = vrot.slane %v5363_v5, 1  ;;  %v12827_v5 = vld [vmem:[#allocation147_spill] sm:$0xff]  ;;  %v12831_v59 = vld [vmem:[#allocation56_spill] sm:$0xff] }
 0x36e   : > { %v5318_v50 = vsel %vm5246_vm8, %v5237_v30, %v10704_v19  ;;  %v11110_v26 = vpop.permute.xlu0 %4733  ;;  %v5543_v29 = vrot.slane %v5358_v22, 1  ;;  %v5398_v58 = vsel %vm5327_vm9, %v5317_v47, %v10828_v44  ;;  %v5553_v9 = vrot.slane %v11106_v36, 1 }
 0x36f   : > { %v11115_v43 = vpop.permute.xlu1 %4773  ;;  %v5357_v63 = vsel %vm5327_vm9, %v5276_v35, %v11110_v26  ;;  %v5544_v0 = vrot.slane %v11098_v2, 1  ;;  %v5399_v17 = vsel %vm5327_vm9, %v5318_v50, %v10833_v13  ;;  %v5615_v55 = vrot.slane %v5398_v58, 1  ;;  %v12826_v13 = vld [vmem:[#allocation137_spill] sm:$0xff]  ;;  %v12830_v2 = vld [vmem:[#allocation58_spill] sm:$0xff] }
 0x370   : > { %v5397_v19 = vsel %vm5327_vm9, %v5316_v34, %v11115_v43  ;;  %v5541_v45 = vrot.slane %v5357_v63, 1  ;;  %v5616_v18 = vrot.slane %v5399_v17, 1  ;;  %v11127_v44 = vsel %vm5488_vm10, %v5552_v56, %v5553_v9  ;;  %v12833_v63 = vld [vmem:[#allocation12_spill] sm:$0xff] }
 0x371   : > { %v5036_v48 = vsel %vm5003_vm5, %v10929_v32, %v12825_v25  ;;  %v5041_v60 = vsel %vm5003_vm5, %v10934_v28, %v12825_v25  ;;  %v5037_v53 = vsel %vm5003_vm5, %v10941_v10, %v12826_v13  ;;  %v5613_v52 = vrot.slane %v5397_v19, 1  ;;  %v12834_v25 = vld [vmem:[#allocation103_spill] sm:$0xff] }
 0x372   : > { %v5038_v20 = vsel %vm5003_vm5, %v10945_v57, %v12827_v5  ;;  %v5042_v35 = vsel %vm5003_vm5, %v10955_v37, %v12826_v13  ;;  %v5076_v32 = vsel %vm5003_vm5, %v10976_v15, %v12828_v16  ;;  %v4183_v22 = vpop.permute.xlu0 %4182  ;;  %v12829_v28 = vrot.slane %v11014_v21, 1 }
 0x373   : > { %v11150_v42 = vpop.permute.xlu1 %4222  ;;  %v5117_v10 = vsel %vm5084_vm6, %v5036_v48, %v4183_v22  ;;  %v5122_v4 = vsel %vm5084_vm6, %v5041_v60, %v4183_v22  ;;  %v5614_v57 = vsel %vm5488_vm10, %v5611_v27, %v5613_v52  ;;  %v5545_v37 = vsel %vm5488_vm10, %v5543_v29, %v5544_v0  ;;  %v12835_v48 = vld [vmem:[#allocation258_spill] sm:$0xff]  ;;  %v12836_v52 = vld [vmem:[#allocation31_spill] sm:$0xff] }
 0x374   : > { %v5542_v34 = vsel %vm5488_vm10, %v12829_v28, %v5541_v45  ;;  %v5157_v15 = vsel %vm5084_vm6, %v5076_v32, %v11150_v42  ;;  %v5198_v21 = vsel %vm5165_vm7, %v5117_v10, %v10693_v1  ;;  %v5203_v30 = vsel %vm5165_vm7, %v5122_v4, %v12830_v2  ;;  %6570 = vmatmul.mubr.msk.f32.gmra.mrb[22].mxu1 %vm5645_vm11, %v5614_v57  ;;  %v12832_v1 = vld [vmem:[#allocation257_spill] sm:$0xff]  ;;  %v12837_v28 = vld [vmem:[#allocation106_spill] sm:$0xff] }
 0x375   : > { %6522 = vmatmul.mubr.msk.f32.gmra.mrb[22].mxu0 %vm5645_vm11, %v5542_v34  ;;  %v5617_v47 = vsel %vm5488_vm10, %v5615_v55, %v5616_v18  ;;  %v5238_v3 = vsel %vm5165_vm7, %v5157_v15, %v10695_v24  ;;  %v5279_v27 = vsel %vm5246_vm8, %v5198_v21, %v10737_v49  ;;  %v5284_v56 = vsel %vm5246_vm8, %v5203_v30, %v12831_v59  ;;  %v12840_v21 = vld [vmem:[#allocation38_spill] sm:$0xff] }
 0x376   : > { %6524 = vmatprep.mubr.msk.f32.mxu0 %vm5645_vm11, %v5545_v37  ;;  %6572 = vmatprep.mubr.msk.f32.mxu1 %vm5645_vm11, %v5617_v47  ;;  %v5077_v50 = vsel %vm5003_vm5, %v10980_v8, %v12832_v1  ;;  %v5319_v29 = vsel %vm5246_vm8, %v5238_v3, %v10752_v23  ;;  %v4185_v58 = vpop.permute.xlu0 %4184  ;;  %v5360_v24 = vsel %vm5327_vm9, %v5279_v27, %v10855_v40  ;;  %v12839_v37 = vld [vmem:[#allocation37_spill] sm:$0xff]  ;;  %v12841_v47 = vld [vmem:[#allocation40_spill] sm:$0xff] }
 0x377   : > { %v5365_v49 = vsel %vm5327_vm9, %v5284_v56, %v12833_v63  ;;  %v11184_v17 = vpop.permute.xlu1 %4224  ;;  %v5118_v55 = vsel %vm5084_vm6, %v5037_v53, %v4185_v58  ;;  %v5123_v19 = vsel %vm5084_vm6, %v5042_v35, %v4185_v58  ;;  %v5400_v45 = vsel %vm5327_vm9, %v5319_v29, %v10859_v11 }
 0x378   : > { %v5546_v8 = vrot.slane %v5360_v24, 1  ;;  %v5043_v23 = vsel %vm5003_vm5, %v12834_v25, %v12827_v5  ;;  %v5078_v40 = vsel %vm5003_vm5, %v10988_v33, %v12835_v48  ;;  %v5158_v60 = vsel %vm5084_vm6, %v5077_v50, %v11184_v17 }
 0x379   : > { %v5199_v13 = vsel %vm5165_vm7, %v5118_v55, %v10873_v38  ;;  %v5239_v53 = vsel %vm5165_vm7, %v5158_v60, %v10878_v6  ;;  %v5204_v11 = vsel %vm5165_vm7, %v5123_v19, %v12836_v52  ;;  %v5618_v5 = vrot.slane %v5400_v45, 1  ;;  %v12845_v60 = vld [vmem:[#allocation79_spill] sm:$0xff]  ;;  %v12846_v52 = vld [vmem:[#allocation53_spill] sm:$0xff] }
 0x37a   : > { %v5280_v35 = vsel %vm5246_vm8, %v5199_v13, %v10903_v12  ;;  %v5320_v32 = vsel %vm5246_vm8, %v5239_v53, %v10913_v7  ;;  %v4187_v33 = vpop.permute.xlu0 %4186  ;;  %v5547_v22 = vsel %vm5488_vm10, %v5544_v0, %v5546_v8  ;;  %v5555_v38 = vrot.slane %v5365_v49, 1  ;;  %v12838_v12 = vld [vmem:[#allocation6_spill] sm:$0xff] }
 0x37b   : > { %v5361_v34 = vsel %vm5327_vm9, %v5280_v35, %v12837_v28  ;;  %v11211_v10 = vpop.permute.xlu1 %4226  ;;  %v5619_v6 = vsel %vm5488_vm10, %v5616_v18, %v5618_v5  ;;  %v5119_v4 = vsel %vm5084_vm6, %v5038_v20, %v4187_v33  ;;  %v5124_v57 = vsel %vm5084_vm6, %v5043_v23, %v4187_v33  ;;  %6525 = vmatmul.mubr.msk.f32.gmra.mrb[24].mxu0 %vm5645_vm11, %v5547_v22  ;;  %v12842_v49 = vld [vmem:[#allocation242_spill] sm:$0xff]  ;;  %v12849_v33 = vld [vmem:[#allocation141_spill] sm:$0xff] }
 0x37c   : > { %v5401_v7 = vsel %vm5327_vm9, %v5320_v32, %v12838_v12  ;;  %v5285_v0 = vsel %vm5246_vm8, %v5204_v11, %v12839_v37  ;;  %v5159_v15 = vsel %vm5084_vm6, %v5078_v40, %v11211_v10  ;;  %6573 = vmatmul.mubr.msk.f32.gmra.mrb[24].mxu1 %vm5645_vm11, %v5619_v6  ;;  %v5200_v18 = vsel %vm5165_vm7, %v5119_v4, %v10885_v31  ;;  %v12844_v40 = vld [vmem:[#allocation28_spill] sm:$0xff]  ;;  %v12847_v11 = vld [vmem:[#allocation115_spill] sm:$0xff]  ;;  %v12850_v28 = vld [vmem:[#allocation190_spill] sm:$0xff] }
 0x37d   : > { %v5205_v20 = vsel %vm5165_vm7, %v5124_v57, %v12840_v21  ;;  %v5240_v2 = vsel %vm5165_vm7, %v5159_v15, %v10887_v46  ;;  %v5281_v30 = vsel %vm5246_vm8, %v5200_v18, %v10959_v54  ;;  %v5620_v27 = vrot.slane %v5401_v7, 1  ;;  %v12851_v6 = vld [vmem:[#allocation22_spill] sm:$0xff]  ;;  %v12853_v12 = vld [vmem:[#allocation195_spill] sm:$0xff] }
 0x37e   : > { %v5286_v3 = vsel %vm5246_vm8, %v5205_v20, %v12841_v47  ;;  %v5321_v59 = vsel %vm5246_vm8, %v5240_v2, %v10971_v62  ;;  %v4424_v56 = vpop.permute.xlu0 %4423  ;;  %v5548_v50 = vrot.slane %v5361_v34, 1  ;;  %v5362_v31 = vsel %vm5327_vm9, %v5281_v30, %v11110_v26  ;;  %v12852_v4 = vld [vmem:[#allocation118_spill] sm:$0xff] }
 0x37f   : > { %v5556_v29 = vsel %vm5488_vm10, %v5553_v9, %v5555_v38  ;;  %v4426_v46 = vpop.permute.xlu1 %4425  ;;  %v5621_v58 = vsel %vm5488_vm10, %v5618_v5, %v5620_v27  ;;  %v5402_v54 = vsel %vm5327_vm9, %v5321_v59, %v11115_v43  ;;  %v5550_v24 = vrot.slane %v5362_v31, 1  ;;  %v12843_v9 = vld [vmem:[#allocation200_spill] sm:$0xff]  ;;  %v12848_v5 = vld [vmem:[#allocation143_spill] sm:$0xff]  ;;  %v12854_v21 = vld [vmem:[#allocation146_spill] sm:$0xff] }
 0x380   : > { %6575 = vmatprep.mubr.msk.f32.mxu1 %vm5645_vm11, %v5621_v58  ;;  %v5549_v62 = vsel %vm5488_vm10, %v5546_v8, %v5548_v50  ;;  %v5622_v63 = vrot.slane %v5402_v54, 1  ;;  %v5366_v55 = vsel %vm5327_vm9, %v5285_v0, %v12842_v49  ;;  %v5367_v19 = vsel %vm5327_vm9, %v5286_v3, %v12843_v9 }
 0x381   : > { %6527 = vmatprep.mubr.msk.f32.mxu0 %vm5645_vm11, %v5549_v62  ;;  %v5551_v36 = vsel %vm5488_vm10, %v5548_v50, %v5550_v24  ;;  %v5557_v26 = vrot.slane %v5366_v55, 1  ;;  %v5559_v25 = vrot.slane %v5367_v19, 1  ;;  %v4871_v13 = vsel %vm4830_vm2, %v12845_v60, %v12844_v40  ;;  %v12858_v40 = vld [vmem:[#allocation144_spill] sm:$0xff] }
 0x382   : > { %v5623_v45 = vsel %vm5488_vm10, %v5620_v27, %v5622_v63  ;;  %v4428_v43 = vpop.permute.xlu0 %4427  ;;  %6528 = vmatmul.mubr.msk.f32.gmra.mrb[26].mxu0 %vm5645_vm11, %v5551_v36  ;;  %v4872_v35 = vsel %vm4830_vm2, %v12847_v11, %v12846_v52  ;;  %v4917_v32 = vsel %vm4876_vm3, %v4871_v13, %v12848_v5  ;;  %v4873_v57 = vsel %vm4830_vm2, %v12852_v4, %v12851_v6  ;;  %v12861_v5 = vld [vmem:[#allocation124_spill] sm:$0xff] }
 0x383   : > { %v4634_v23 = vpop.permute.xlu1 %4633  ;;  %6576 = vmatmul.mubr.msk.f32.gmra.mrb[26].mxu1 %vm5645_vm11, %v5623_v45  ;;  %6530 = vmatprep.mubr.msk.f32.mxu0 %vm5645_vm11, %v11127_v44  ;;  %v5558_v8 = vsel %vm5488_vm10, %v5555_v38, %v5557_v26  ;;  %v5560_v53 = vsel %vm5488_vm10, %v5557_v26, %v5559_v25  ;;  %v4918_v22 = vsel %vm4876_vm3, %v4872_v35, %v12849_v33  ;;  %v12860_v35 = vld [vmem:[#allocation57_spill] sm:$0xff] }
 0x384   : > { %v4998_v44 = vsel %vm4922_vm4, %v4917_v32, %v12850_v28  ;;  %v4999_v7 = vsel %vm4922_vm4, %v4918_v22, %v12853_v12  ;;  %v4919_v20 = vsel %vm4876_vm3, %v4873_v57, %v12854_v21  ;;  %v4875_v32 = vsel %vm4830_vm2, %v12861_v5, %v12860_v35  ;;  %v12862_v22 = vld [vmem:[#allocation148_spill] sm:$0xff] }
 0x385   : > { %v6496_v38 = vpop.f32.mrb[4].mxu0  ;;  %v5079_v37 = vsel %vm5003_vm5, %v4998_v44, %v12814_v61  ;;  %v5080_v2 = vsel %vm5003_vm5, %v4999_v7, %v12815_v51  ;;  %v12855_v51 = vld [vmem:[#allocation193_spill] sm:$0xff]  ;;  %v4921_v28 = vsel %vm4876_vm3, %v4875_v32, %v12862_v22 }
 0x386   : > { %v4636_v34 = vpop.permute.xlu0 %4635  ;;  %6531 = vmatmul.mubr.msk.f32.gmra.mrb[28].mxu0 %vm5645_vm11, %v5556_v29  ;;  %v5870_v18 = vadd.f32 %v6496_v38, %v10780_v14  ;;  %v5160_v30 = vsel %vm5084_vm6, %v5079_v37, %v11076_v41  ;;  %v5864_v61 = vpop.f32.mrb[5].mxu0  ;;  %v5161_v27 = vsel %vm5084_vm6, %v5080_v2, %v11084_v39  ;;  %v5000_v29 = vsel %vm4922_vm4, %v4919_v20, %v12855_v51 }
 0x387   : > { %v4638_v0 = vpop.permute.xlu1 %4637  ;;  %v6544_v15 = vpop.f32.mrb[4].mxu1  ;;  %6533 = vmatprep.mubr.msk.f32.mxu0 %vm5645_vm11, %v5558_v8  ;;  %v5241_v59 = vsel %vm5165_vm7, %v5160_v30, %v4424_v56  ;;  %v5865_v50 = vadd.f32 %v10780_v14, %v5864_v61  ;;  %v5242_v41 = vsel %vm5165_vm7, %v5161_v27, %v4426_v46  ;;  %v5081_v39 = vsel %vm5003_vm5, %v5000_v29, %v12828_v16  ;;  %v12857_v8 = vld [vmem:[#allocation238_spill] sm:$0xff] }
 0x388   : > { %v6030_v47 = vadd.f32 %v6544_v15, %v10780_v14  ;;  %v6024_v3 = vpop.f32.mrb[5].mxu1  ;;  %6168 = vst [vmem:[%s10797_s30 + $0x28] sm:$0xff] %v5870_v18  ;;  %v5322_v58 = vsel %vm5246_vm8, %v5241_v59, %v4634_v23  ;;  %v5323_v56 = vsel %vm5246_vm8, %v5242_v41, %v4636_v34  ;;  %v5162_v63 = vsel %vm5084_vm6, %v5081_v39, %v11150_v42  ;;  %v12856_v23 = vld [vmem:[#allocation59_spill] sm:$0xff]  ;;  %v12863_v34 = vld [vmem:[#allocation186_spill] sm:$0xff] }
 0x389   : > { %v6025_v31 = vadd.f32 %v10780_v14, %v6024_v3  ;;  %6167 = vst [vmem:[%s10797_s30 + $0x20] sm:$0xff] %v5865_v50  ;;  %v5243_v55 = vsel %vm5165_vm7, %v5162_v63, %v4428_v43  ;;  %v4874_v42 = vsel %vm4830_vm2, %v12857_v8, %v12856_v23  ;;  %v5002_v38 = vsel %vm4922_vm4, %v4921_v28, %v12863_v34 }
 0x38a   : > { %6200 = vst [vmem:[%s10797_s30 + $0x128] sm:$0xff] %v6030_v47  ;;  %6534 = vmatmul.mubr.msk.f32.gmra.mrb[30].mxu0 %vm5645_vm11, %v5560_v53  ;;  %v5324_v26 = vsel %vm5246_vm8, %v5243_v55, %v4638_v0  ;;  %v4920_v60 = vsel %vm4876_vm3, %v4874_v42, %v12858_v40  ;;  %v12859_v53 = vld [vmem:[#allocation197_spill] sm:$0xff]  ;;  %v5083_v57 = vsel %vm5003_vm5, %v5002_v38, %v12835_v48 }
 0x38b   : > { %v4776_v54 = vpop.permute.xlu0 %4775  ;;  %6199 = vst [vmem:[%s10797_s30 + $0x120] sm:$0xff] %v6025_v31  ;;  %v4778_v24 = vpop.permute.xlu1 %4777  ;;  %v5001_v52 = vsel %vm4922_vm4, %v4920_v60, %v12859_v53 }
 0x38c   : > { %v5403_v62 = vsel %vm5327_vm9, %v5322_v58, %v4776_v54  ;;  %v5404_v46 = vsel %vm5327_vm9, %v5323_v56, %v4778_v24  ;;  %v5082_v33 = vsel %vm5003_vm5, %v5001_v52, %v12832_v1  ;;  %v5164_v1 = vsel %vm5084_vm6, %v5083_v57, %v11211_v10 }
 0x38d   : > { %v5624_v49 = vrot.slane %v5403_v62, 1  ;;  %v5625_v36 = vrot.slane %v5404_v46, 1  ;;  %v5163_v44 = vsel %vm5084_vm6, %v5082_v33, %v11184_v17 }
 0x38f   : > { %v4780_v9 = vpop.permute.xlu0 %4779  ;;  %v4430_v16 = vpop.permute.xlu1 %4429  ;;  %v5626_v45 = vsel %vm5488_vm10, %v5624_v49, %v5625_v36 }
 0x390   : > { %v5405_v19 = vsel %vm5327_vm9, %v5324_v26, %v4780_v9  ;;  %6578 = vmatprep.mubr.msk.f32.mxu1 %vm5645_vm11, %v5626_v45  ;;  %v5244_v6 = vsel %vm5165_vm7, %v5163_v44, %v4430_v16 }
 0x391   : > { %v5627_v25 = vrot.slane %v5405_v19, 1 }
 0x393   : > { %v4432_v43 = vpop.permute.xlu0 %4431  ;;  %v5628_v13 = vsel %vm5488_vm10, %v5625_v36, %v5627_v25  ;;  %v4640_v11 = vpop.permute.xlu1 %4639 }
 0x394   : > { %6579 = vmatmul.mubr.msk.f32.gmra.mrb[28].mxu1 %vm5645_vm11, %v5628_v13  ;;  %v5325_v12 = vsel %vm5246_vm8, %v5244_v6, %v4640_v11  ;;  %v5245_v0 = vsel %vm5165_vm7, %v5164_v1, %v4432_v43 }
 0x397   : > { %v4642_v4 = vpop.permute.xlu0 %4641 }
 0x398   : > { %v5326_v15 = vsel %vm5246_vm8, %v5245_v0, %v4642_v4 }
 0x399   : > { %v4782_v7 = vpop.permute.xlu1 %4781 }
 0x39a   : > { %v5406_v37 = vsel %vm5327_vm9, %v5325_v12, %v4782_v7 }
 0x39b   : > { %v5629_v17 = vrot.slane %v5406_v37, 1  ;;  %v4784_v18 = vpop.permute.xlu0 %4783 }
 0x39c   : > { %v5407_v21 = vsel %vm5327_vm9, %v5326_v15, %v4784_v18 }
 0x39d   : > { %v5630_v48 = vsel %vm5488_vm10, %v5627_v25, %v5629_v17  ;;  %v5631_v20 = vrot.slane %v5407_v21, 1 }
 0x39e   : > { %6581 = vmatprep.mubr.msk.f32.mxu1 %vm5645_vm11, %v5630_v48 }
 0x39f   : > { %v5632_v10 = vsel %vm5488_vm10, %v5629_v17, %v5631_v20 }
 0x3a0   : > { %6582 = vmatmul.mubr.msk.f32.gmra.mrb[30].mxu1 %vm5645_vm11, %v5632_v10 }
 0x3a5   : > { %v6499_v2 = vpop.f32.mrb[6].mxu0 }
 0x3a6   : > { %v5880_v30 = vadd.f32 %v6499_v2, %v10780_v14  ;;  %v5874_v61 = vpop.f32.mrb[7].mxu0 }
 0x3a7   : > { %v6547_v47 = vpop.f32.mrb[6].mxu1  ;;  %v5875_v27 = vadd.f32 %v10780_v14, %v5874_v61 }
 0x3a8   : > { %v6040_v3 = vadd.f32 %v6547_v47, %v10780_v14  ;;  %v6034_v59 = vpop.f32.mrb[7].mxu1  ;;  %6170 = vst [vmem:[%s10797_s30 + $0x38] sm:$0xff] %v5880_v30 }
 0x3a9   : > { %v6035_v50 = vadd.f32 %v10780_v14, %v6034_v59  ;;  %6169 = vst [vmem:[%s10797_s30 + $0x30] sm:$0xff] %v5875_v27 }
 0x3aa   : > { %6202 = vst [vmem:[%s10797_s30 + $0x138] sm:$0xff] %v6040_v3 }
 0x3ab   : > { %6201 = vst [vmem:[%s10797_s30 + $0x130] sm:$0xff] %v6035_v50 }
 0x3ac   : > { %v6502_v31 = vpop.f32.mrb[8].mxu0 }
 0x3ad   : > { %v5890_v51 = vadd.f32 %v6502_v31, %v10780_v14  ;;  %v5884_v41 = vpop.f32.mrb[9].mxu0 }
 0x3ae   : > { %v6550_v29 = vpop.f32.mrb[8].mxu1  ;;  %v5885_v54 = vadd.f32 %v10780_v14, %v5884_v41 }
 0x3af   : > { %v6050_v58 = vadd.f32 %v6550_v29, %v10780_v14  ;;  %v6044_v39 = vpop.f32.mrb[9].mxu1  ;;  %6172 = vst [vmem:[%s10797_s30 + $0x48] sm:$0xff] %v5890_v51 }
 0x3b0   : > { %v6045_v56 = vadd.f32 %v10780_v14, %v6044_v39  ;;  %6171 = vst [vmem:[%s10797_s30 + $0x40] sm:$0xff] %v5885_v54 }
 0x3b1   : > { %6204 = vst [vmem:[%s10797_s30 + $0x148] sm:$0xff] %v6050_v58 }
 0x3b2   : > { %6203 = vst [vmem:[%s10797_s30 + $0x140] sm:$0xff] %v6045_v56 }
 0x3b4   : > { %v6505_v24 = vpop.f32.mrb[10].mxu0 }
 0x3b5   : > { %v5900_v62 = vadd.f32 %v6505_v24, %v10780_v14  ;;  %v5894_v46 = vpop.f32.mrb[11].mxu0 }
 0x3b6   : > { %v6553_v63 = vpop.f32.mrb[10].mxu1  ;;  %v5895_v55 = vadd.f32 %v10780_v14, %v5894_v46 }
 0x3b7   : > { %v6060_v49 = vadd.f32 %v6553_v63, %v10780_v14  ;;  %v6054_v36 = vpop.f32.mrb[11].mxu1  ;;  %6174 = vst [vmem:[%s10797_s30 + $0x58] sm:$0xff] %v5900_v62 }
 0x3b8   : > { %v6055_v26 = vadd.f32 %v10780_v14, %v6054_v36  ;;  %6173 = vst [vmem:[%s10797_s30 + $0x50] sm:$0xff] %v5895_v55 }
 0x3b9   : > { %6206 = vst [vmem:[%s10797_s30 + $0x158] sm:$0xff] %v6060_v49 }
 0x3ba   : > { %6205 = vst [vmem:[%s10797_s30 + $0x150] sm:$0xff] %v6055_v26 }
 0x3d5   : > { %v6508_v9 = vpop.f32.mrb[12].mxu0 }
 0x3d6   : > { %v5910_v16 = vadd.f32 %v6508_v9, %v10780_v14  ;;  %v5904_v45 = vpop.f32.mrb[13].mxu0 }
 0x3d7   : > { %v5905_v23 = vadd.f32 %v10780_v14, %v5904_v45 }
 0x3d8   : > { %v6556_v19 = vpop.f32.mrb[12].mxu1  ;;  %6176 = vst [vmem:[%s10797_s30 + $0x68] sm:$0xff] %v5910_v16 }
 0x3d9   : > { %v6070_v25 = vadd.f32 %v6556_v19, %v10780_v14  ;;  %v6064_v8 = vpop.f32.mrb[13].mxu1  ;;  %6175 = vst [vmem:[%s10797_s30 + $0x60] sm:$0xff] %v5905_v23 }
 0x3da   : > { %v6065_v42 = vadd.f32 %v10780_v14, %v6064_v8 }
 0x3db   : > { %6208 = vst [vmem:[%s10797_s30 + $0x168] sm:$0xff] %v6070_v25 }
 0x3dc   : > { %6207 = vst [vmem:[%s10797_s30 + $0x160] sm:$0xff] %v6065_v42 }
 0x3f9   : > { %v6511_v40 = vpop.f32.mrb[14].mxu0  ;;  %v6559_v43 = vpop.f32.mrb[14].mxu1 }
 0x3fa   : > { %v5920_v60 = vadd.f32 %v6511_v40, %v10780_v14  ;;  %v5914_v13 = vpop.f32.mrb[15].mxu0  ;;  %v6080_v53 = vadd.f32 %v6559_v43, %v10780_v14  ;;  %v6074_v11 = vpop.f32.mrb[15].mxu1 }
 0x3fb   : > { %v5915_v52 = vadd.f32 %v10780_v14, %v5914_v13  ;;  %v6075_v35 = vadd.f32 %v10780_v14, %v6074_v11 }
 0x3fc   : > { %6178 = vst [vmem:[%s10797_s30 + $0x78] sm:$0xff] %v5920_v60  ;;  %6210 = vst [vmem:[%s10797_s30 + $0x178] sm:$0xff] %v6080_v53 }
 0x3fd   : > { %6177 = vst [vmem:[%s10797_s30 + $0x70] sm:$0xff] %v5915_v52  ;;  %6209 = vst [vmem:[%s10797_s30 + $0x170] sm:$0xff] %v6075_v35 }
 0x3fe   : > { %v6514_v5 = vpop.f32.mrb[16].mxu0 }
 0x3ff   : > { %v5930_v32 = vadd.f32 %v6514_v5, %v10780_v14  ;;  %v6562_v33 = vpop.f32.mrb[16].mxu1  ;;  %v5924_v22 = vpop.f32.mrb[17].mxu0 }
 0x400   : > { %v6090_v28 = vadd.f32 %v6562_v33, %v10780_v14  ;;  %v5925_v44 = vadd.f32 %v10780_v14, %v5924_v22  ;;  %v6084_v34 = vpop.f32.mrb[17].mxu1 }
 0x401   : > { %6180 = vst [vmem:[%s10797_s30 + $0x88] sm:$0xff] %v5930_v32  ;;  %v6085_v38 = vadd.f32 %v10780_v14, %v6084_v34 }
 0x402   : > { %6212 = vst [vmem:[%s10797_s30 + $0x188] sm:$0xff] %v6090_v28  ;;  %6179 = vst [vmem:[%s10797_s30 + $0x80] sm:$0xff] %v5925_v44 }
 0x403   : > { %6211 = vst [vmem:[%s10797_s30 + $0x180] sm:$0xff] %v6085_v38 }
 0x406   : > { %v6517_v6 = vpop.f32.mrb[18].mxu0  ;;  %v6565_v57 = vpop.f32.mrb[18].mxu1 }
 0x407   : > { %v5940_v4 = vadd.f32 %v6517_v6, %v10780_v14  ;;  %v5934_v12 = vpop.f32.mrb[19].mxu0  ;;  %v6100_v7 = vadd.f32 %v6565_v57, %v10780_v14  ;;  %v6094_v37 = vpop.f32.mrb[19].mxu1 }
 0x408   : > { %v5935_v1 = vadd.f32 %v10780_v14, %v5934_v12  ;;  %v6095_v0 = vadd.f32 %v10780_v14, %v6094_v37 }
 0x409   : > { %6182 = vst [vmem:[%s10797_s30 + $0x98] sm:$0xff] %v5940_v4  ;;  %6214 = vst [vmem:[%s10797_s30 + $0x198] sm:$0xff] %v6100_v7 }
 0x40a   : > { %6181 = vst [vmem:[%s10797_s30 + $0x90] sm:$0xff] %v5935_v1  ;;  %6213 = vst [vmem:[%s10797_s30 + $0x190] sm:$0xff] %v6095_v0 }
 0x426   : > { %v6520_v17 = vpop.f32.mrb[20].mxu0 }
 0x427   : > { %v5950_v15 = vadd.f32 %v6520_v17, %v10780_v14  ;;  %v6568_v18 = vpop.f32.mrb[20].mxu1  ;;  %v5944_v21 = vpop.f32.mrb[21].mxu0 }
 0x428   : > { %v6110_v48 = vadd.f32 %v6568_v18, %v10780_v14  ;;  %v5945_v20 = vadd.f32 %v10780_v14, %v5944_v21  ;;  %v6104_v10 = vpop.f32.mrb[21].mxu1 }
 0x429   : > { %6184 = vst [vmem:[%s10797_s30 + $0xa8] sm:$0xff] %v5950_v15  ;;  %v6105_v2 = vadd.f32 %v10780_v14, %v6104_v10 }
 0x42a   : > { %6216 = vst [vmem:[%s10797_s30 + $0x1a8] sm:$0xff] %v6110_v48  ;;  %6183 = vst [vmem:[%s10797_s30 + $0xa0] sm:$0xff] %v5945_v20 }
 0x42b   : > { %6215 = vst [vmem:[%s10797_s30 + $0x1a0] sm:$0xff] %v6105_v2 }
 0x447   : > { %v6571_v61 = vpop.f32.mrb[22].mxu1 }
 0x448   : > { %v6523_v30 = vpop.f32.mrb[22].mxu0  ;;  %v6120_v27 = vadd.f32 %v6571_v61, %v10780_v14  ;;  %v6114_v50 = vpop.f32.mrb[23].mxu1 }
 0x449   : > { %v5960_v47 = vadd.f32 %v6523_v30, %v10780_v14  ;;  %v5954_v3 = vpop.f32.mrb[23].mxu0  ;;  %v6115_v31 = vadd.f32 %v10780_v14, %v6114_v50 }
 0x44a   : > { %v5955_v59 = vadd.f32 %v10780_v14, %v5954_v3  ;;  %6218 = vst [vmem:[%s10797_s30 + $0x1b8] sm:$0xff] %v6120_v27 }
 0x44b   : > { %6186 = vst [vmem:[%s10797_s30 + $0xb8] sm:$0xff] %v5960_v47  ;;  %6217 = vst [vmem:[%s10797_s30 + $0x1b0] sm:$0xff] %v6115_v31 }
 0x44c   : > { %6185 = vst [vmem:[%s10797_s30 + $0xb0] sm:$0xff] %v5955_v59 }
 0x44e   : > { %v6526_v51 = vpop.f32.mrb[24].mxu0 }
 0x44f   : > { %v5970_v29 = vadd.f32 %v6526_v51, %v10780_v14  ;;  %v6574_v41 = vpop.f32.mrb[24].mxu1  ;;  %v5964_v58 = vpop.f32.mrb[25].mxu0 }
 0x450   : > { %v6130_v54 = vadd.f32 %v6574_v41, %v10780_v14  ;;  %v5965_v39 = vadd.f32 %v10780_v14, %v5964_v58  ;;  %v6124_v56 = vpop.f32.mrb[25].mxu1 }
 0x451   : > { %6188 = vst [vmem:[%s10797_s30 + $0xc8] sm:$0xff] %v5970_v29  ;;  %v6125_v24 = vadd.f32 %v10780_v14, %v6124_v56 }
 0x452   : > { %6220 = vst [vmem:[%s10797_s30 + $0x1c8] sm:$0xff] %v6130_v54  ;;  %6187 = vst [vmem:[%s10797_s30 + $0xc0] sm:$0xff] %v5965_v39 }
 0x453   : > { %6219 = vst [vmem:[%s10797_s30 + $0x1c0] sm:$0xff] %v6125_v24 }
 0x455   : > { %v6529_v62 = vpop.f32.mrb[26].mxu0 }
 0x456   : > { %v5980_v63 = vadd.f32 %v6529_v62, %v10780_v14  ;;  %v6577_v46 = vpop.f32.mrb[26].mxu1  ;;  %v5974_v49 = vpop.f32.mrb[27].mxu0 }
 0x457   : > { %v6140_v55 = vadd.f32 %v6577_v46, %v10780_v14  ;;  %v5975_v36 = vadd.f32 %v10780_v14, %v5974_v49  ;;  %v6134_v26 = vpop.f32.mrb[27].mxu1 }
 0x458   : > { %6190 = vst [vmem:[%s10797_s30 + $0xd8] sm:$0xff] %v5980_v63  ;;  %v6135_v9 = vadd.f32 %v10780_v14, %v6134_v26 }
 0x459   : > { %6222 = vst [vmem:[%s10797_s30 + $0x1d8] sm:$0xff] %v6140_v55  ;;  %6189 = vst [vmem:[%s10797_s30 + $0xd0] sm:$0xff] %v5975_v36  ;;  %v6532_v16 = vpop.f32.mrb[28].mxu0 }
 0x45a   : > { %6221 = vst [vmem:[%s10797_s30 + $0x1d0] sm:$0xff] %v6135_v9  ;;  %v5990_v19 = vadd.f32 %v6532_v16, %v10780_v14  ;;  %v5984_v45 = vpop.f32.mrb[29].mxu0 }
 0x45b   : > { %v5985_v25 = vadd.f32 %v10780_v14, %v5984_v45 }
 0x45c   : > { %6192 = vst [vmem:[%s10797_s30 + $0xe8] sm:$0xff] %v5990_v19 }
 0x45d   : > { %6191 = vst [vmem:[%s10797_s30 + $0xe0] sm:$0xff] %v5985_v25  ;;  %v6535_v23 = vpop.f32.mrb[30].mxu0 }
 0x45e   : > { %v6000_v8 = vadd.f32 %v6535_v23, %v10780_v14  ;;  %v5994_v42 = vpop.f32.mrb[31].mxu0 }
 0x45f   : > { %v5995_v40 = vadd.f32 %v10780_v14, %v5994_v42 }
 0x460   : > { %6194 = vst [vmem:[%s10797_s30 + $0xf8] sm:$0xff] %v6000_v8 }
 0x461   : > { %6193 = vst [vmem:[%s10797_s30 + $0xf0] sm:$0xff] %v5995_v40 }
 0x467   : > { %v6580_v60 = vpop.f32.mrb[28].mxu1 }
 0x468   : > { %v6150_v43 = vadd.f32 %v6580_v60, %v10780_v14  ;;  %v6144_v13 = vpop.f32.mrb[29].mxu1 }
 0x469   : > { %v6145_v53 = vadd.f32 %v10780_v14, %v6144_v13 }
 0x46a   : > { %6224 = vst [vmem:[%s10797_s30 + $0x1e8] sm:$0xff] %v6150_v43 }
 0x46b   : > { %6223 = vst [vmem:[%s10797_s30 + $0x1e0] sm:$0xff] %v6145_v53 }
 0x473   : > { %v6583_v52 = vpop.f32.mrb[30].mxu1 }
 0x474   : > { %v6160_v11 = vadd.f32 %v6583_v52, %v10780_v14  ;;  %v6154_v35 = vpop.f32.mrb[31].mxu1 }
 0x475   : > { %v6155_v5 = vadd.f32 %v10780_v14, %v6154_v35 }
 0x476   : > { %6226 = vst [vmem:[%s10797_s30 + $0x1f8] sm:$0xff] %v6160_v11 }
 0x477   : > { %6225 = vst [vmem:[%s10797_s30 + $0x1f0] sm:$0xff] %v6155_v5 }
 0x478 PF: > { %s13_s16 = sadd.s32 1, %s6710_s16   ;;  %s12864_s12 = smov %s6702_s14 }
 0x479   : > { %p10_p7 = scmp.ge.s32.totalorder %s13_s16, 6   ;;  %s12865_s13 = smov %s6706_s15 }
 0x47a   : > { %s12866_s14 = smov %s12869_s17  ;;  %s12867_s15 = smov %s12873_s18 }
 0x47b   :  { %12 = sbr.rel (!%p10_p7) target bundleno = 3 (0x3), region = 63 }

</bundles_post_ra>
